<compile_context>
chip_gen: v7x
topology: tpu7x:2x2x1
jax: 0.10.0
libtpu: 0.0.40
codegen_flags: <defaults>
</compile_context>

<pallas_src>
import jax
import jax.numpy as jnp
import numpy as np
from jax.experimental import pallas as pl
from jax.experimental.pallas import tpu as pltpu


def _round_up(x, m):
    return ((x + m - 1) // m) * m


def fold_bn(gamma, beta, mean, var, eps=1e-5):
    scale = gamma / jnp.sqrt(var + eps)
    bias = beta - mean * scale
    return scale, bias


def _prep_weight(w_oihw, scale, cp):
    """PyTorch (Cout,Cin,3,3) -> (9, cp, cp) bf16 taps with BN scale folded in."""
    Cout, Cin, kh, kw = w_oihw.shape
    w = jnp.transpose(w_oihw, (2, 3, 1, 0)).reshape(kh * kw, Cin, Cout)
    w = w * scale[None, None, :]
    wp = jnp.zeros((kh * kw, cp, cp), jnp.float32).at[:, :Cin, :Cout].set(w)
    return wp.astype(jnp.bfloat16)


def _prep_bias(bias, cp):
    return jnp.zeros((1, cp), jnp.float32).at[0, :bias.shape[0]].set(bias)


def fused_encoder_pallas(x_pad, w1, b1, w2, b2, *, H, W, TH, CP):
    """x_pad: (N, H_pad+4, WpH, CP) bf16, zero padded (2-px spatial halo,
    channels padded to CP). Returns (N, H_pad, W, CP) f32."""
    N, hpad4, WpH, _ = x_pad.shape
    H_pad = hpad4 - 4
    num_tiles = H_pad // TH
    HY = TH + 2            # y1 rows computed per tile (1-row halo each side)
    WY = WpH - 2           # y1 cols computed per tile (>= W+2, multiple of 8)
    M1 = HY * WY
    M2 = TH * W

    def kernel(xa_ref, xb_ref, w1_ref, b1_ref, w2_ref, b2_ref, o_ref):
        i = pl.program_id(1)

        # (TH+4, WpH, CP) bf16 input tile incl. 2-pixel halo (zero padded).
        xt = jnp.concatenate([xa_ref[...], xb_ref[...]], axis=0)

        # ---- conv1 (3x3, pad 1) + folded BN1 + ReLU over the y1 halo tile ----
        acc1 = jnp.zeros((M1, CP), jnp.float32)
        for dh in range(3):
            for dw in range(3):
                patch = xt[dh:dh + HY, dw:dw + WY, :].reshape(M1, CP)
                acc1 = acc1 + jnp.dot(patch, w1_ref[dh * 3 + dw],
                                      preferred_element_type=jnp.float32)
        y1 = jnp.maximum(acc1 + b1_ref[...], 0.0).reshape(HY, WY, CP)

        # conv2 zero-pads y1: zero the halo rows/cols that fall outside the image.
        u = jax.lax.broadcasted_iota(jnp.int32, (HY, WY, 1), 0)
        v = jax.lax.broadcasted_iota(jnp.int32, (HY, WY, 1), 1)
        g = i * TH - 1 + u                           # global y1 row index
        valid = (g >= 0) & (g < H) & (v >= 1) & (v <= W)
        y1 = jnp.where(valid, y1, 0.0).astype(jnp.bfloat16)

        # ---- conv2 + folded BN2 + Dropout2d(eval=id) + residual + ReLU ----
        acc2 = jnp.zeros((M2, CP), jnp.float32)
        for dh in range(3):
            for dw in range(3):
                patch = y1[dh:dh + TH, dw:dw + W, :].reshape(M2, CP)
                acc2 = acc2 + jnp.dot(patch, w2_ref[dh * 3 + dw],
                                      preferred_element_type=jnp.float32)
        res = xt[2:2 + TH, 2:2 + W, :].astype(jnp.float32).reshape(M2, CP)
        out = jnp.maximum(acc2 + b2_ref[...] + res, 0.0)
        o_ref[...] = out.reshape(TH, W, CP).astype(o_ref.dtype)

    flops = 2 * 9 * CP * CP * N * num_tiles * (M1 + M2)
    bytes_accessed = (x_pad.size * 2 * (TH + 4) // TH   # bf16 activations (+halo reload)
                      + (w1.size + w2.size) * 2         # bf16 weights
                      + N * H_pad * W * CP * 4)         # f32 output

    return pl.pallas_call(
        kernel,
        out_shape=jax.ShapeDtypeStruct((N, H_pad, W, CP), jnp.float32),
        grid=(N, num_tiles),
        in_specs=[
            # Main TH-row slab of the padded input.
            pl.BlockSpec((None, TH, WpH, CP), lambda n, i: (n, i, 0, 0)),
            # 4-row bottom halo of the same array (TH % 4 == 0 by construction).
            pl.BlockSpec((None, 4, WpH, CP),
                         lambda n, i: (n, (i + 1) * (TH // 4), 0, 0)),
            # Weights / biases: constant index maps (re-used across all steps).
            # (For very large CP consider pipeline_mode=pl.Buffered(1) on these.)
            pl.BlockSpec((9, CP, CP), lambda n, i: (0, 0, 0)),
            pl.BlockSpec((1, CP), lambda n, i: (0, 0)),
            pl.BlockSpec((9, CP, CP), lambda n, i: (0, 0, 0)),
            pl.BlockSpec((1, CP), lambda n, i: (0, 0)),
        ],
        out_specs=pl.BlockSpec((None, TH, W, CP), lambda n, i: (n, i, 0, 0)),
        compiler_params=pltpu.CompilerParams(
            dimension_semantics=("parallel", "parallel"),
            vmem_limit_bytes=48 * 1024 * 1024),
        cost_estimate=pl.CostEstimate(flops=flops, transcendentals=0,
                                      bytes_accessed=bytes_accessed),
    )(x_pad, x_pad, w1, b1, w2, b2)


def encoder_forward(x_nchw, params, eps=1e-5, tile_rows=None):
    """Encoder(in_ch, out_ch, stride=1, shortcut=None) forward, eval mode, NCHW."""
    x = jnp.transpose(x_nchw, (0, 2, 3, 1)).astype(jnp.float32)   # NHWC
    N, H, W, Cin = x.shape
    Cout = params["w1"].shape[0]
    assert Cin == Cout, "identity shortcut requires in_channels == out_channels"

    CP = _round_up(max(Cin, Cout), 128)        # lane-dense channel padding
    if tile_rows is None:
        tile_rows = min(32, _round_up(H, 4))   # TODO(synk): sweep per generation
    TH = _round_up(tile_rows, 4)
    H_pad = _round_up(H, TH)

    WY = _round_up(W + 2, 8)                   # 8-aligned conv1 tile width
    WpH = WY + 2                               # stored width incl. left halo

    s1, b1 = fold_bn(params["bn1_gamma"], params["bn1_beta"],
                     params["bn1_mean"], params["bn1_var"], eps)
    s2, b2 = fold_bn(params["bn2_gamma"], params["bn2_beta"],
                     params["bn2_mean"], params["bn2_var"], eps)
    w1m = _prep_weight(params["w1"], s1, CP)
    w2m = _prep_weight(params["w2"], s2, CP)
    b1v = _prep_bias(b1, CP)
    b2v = _prep_bias(b2, CP)

    # Zero-padded bf16 activations: 2-px spatial halo + channels padded to CP.
    x_pad = jnp.zeros((N, H_pad + 4, WpH, CP), jnp.bfloat16)
    x_pad = x_pad.at[:, 2:2 + H, 2:2 + W, :Cin].set(x.astype(jnp.bfloat16))

    out_pad = fused_encoder_pallas(x_pad, w1m, b1v, w2m, b2v,
                                   H=H, W=W, TH=TH, CP=CP)
    out = out_pad[:, :H, :, :Cout]
    return jnp.transpose(out, (0, 3, 1, 2))    # back to NCHW


# ----------------------------------------------------------------------------
# Parameter init and pure-JAX references
# ----------------------------------------------------------------------------
def init_params(key, in_channels, out_channels):
    ks = jax.random.split(key, 12)
    return {
        "w1": 0.1 * jax.random.normal(ks[0], (out_channels, in_channels, 3, 3),
                                      jnp.float32),
        "bn1_gamma": 1.0 + 0.1 * jax.random.normal(ks[1], (out_channels,), jnp.float32),
        "bn1_beta": 0.1 * jax.random.normal(ks[2], (out_channels,), jnp.float32),
        "bn1_mean": 0.1 * jax.random.normal(ks[3], (out_channels,), jnp.float32),
        "bn1_var": 0.5 + jnp.abs(jax.random.normal(ks[4], (out_channels,), jnp.float32)),
        "w2": 0.1 * jax.random.normal(ks[5], (out_channels, out_channels, 3, 3),
                                      jnp.float32),
        "bn2_gamma": 1.0 + 0.1 * jax.random.normal(ks[6], (out_channels,), jnp.float32),
        "bn2_beta": 0.1 * jax.random.normal(ks[7], (out_channels,), jnp.float32),
        "bn2_mean": 0.1 * jax.random.normal(ks[8], (out_channels,), jnp.float32),
        "bn2_var": 0.5 + jnp.abs(jax.random.normal(ks[9], (out_channels,), jnp.float32)),
    }


def _conv_nhwc(z, w_hwio):
    return jax.lax.conv_general_dilated(
        z, w_hwio, window_strides=(1, 1), padding=((1, 1), (1, 1)),
        dimension_numbers=("NHWC", "HWIO", "NHWC"),
        preferred_element_type=jnp.float32)


def ref_forward(x_nchw, params, eps=1e-5):
    """Full-f32 reference matching the PyTorch module (eval mode)."""
    x = jnp.transpose(x_nchw, (0, 2, 3, 1)).astype(jnp.float32)

    def bn(z, g, b, m, v):
        return (z - m) / jnp.sqrt(v + eps) * g + b

    w1 = jnp.transpose(params["w1"], (2, 3, 1, 0))
    w2 = jnp.transpose(params["w2"], (2, 3, 1, 0))
    y = jnp.maximum(bn(_conv_nhwc(x, w1), params["bn1_gamma"], params["bn1_beta"],
                       params["bn1_mean"], params["bn1_var"]), 0.0)
    y = bn(_conv_nhwc(y, w2), params["bn2_gamma"], params["bn2_beta"],
           params["bn2_mean"], params["bn2_var"])
    y = jnp.maximum(y + x, 0.0)
    return jnp.transpose(y, (0, 3, 1, 2))


def ref_forward_matched(x_nchw, params, eps=1e-5):
    """Reference using the same bf16-matmul numerics as the Pallas kernel."""
    x = jnp.transpose(x_nchw, (0, 2, 3, 1)).astype(jnp.float32)
    s1, b1 = fold_bn(params["bn1_gamma"], params["bn1_beta"],
                     params["bn1_mean"], params["bn1_var"], eps)
    s2, b2 = fold_bn(params["bn2_gamma"], params["bn2_beta"],
                     params["bn2_mean"], params["bn2_var"], eps)
    w1 = (jnp.transpose(params["w1"], (2, 3, 1, 0)) * s1).astype(jnp.bfloat16)
    w2 = (jnp.transpose(params["w2"], (2, 3, 1, 0)) * s2).astype(jnp.bfloat16)
    xb = x.astype(jnp.bfloat16)
    y1 = jnp.maximum(_conv_nhwc(xb, w1) + b1, 0.0).astype(jnp.bfloat16)
    y2 = _conv_nhwc(y1, w2) + b2 + xb.astype(jnp.float32)
    out = jnp.maximum(y2, 0.0)
    return jnp.transpose(out, (0, 3, 1, 2))


if __name__ == "__main__":
    key = jax.random.PRNGKey(0)
    k_x, k_p = jax.random.split(key)

    N, C, H, W = 2, 8, 16, 16          # identity shortcut: in == out channels
    x = jax.random.normal(k_x, (N, C, H, W), jnp.float32)
    params = init_params(k_p, C, C)

    # tile_rows=8 -> two row tiles per image: exercises the inter-tile halo path.
    out = encoder_forward(x, params, tile_rows=8)
    out = jax.block_until_ready(out)

    # Tight check vs. a reference using identical bf16-MXU numerics.
    ref_m = ref_forward_matched(x, params)
    np.testing.assert_allclose(np.asarray(out), np.asarray(ref_m),
                               rtol=1e-3, atol=1e-3)

    # Loose sanity check vs. the full-f32 PyTorch-semantics reference
    # (difference is only bf16 rounding on the matmul path).
    ref_f = ref_forward(x, params)
    np.testing.assert_allclose(np.asarray(out), np.asarray(ref_f),
                               rtol=5e-2, atol=5e-2)

    print("KERNEL_OK")
</pallas_src>

<mosaic_0001>
module attributes {stable_mosaic.version = 11 : i64} {
  func.func @kernel(%arg0: i32, %arg1: i32, %arg2: memref<1x8x26x128xbf16, #tpu.memory_space<vmem>>, %arg3: memref<1x4x26x128xbf16, #tpu.memory_space<vmem>>, %arg4: memref<9x128x128xbf16, #tpu.memory_space<vmem>>, %arg5: memref<1x128xf32, #tpu.memory_space<vmem>>, %arg6: memref<9x128x128xbf16, #tpu.memory_space<vmem>>, %arg7: memref<1x128xf32, #tpu.memory_space<vmem>>, %arg8: memref<1x8x16x128xf32, #tpu.memory_space<vmem>>) attributes {dimension_semantics = [#tpu.dimension_semantics<parallel>, #tpu.dimension_semantics<parallel>], iteration_bounds = array<i64: 2, 2>, scalar_prefetch = 0 : i64, scratch_operands = 0 : i64, tpu.core_type = #tpu.core_type<tc>, window_params = [{transform_indices = @transform_0, window_bounds = array<i64: 1, 8, 26, 128>}, {transform_indices = @transform_1, window_bounds = array<i64: 1, 4, 26, 128>}, {pipeline_mode = #tpu.pipeline_mode<synchronous>, transform_indices = @transform_2, window_bounds = array<i64: 9, 128, 128>}, {pipeline_mode = #tpu.pipeline_mode<synchronous>, transform_indices = @transform_3, window_bounds = array<i64: 1, 128>}, {pipeline_mode = #tpu.pipeline_mode<synchronous>, transform_indices = @transform_4, window_bounds = array<i64: 9, 128, 128>}, {pipeline_mode = #tpu.pipeline_mode<synchronous>, transform_indices = @transform_5, window_bounds = array<i64: 1, 128>}, {transform_indices = @transform_6, window_bounds = array<i64: 1, 8, 16, 128>}]} {
    %c0 = arith.constant 0 : index
    %c0_0 = arith.constant 0 : index
    %c0_1 = arith.constant 0 : index
    %c0_2 = arith.constant 0 : index
    %0 = vector.load %arg2[%c0, %c0_0, %c0_1, %c0_2] : memref<1x8x26x128xbf16, #tpu.memory_space<vmem>>, vector<1x8x26x128xbf16>
    %1 = vector.shape_cast %0 : vector<1x8x26x128xbf16> to vector<8x26x128xbf16>
    %c0_3 = arith.constant 0 : index
    %c0_4 = arith.constant 0 : index
    %c0_5 = arith.constant 0 : index
    %c0_6 = arith.constant 0 : index
    %2 = vector.load %arg3[%c0_3, %c0_4, %c0_5, %c0_6] : memref<1x4x26x128xbf16, #tpu.memory_space<vmem>>, vector<1x4x26x128xbf16>
    %3 = vector.shape_cast %2 : vector<1x4x26x128xbf16> to vector<4x26x128xbf16>
    %4 = tpu.concatenate %1, %3 in 0 : vector<8x26x128xbf16>, vector<4x26x128xbf16> -> vector<12x26x128xbf16>
    %cst = arith.constant 0.000000e+00 : f32
    %5 = vector.broadcast %cst : f32 to vector<240x128xf32>
    %6 = vector.extract_strided_slice %4 {offsets = [0, 0, 0], sizes = [10, 24, 128], strides = [1, 1, 1]} : vector<12x26x128xbf16> to vector<10x24x128xbf16>
    %7 = vector.shape_cast %6 : vector<10x24x128xbf16> to vector<240x128xbf16>
    %c0_7 = arith.constant 0 : index
    %c0_8 = arith.constant 0 : index
    %c0_9 = arith.constant 0 : index
    %8 = vector.load %arg4[%c0_7, %c0_8, %c0_9] : memref<9x128x128xbf16, #tpu.memory_space<vmem>>, vector<1x128x128xbf16>
    %9 = vector.shape_cast %8 : vector<1x128x128xbf16> to vector<128x128xbf16>
    %cst_10 = arith.constant dense<0.000000e+00> : vector<240x128xf32>
    %10 = tpu.matmul %7, %9, %cst_10 {dimension_numbers = #tpu.dot_dimension_numbers<[1], [0], [0], [1], [0, 0, 1, 1], [], []>} : vector<240x128xbf16>, vector<128x128xbf16>, vector<240x128xf32> -> vector<240x128xf32>
    %11 = arith.addf %5, %10 : vector<240x128xf32>
    %12 = vector.extract_strided_slice %4 {offsets = [0, 1, 0], sizes = [10, 24, 128], strides = [1, 1, 1]} : vector<12x26x128xbf16> to vector<10x24x128xbf16>
    %13 = vector.shape_cast %12 : vector<10x24x128xbf16> to vector<240x128xbf16>
    %c1 = arith.constant 1 : index
    %c0_11 = arith.constant 0 : index
    %c0_12 = arith.constant 0 : index
    %14 = vector.load %arg4[%c1, %c0_11, %c0_12] : memref<9x128x128xbf16, #tpu.memory_space<vmem>>, vector<1x128x128xbf16>
    %15 = vector.shape_cast %14 : vector<1x128x128xbf16> to vector<128x128xbf16>
    %cst_13 = arith.constant dense<0.000000e+00> : vector<240x128xf32>
    %16 = tpu.matmul %13, %15, %cst_13 {dimension_numbers = #tpu.dot_dimension_numbers<[1], [0], [0], [1], [0, 0, 1, 1], [], []>} : vector<240x128xbf16>, vector<128x128xbf16>, vector<240x128xf32> -> vector<240x128xf32>
    %17 = arith.addf %11, %16 : vector<240x128xf32>
    %18 = vector.extract_strided_slice %4 {offsets = [0, 2, 0], sizes = [10, 24, 128], strides = [1, 1, 1]} : vector<12x26x128xbf16> to vector<10x24x128xbf16>
    %19 = vector.shape_cast %18 : vector<10x24x128xbf16> to vector<240x128xbf16>
    %c2 = arith.constant 2 : index
    %c0_14 = arith.constant 0 : index
    %c0_15 = arith.constant 0 : index
    %20 = vector.load %arg4[%c2, %c0_14, %c0_15] : memref<9x128x128xbf16, #tpu.memory_space<vmem>>, vector<1x128x128xbf16>
    %21 = vector.shape_cast %20 : vector<1x128x128xbf16> to vector<128x128xbf16>
    %cst_16 = arith.constant dense<0.000000e+00> : vector<240x128xf32>
    %22 = tpu.matmul %19, %21, %cst_16 {dimension_numbers = #tpu.dot_dimension_numbers<[1], [0], [0], [1], [0, 0, 1, 1], [], []>} : vector<240x128xbf16>, vector<128x128xbf16>, vector<240x128xf32> -> vector<240x128xf32>
    %23 = arith.addf %17, %22 : vector<240x128xf32>
    %24 = vector.extract_strided_slice %4 {offsets = [1, 0, 0], sizes = [10, 24, 128], strides = [1, 1, 1]} : vector<12x26x128xbf16> to vector<10x24x128xbf16>
    %25 = vector.shape_cast %24 : vector<10x24x128xbf16> to vector<240x128xbf16>
    %c3 = arith.constant 3 : index
    %c0_17 = arith.constant 0 : index
    %c0_18 = arith.constant 0 : index
    %26 = vector.load %arg4[%c3, %c0_17, %c0_18] : memref<9x128x128xbf16, #tpu.memory_space<vmem>>, vector<1x128x128xbf16>
    %27 = vector.shape_cast %26 : vector<1x128x128xbf16> to vector<128x128xbf16>
    %cst_19 = arith.constant dense<0.000000e+00> : vector<240x128xf32>
    %28 = tpu.matmul %25, %27, %cst_19 {dimension_numbers = #tpu.dot_dimension_numbers<[1], [0], [0], [1], [0, 0, 1, 1], [], []>} : vector<240x128xbf16>, vector<128x128xbf16>, vector<240x128xf32> -> vector<240x128xf32>
    %29 = arith.addf %23, %28 : vector<240x128xf32>
    %30 = vector.extract_strided_slice %4 {offsets = [1, 1, 0], sizes = [10, 24, 128], strides = [1, 1, 1]} : vector<12x26x128xbf16> to vector<10x24x128xbf16>
    %31 = vector.shape_cast %30 : vector<10x24x128xbf16> to vector<240x128xbf16>
    %c4 = arith.constant 4 : index
    %c0_20 = arith.constant 0 : index
    %c0_21 = arith.constant 0 : index
    %32 = vector.load %arg4[%c4, %c0_20, %c0_21] : memref<9x128x128xbf16, #tpu.memory_space<vmem>>, vector<1x128x128xbf16>
    %33 = vector.shape_cast %32 : vector<1x128x128xbf16> to vector<128x128xbf16>
    %cst_22 = arith.constant dense<0.000000e+00> : vector<240x128xf32>
    %34 = tpu.matmul %31, %33, %cst_22 {dimension_numbers = #tpu.dot_dimension_numbers<[1], [0], [0], [1], [0, 0, 1, 1], [], []>} : vector<240x128xbf16>, vector<128x128xbf16>, vector<240x128xf32> -> vector<240x128xf32>
    %35 = arith.addf %29, %34 : vector<240x128xf32>
    %36 = vector.extract_strided_slice %4 {offsets = [1, 2, 0], sizes = [10, 24, 128], strides = [1, 1, 1]} : vector<12x26x128xbf16> to vector<10x24x128xbf16>
    %37 = vector.shape_cast %36 : vector<10x24x128xbf16> to vector<240x128xbf16>
    %c5 = arith.constant 5 : index
    %c0_23 = arith.constant 0 : index
    %c0_24 = arith.constant 0 : index
    %38 = vector.load %arg4[%c5, %c0_23, %c0_24] : memref<9x128x128xbf16, #tpu.memory_space<vmem>>, vector<1x128x128xbf16>
    %39 = vector.shape_cast %38 : vector<1x128x128xbf16> to vector<128x128xbf16>
    %cst_25 = arith.constant dense<0.000000e+00> : vector<240x128xf32>
    %40 = tpu.matmul %37, %39, %cst_25 {dimension_numbers = #tpu.dot_dimension_numbers<[1], [0], [0], [1], [0, 0, 1, 1], [], []>} : vector<240x128xbf16>, vector<128x128xbf16>, vector<240x128xf32> -> vector<240x128xf32>
    %41 = arith.addf %35, %40 : vector<240x128xf32>
    %42 = vector.extract_strided_slice %4 {offsets = [2, 0, 0], sizes = [10, 24, 128], strides = [1, 1, 1]} : vector<12x26x128xbf16> to vector<10x24x128xbf16>
    %43 = vector.shape_cast %42 : vector<10x24x128xbf16> to vector<240x128xbf16>
    %c6 = arith.constant 6 : index
    %c0_26 = arith.constant 0 : index
    %c0_27 = arith.constant 0 : index
    %44 = vector.load %arg4[%c6, %c0_26, %c0_27] : memref<9x128x128xbf16, #tpu.memory_space<vmem>>, vector<1x128x128xbf16>
    %45 = vector.shape_cast %44 : vector<1x128x128xbf16> to vector<128x128xbf16>
    %cst_28 = arith.constant dense<0.000000e+00> : vector<240x128xf32>
    %46 = tpu.matmul %43, %45, %cst_28 {dimension_numbers = #tpu.dot_dimension_numbers<[1], [0], [0], [1], [0, 0, 1, 1], [], []>} : vector<240x128xbf16>, vector<128x128xbf16>, vector<240x128xf32> -> vector<240x128xf32>
    %47 = arith.addf %41, %46 : vector<240x128xf32>
    %48 = vector.extract_strided_slice %4 {offsets = [2, 1, 0], sizes = [10, 24, 128], strides = [1, 1, 1]} : vector<12x26x128xbf16> to vector<10x24x128xbf16>
    %49 = vector.shape_cast %48 : vector<10x24x128xbf16> to vector<240x128xbf16>
    %c7 = arith.constant 7 : index
    %c0_29 = arith.constant 0 : index
    %c0_30 = arith.constant 0 : index
    %50 = vector.load %arg4[%c7, %c0_29, %c0_30] : memref<9x128x128xbf16, #tpu.memory_space<vmem>>, vector<1x128x128xbf16>
    %51 = vector.shape_cast %50 : vector<1x128x128xbf16> to vector<128x128xbf16>
    %cst_31 = arith.constant dense<0.000000e+00> : vector<240x128xf32>
    %52 = tpu.matmul %49, %51, %cst_31 {dimension_numbers = #tpu.dot_dimension_numbers<[1], [0], [0], [1], [0, 0, 1, 1], [], []>} : vector<240x128xbf16>, vector<128x128xbf16>, vector<240x128xf32> -> vector<240x128xf32>
    %53 = arith.addf %47, %52 : vector<240x128xf32>
    %54 = vector.extract_strided_slice %4 {offsets = [2, 2, 0], sizes = [10, 24, 128], strides = [1, 1, 1]} : vector<12x26x128xbf16> to vector<10x24x128xbf16>
    %55 = vector.shape_cast %54 : vector<10x24x128xbf16> to vector<240x128xbf16>
    %c8 = arith.constant 8 : index
    %c0_32 = arith.constant 0 : index
    %c0_33 = arith.constant 0 : index
    %56 = vector.load %arg4[%c8, %c0_32, %c0_33] : memref<9x128x128xbf16, #tpu.memory_space<vmem>>, vector<1x128x128xbf16>
    %57 = vector.shape_cast %56 : vector<1x128x128xbf16> to vector<128x128xbf16>
    %cst_34 = arith.constant dense<0.000000e+00> : vector<240x128xf32>
    %58 = tpu.matmul %55, %57, %cst_34 {dimension_numbers = #tpu.dot_dimension_numbers<[1], [0], [0], [1], [0, 0, 1, 1], [], []>} : vector<240x128xbf16>, vector<128x128xbf16>, vector<240x128xf32> -> vector<240x128xf32>
    %59 = arith.addf %53, %58 : vector<240x128xf32>
    %c0_35 = arith.constant 0 : index
    %c0_36 = arith.constant 0 : index
    %60 = vector.load %arg5[%c0_35, %c0_36] : memref<1x128xf32, #tpu.memory_space<vmem>>, vector<1x128xf32>
    %61 = vector.broadcast %60 : vector<1x128xf32> to vector<240x128xf32>
    %62 = arith.addf %59, %61 : vector<240x128xf32>
    %cst_37 = arith.constant 0.000000e+00 : f32
    %63 = vector.broadcast %cst_37 : f32 to vector<240x128xf32>
    %64 = arith.maximumf %62, %63 : vector<240x128xf32>
    %65 = vector.shape_cast %64 : vector<240x128xf32> to vector<10x24x128xf32>
    %66 = tpu.iota {dimensions = array<i32: 0>} : vector<10x24x1xi32>
    %67 = tpu.iota {dimensions = array<i32: 1>} : vector<10x24x1xi32>
    %c8_i32 = arith.constant 8 : i32
    %68 = arith.muli %arg1, %c8_i32 : i32
    %c1_i32 = arith.constant 1 : i32
    %69 = arith.subi %68, %c1_i32 : i32
    %70 = vector.broadcast %69 : i32 to vector<10x24x1xi32>
    %71 = arith.addi %70, %66 : vector<10x24x1xi32>
    %c0_i32 = arith.constant 0 : i32
    %72 = vector.broadcast %c0_i32 : i32 to vector<10x24x1xi32>
    %73 = arith.cmpi sge, %71, %72 : vector<10x24x1xi32>
    %c16_i32 = arith.constant 16 : i32
    %74 = vector.broadcast %c16_i32 : i32 to vector<10x24x1xi32>
    %75 = arith.cmpi slt, %71, %74 : vector<10x24x1xi32>
    %76 = arith.andi %73, %75 : vector<10x24x1xi1>
    %c1_i32_38 = arith.constant 1 : i32
    %77 = vector.broadcast %c1_i32_38 : i32 to vector<10x24x1xi32>
    %78 = arith.cmpi sge, %67, %77 : vector<10x24x1xi32>
    %79 = arith.andi %76, %78 : vector<10x24x1xi1>
    %c16_i32_39 = arith.constant 16 : i32
    %80 = vector.broadcast %c16_i32_39 : i32 to vector<10x24x1xi32>
    %81 = arith.cmpi sle, %67, %80 : vector<10x24x1xi32>
    %82 = arith.andi %79, %81 : vector<10x24x1xi1>
    %cst_40 = arith.constant 0.000000e+00 : f32
    %83 = vector.shape_cast %82 : vector<10x24x1xi1> to vector<10x24x1xi1>
    %84 = vector.broadcast %83 : vector<10x24x1xi1> to vector<10x24x128xi1>
    %85 = vector.broadcast %cst_40 : f32 to vector<10x24x128xf32>
    %86 = arith.select %84, %65, %85 : vector<10x24x128xi1>, vector<10x24x128xf32>
    %87 = arith.truncf %86 : vector<10x24x128xf32> to vector<10x24x128xbf16>
    %cst_41 = arith.constant 0.000000e+00 : f32
    %88 = vector.broadcast %cst_41 : f32 to vector<128x128xf32>
    %89 = vector.extract_strided_slice %87 {offsets = [0, 0, 0], sizes = [8, 16, 128], strides = [1, 1, 1]} : vector<10x24x128xbf16> to vector<8x16x128xbf16>
    %90 = vector.shape_cast %89 : vector<8x16x128xbf16> to vector<128x128xbf16>
    %c0_42 = arith.constant 0 : index
    %c0_43 = arith.constant 0 : index
    %c0_44 = arith.constant 0 : index
    %91 = vector.load %arg6[%c0_42, %c0_43, %c0_44] : memref<9x128x128xbf16, #tpu.memory_space<vmem>>, vector<1x128x128xbf16>
    %92 = vector.shape_cast %91 : vector<1x128x128xbf16> to vector<128x128xbf16>
    %cst_45 = arith.constant dense<0.000000e+00> : vector<128x128xf32>
    %93 = tpu.matmul %90, %92, %cst_45 {dimension_numbers = #tpu.dot_dimension_numbers<[1], [0], [0], [1], [0, 0, 1, 1], [], []>} : vector<128x128xbf16>, vector<128x128xbf16>, vector<128x128xf32> -> vector<128x128xf32>
    %94 = arith.addf %88, %93 : vector<128x128xf32>
    %95 = vector.extract_strided_slice %87 {offsets = [0, 1, 0], sizes = [8, 16, 128], strides = [1, 1, 1]} : vector<10x24x128xbf16> to vector<8x16x128xbf16>
    %96 = vector.shape_cast %95 : vector<8x16x128xbf16> to vector<128x128xbf16>
    %c1_46 = arith.constant 1 : index
    %c0_47 = arith.constant 0 : index
    %c0_48 = arith.constant 0 : index
    %97 = vector.load %arg6[%c1_46, %c0_47, %c0_48] : memref<9x128x128xbf16, #tpu.memory_space<vmem>>, vector<1x128x128xbf16>
    %98 = vector.shape_cast %97 : vector<1x128x128xbf16> to vector<128x128xbf16>
    %cst_49 = arith.constant dense<0.000000e+00> : vector<128x128xf32>
    %99 = tpu.matmul %96, %98, %cst_49 {dimension_numbers = #tpu.dot_dimension_numbers<[1], [0], [0], [1], [0, 0, 1, 1], [], []>} : vector<128x128xbf16>, vector<128x128xbf16>, vector<128x128xf32> -> vector<128x128xf32>
    %100 = arith.addf %94, %99 : vector<128x128xf32>
    %101 = vector.extract_strided_slice %87 {offsets = [0, 2, 0], sizes = [8, 16, 128], strides = [1, 1, 1]} : vector<10x24x128xbf16> to vector<8x16x128xbf16>
    %102 = vector.shape_cast %101 : vector<8x16x128xbf16> to vector<128x128xbf16>
    %c2_50 = arith.constant 2 : index
    %c0_51 = arith.constant 0 : index
    %c0_52 = arith.constant 0 : index
    %103 = vector.load %arg6[%c2_50, %c0_51, %c0_52] : memref<9x128x128xbf16, #tpu.memory_space<vmem>>, vector<1x128x128xbf16>
    %104 = vector.shape_cast %103 : vector<1x128x128xbf16> to vector<128x128xbf16>
    %cst_53 = arith.constant dense<0.000000e+00> : vector<128x128xf32>
    %105 = tpu.matmul %102, %104, %cst_53 {dimension_numbers = #tpu.dot_dimension_numbers<[1], [0], [0], [1], [0, 0, 1, 1], [], []>} : vector<128x128xbf16>, vector<128x128xbf16>, vector<128x128xf32> -> vector<128x128xf32>
    %106 = arith.addf %100, %105 : vector<128x128xf32>
    %107 = vector.extract_strided_slice %87 {offsets = [1, 0, 0], sizes = [8, 16, 128], strides = [1, 1, 1]} : vector<10x24x128xbf16> to vector<8x16x128xbf16>
    %108 = vector.shape_cast %107 : vector<8x16x128xbf16> to vector<128x128xbf16>
    %c3_54 = arith.constant 3 : index
    %c0_55 = arith.constant 0 : index
    %c0_56 = arith.constant 0 : index
    %109 = vector.load %arg6[%c3_54, %c0_55, %c0_56] : memref<9x128x128xbf16, #tpu.memory_space<vmem>>, vector<1x128x128xbf16>
    %110 = vector.shape_cast %109 : vector<1x128x128xbf16> to vector<128x128xbf16>
    %cst_57 = arith.constant dense<0.000000e+00> : vector<128x128xf32>
    %111 = tpu.matmul %108, %110, %cst_57 {dimension_numbers = #tpu.dot_dimension_numbers<[1], [0], [0], [1], [0, 0, 1, 1], [], []>} : vector<128x128xbf16>, vector<128x128xbf16>, vector<128x128xf32> -> vector<128x128xf32>
    %112 = arith.addf %106, %111 : vector<128x128xf32>
    %113 = vector.extract_strided_slice %87 {offsets = [1, 1, 0], sizes = [8, 16, 128], strides = [1, 1, 1]} : vector<10x24x128xbf16> to vector<8x16x128xbf16>
    %114 = vector.shape_cast %113 : vector<8x16x128xbf16> to vector<128x128xbf16>
    %c4_58 = arith.constant 4 : index
    %c0_59 = arith.constant 0 : index
    %c0_60 = arith.constant 0 : index
    %115 = vector.load %arg6[%c4_58, %c0_59, %c0_60] : memref<9x128x128xbf16, #tpu.memory_space<vmem>>, vector<1x128x128xbf16>
    %116 = vector.shape_cast %115 : vector<1x128x128xbf16> to vector<128x128xbf16>
    %cst_61 = arith.constant dense<0.000000e+00> : vector<128x128xf32>
    %117 = tpu.matmul %114, %116, %cst_61 {dimension_numbers = #tpu.dot_dimension_numbers<[1], [0], [0], [1], [0, 0, 1, 1], [], []>} : vector<128x128xbf16>, vector<128x128xbf16>, vector<128x128xf32> -> vector<128x128xf32>
    %118 = arith.addf %112, %117 : vector<128x128xf32>
    %119 = vector.extract_strided_slice %87 {offsets = [1, 2, 0], sizes = [8, 16, 128], strides = [1, 1, 1]} : vector<10x24x128xbf16> to vector<8x16x128xbf16>
    %120 = vector.shape_cast %119 : vector<8x16x128xbf16> to vector<128x128xbf16>
    %c5_62 = arith.constant 5 : index
    %c0_63 = arith.constant 0 : index
    %c0_64 = arith.constant 0 : index
    %121 = vector.load %arg6[%c5_62, %c0_63, %c0_64] : memref<9x128x128xbf16, #tpu.memory_space<vmem>>, vector<1x128x128xbf16>
    %122 = vector.shape_cast %121 : vector<1x128x128xbf16> to vector<128x128xbf16>
    %cst_65 = arith.constant dense<0.000000e+00> : vector<128x128xf32>
    %123 = tpu.matmul %120, %122, %cst_65 {dimension_numbers = #tpu.dot_dimension_numbers<[1], [0], [0], [1], [0, 0, 1, 1], [], []>} : vector<128x128xbf16>, vector<128x128xbf16>, vector<128x128xf32> -> vector<128x128xf32>
    %124 = arith.addf %118, %123 : vector<128x128xf32>
    %125 = vector.extract_strided_slice %87 {offsets = [2, 0, 0], sizes = [8, 16, 128], strides = [1, 1, 1]} : vector<10x24x128xbf16> to vector<8x16x128xbf16>
    %126 = vector.shape_cast %125 : vector<8x16x128xbf16> to vector<128x128xbf16>
    %c6_66 = arith.constant 6 : index
    %c0_67 = arith.constant 0 : index
    %c0_68 = arith.constant 0 : index
    %127 = vector.load %arg6[%c6_66, %c0_67, %c0_68] : memref<9x128x128xbf16, #tpu.memory_space<vmem>>, vector<1x128x128xbf16>
    %128 = vector.shape_cast %127 : vector<1x128x128xbf16> to vector<128x128xbf16>
    %cst_69 = arith.constant dense<0.000000e+00> : vector<128x128xf32>
    %129 = tpu.matmul %126, %128, %cst_69 {dimension_numbers = #tpu.dot_dimension_numbers<[1], [0], [0], [1], [0, 0, 1, 1], [], []>} : vector<128x128xbf16>, vector<128x128xbf16>, vector<128x128xf32> -> vector<128x128xf32>
    %130 = arith.addf %124, %129 : vector<128x128xf32>
    %131 = vector.extract_strided_slice %87 {offsets = [2, 1, 0], sizes = [8, 16, 128], strides = [1, 1, 1]} : vector<10x24x128xbf16> to vector<8x16x128xbf16>
    %132 = vector.shape_cast %131 : vector<8x16x128xbf16> to vector<128x128xbf16>
    %c7_70 = arith.constant 7 : index
    %c0_71 = arith.constant 0 : index
    %c0_72 = arith.constant 0 : index
    %133 = vector.load %arg6[%c7_70, %c0_71, %c0_72] : memref<9x128x128xbf16, #tpu.memory_space<vmem>>, vector<1x128x128xbf16>
    %134 = vector.shape_cast %133 : vector<1x128x128xbf16> to vector<128x128xbf16>
    %cst_73 = arith.constant dense<0.000000e+00> : vector<128x128xf32>
    %135 = tpu.matmul %132, %134, %cst_73 {dimension_numbers = #tpu.dot_dimension_numbers<[1], [0], [0], [1], [0, 0, 1, 1], [], []>} : vector<128x128xbf16>, vector<128x128xbf16>, vector<128x128xf32> -> vector<128x128xf32>
    %136 = arith.addf %130, %135 : vector<128x128xf32>
    %137 = vector.extract_strided_slice %87 {offsets = [2, 2, 0], sizes = [8, 16, 128], strides = [1, 1, 1]} : vector<10x24x128xbf16> to vector<8x16x128xbf16>
    %138 = vector.shape_cast %137 : vector<8x16x128xbf16> to vector<128x128xbf16>
    %c8_74 = arith.constant 8 : index
    %c0_75 = arith.constant 0 : index
    %c0_76 = arith.constant 0 : index
    %139 = vector.load %arg6[%c8_74, %c0_75, %c0_76] : memref<9x128x128xbf16, #tpu.memory_space<vmem>>, vector<1x128x128xbf16>
    %140 = vector.shape_cast %139 : vector<1x128x128xbf16> to vector<128x128xbf16>
    %cst_77 = arith.constant dense<0.000000e+00> : vector<128x128xf32>
    %141 = tpu.matmul %138, %140, %cst_77 {dimension_numbers = #tpu.dot_dimension_numbers<[1], [0], [0], [1], [0, 0, 1, 1], [], []>} : vector<128x128xbf16>, vector<128x128xbf16>, vector<128x128xf32> -> vector<128x128xf32>
    %142 = arith.addf %136, %141 : vector<128x128xf32>
    %143 = vector.extract_strided_slice %4 {offsets = [2, 2, 0], sizes = [8, 16, 128], strides = [1, 1, 1]} : vector<12x26x128xbf16> to vector<8x16x128xbf16>
    %144 = arith.extf %143 : vector<8x16x128xbf16> to vector<8x16x128xf32>
    %145 = vector.shape_cast %144 : vector<8x16x128xf32> to vector<128x128xf32>
    %c0_78 = arith.constant 0 : index
    %c0_79 = arith.constant 0 : index
    %146 = vector.load %arg7[%c0_78, %c0_79] : memref<1x128xf32, #tpu.memory_space<vmem>>, vector<1x128xf32>
    %147 = vector.broadcast %146 : vector<1x128xf32> to vector<128x128xf32>
    %148 = arith.addf %142, %147 : vector<128x128xf32>
    %149 = arith.addf %148, %145 : vector<128x128xf32>
    %cst_80 = arith.constant 0.000000e+00 : f32
    %150 = vector.broadcast %cst_80 : f32 to vector<128x128xf32>
    %151 = arith.maximumf %149, %150 : vector<128x128xf32>
    %152 = vector.shape_cast %151 : vector<128x128xf32> to vector<8x16x128xf32>
    %c0_81 = arith.constant 0 : index
    %c0_82 = arith.constant 0 : index
    %c0_83 = arith.constant 0 : index
    %c0_84 = arith.constant 0 : index
    %153 = vector.load %arg8[%c0_81, %c0_82, %c0_83, %c0_84] : memref<1x8x16x128xf32, #tpu.memory_space<vmem>>, vector<1x8x16x128xf32>
    %154 = vector.shape_cast %153 : vector<1x8x16x128xf32> to vector<8x16x128xf32>
    %155 = vector.shape_cast %152 : vector<8x16x128xf32> to vector<1x8x16x128xf32>
    tpu.vector_store %arg8[%c0_81, %c0_82, %c0_83, %c0_84], %155 {strides = array<i32>} : memref<1x8x16x128xf32, #tpu.memory_space<vmem>>, vector<1x8x16x128xf32>,
    return
  }
  func.func @transform_0(%arg0: i32, %arg1: i32) -> (i32, i32, i32, i32) {
    %c0_i32 = arith.constant 0 : i32
    %c0_i32_0 = arith.constant 0 : i32
    %c0_i32_1 = arith.constant 0 : i32
    return %arg0, %arg1, %c0_i32, %c0_i32_0 : i32, i32, i32, i32
  }
  func.func @transform_1(%arg0: i32, %arg1: i32) -> (i32, i32, i32, i32) {
    %c1_i32 = arith.constant 1 : i32
    %0 = arith.addi %arg1, %c1_i32 : i32
    %c2_i32 = arith.constant 2 : i32
    %1 = arith.muli %0, %c2_i32 : i32
    %c0_i32 = arith.constant 0 : i32
    %c0_i32_0 = arith.constant 0 : i32
    %c0_i32_1 = arith.constant 0 : i32
    return %arg0, %1, %c0_i32, %c0_i32_0 : i32, i32, i32, i32
  }
  func.func @transform_2(%arg0: i32, %arg1: i32) -> (i32, i32, i32) {
    %c0_i32 = arith.constant 0 : i32
    %c0_i32_0 = arith.constant 0 : i32
    %c0_i32_1 = arith.constant 0 : i32
    %c0_i32_2 = arith.constant 0 : i32
    return %c0_i32, %c0_i32_0, %c0_i32_1 : i32, i32, i32
  }
  func.func @transform_3(%arg0: i32, %arg1: i32) -> (i32, i32) {
    %c0_i32 = arith.constant 0 : i32
    %c0_i32_0 = arith.constant 0 : i32
    %c0_i32_1 = arith.constant 0 : i32
    return %c0_i32, %c0_i32_0 : i32, i32
  }
  func.func @transform_4(%arg0: i32, %arg1: i32) -> (i32, i32, i32) {
    %c0_i32 = arith.constant 0 : i32
    %c0_i32_0 = arith.constant 0 : i32
    %c0_i32_1 = arith.constant 0 : i32
    %c0_i32_2 = arith.constant 0 : i32
    return %c0_i32, %c0_i32_0, %c0_i32_1 : i32, i32, i32
  }
  func.func @transform_5(%arg0: i32, %arg1: i32) -> (i32, i32) {
    %c0_i32 = arith.constant 0 : i32
    %c0_i32_0 = arith.constant 0 : i32
    %c0_i32_1 = arith.constant 0 : i32
    return %c0_i32, %c0_i32_0 : i32, i32
  }
  func.func @transform_6(%arg0: i32, %arg1: i32) -> (i32, i32, i32, i32) {
    %c0_i32 = arith.constant 0 : i32
    %c0_i32_0 = arith.constant 0 : i32
    %c0_i32_1 = arith.constant 0 : i32
    return %arg0, %arg1, %c0_i32, %c0_i32_0 : i32, i32, i32, i32
  }
}

</mosaic_0001>

<bundles_post_ra>
// kernel: tpu_custom_call.1
= control target key start
LH: loop header
LB: loop body
LE: loop exit
PB: predicated region body
PF: predicated region fallthrough
CT: control target
= control target key end

     0   :  { %11 = vsyncpa [#allocation3], 0  ;;  %s11530_s0 = inlined_call_operand.vmem [shape: bf16[2,20,26,128], index: 0, kind: input, shape index: {}]   ;;  %s11531_s1 = inlined_call_operand.vmem [shape: bf16[2,20,26,128], index: 1, kind: input, shape index: {}]   ;;  %s11532_s2 = inlined_call_operand.vmem [shape: bf16[9,128,128], index: 2, kind: input, shape index: {}]   ;;  %s11533_s3 = inlined_call_operand.vmem [shape: f32[1,128], index: 3, kind: input, shape index: {}]   ;;  %s11534_s4 = inlined_call_operand.vmem [shape: bf16[9,128,128], index: 4, kind: input, shape index: {}]   ;;  %s11535_s5 = inlined_call_operand.vmem [shape: f32[1,128], index: 5, kind: input, shape index: {}]   ;;  %s11536_s6 = inlined_call_operand.hbm [shape: f32[2,16,16,128], index: 6, kind: output, shape index: {}]  }
   0x1   :  { %13 = vsyncpa [#allocation3 + $0x1], 0  ;;  %s8360_s21 = smov 0   ;;  %s8362_s22 = smov 0  }
   0x2   :  { %s8364_s23 = smov 0   ;;  %s8366_s24 = smov 0  }
   0x3   :  { %s8368_s25 = smov 0   ;;  %s8370_s26 = smov 0  }
   0x4   :  { %s8372_s27 = smov 0   ;;  %s8374_s28 = smov 0  }
   0x5 LB: > { %s5819_s29 = sadd.s32 4294967295, %s8318_s28   ;;  %s5820_s30 = sadd.s32 4294967294, %s8318_s28   ;;  %s8318_s28 = sphi %s8374_s28, %s19_s28   ;;  %s8314_s27 = sphi %s8372_s27, %s11946_s27   ;;  %s8310_s26 = sphi %s8370_s26, %s11945_s26   ;;  %s8306_s25 = sphi %s8368_s25, %s11944_s25   ;;  %s8302_s24 = sphi %s8366_s24, %s11943_s24   ;;  %s8298_s23 = sphi %s8364_s23, %s11942_s23   ;;  %s8294_s22 = sphi %s8362_s22, %s11941_s22   ;;  %s8290_s21 = sphi %s8360_s21, %s11940_s21  }
   0x6   : > { %s28_s7 = sadd.s32 1, %s8310_s26  ;;  %s31_s8 = sadd.s32 1, %s8314_s27 }
   0x7   : > { %p29_p0 = scmp.ge.s32.totalorder %s28_s7, 2  ;;  %p194_p1 = scmp.ne.s32.totalorder %s8298_s23, %s8294_s22 }
   0x8   : > { %p195_p2 = scmp.eq.s32.totalorder %s5819_s29, 3  ;;  %p200_p5 = scmp.ne.s32.totalorder %s8294_s22, %s8290_s21 }
   0x9   : > { %s11948_s7 = smov (%p29_p0, %s28_s7), 0  ;;  %s11950_s8 = smov (!%p29_p0, %s31_s8), %s8314_s27 }
   0xa   : > { %11616 = sst [smem:[#allocation5_spill]] %s11948_s7  ;;  %s180_s9 = ssub.s32 %s8310_s26, %s11948_s7 }
   0xb   : > { %p8411_p3 = por %p195_p2, %p194_p1  ;;  %p33_p4 = scmp.ge.s32.totalorder %s11950_s8, 2 }
   0xc   : > { %p201_p6 = scmp.eq.s32.totalorder %s5820_s30, 3  ;;  %p5825_p7 = scmp.ge.s32.totalorder %s8318_s28, 1 }
   0xd   : > { %s11952_s8 = smov (%p33_p4, %s11950_s8), 0  ;;  %p273_p9 = scmp.lt.s32.totalorder %s8318_s28, 5 }
   0xe   : > { %11618 = sst [smem:[#allocation6_spill]] %s11952_s8  ;;  %p8420_p8 = por %p201_p6, %p200_p5 }
   0xf   : > { %s179_s12 = ssub.s32 %s8314_s27, %s11952_s8  ;;  %s184_s13 = sadd.s32 1, %s8298_s23 }
  0x10   : > { %s181_s14 = sor.u32 %s180_s9, %s179_s12  ;;  %p274_p10 = pnand %p5825_p7, %p273_p9 }
  0x11   : > { %p182_p11 = scmp.eq.s32.totalorder %s181_s14, 0 }
  0x12   : > { %277 = sbr.rel (%p274_p10) target bundleno = 1434 (0x59a), region = 44 }
  0x13   : > { %s8429_s15 = scalar_select %p182_p11, %s8298_s23, %s184_s13  }
  0x19   : > { %v7981_v0 = vld [vmem:[%s11532_s2 + $0x40] sm:$0xff]   ;;  %v11569_v1 = vmov 0.0   ;;  %v7982_v2 = vld [vmem:[%s11532_s2 + $0x48] sm:$0xff]   ;;  %vm8321_vm0 = vmmov 0   ;;  %s8442_s20 = sshll.u32 %s8302_s24, 3  ;;  %p331_p12 = scmp.lt.s32.totalorder %s8306_s25, 1 }
  0x1a   : > { %6789 = vmatprep.subr.bf16.mxu0 %v11569_v1  ;;  %7761 = vmatprep.subr.bf16.mxu1 %v11569_v1  ;;  %p333_p13 = scmp.lt.s32.totalorder %s8442_s20, 19  ;;  %v7983_v3 = vld [vmem:[%s11532_s2 + $0x50] sm:$0xff]   ;;  %v8461_v4 = vld [vmem:[%s11532_s2] sm:$0xff]   ;;  %v7984_v5 = vld [vmem:[%s11532_s2 + $0x58] sm:$0xff]   ;;  %vm427_vm1 = vsmask.f32 3328 }
  0x1b   : > { %6790 = vmatpush3.bf16.msra.mxu0 %v7981_v0  ;;  %6805 = vmatprep.mubr.msk.bf16.mxu0 %vm8321_vm0, %v11569_v1  ;;  %s8450_s29 = scalar_select %p331_p12, %s8306_s25, 1  ;;  %v8471_v6 = vld [vmem:[%s11532_s2 + $0x8] sm:$0xff]   ;;  %v7985_v9 = vld [vmem:[%s11532_s2 + $0x60] sm:$0xff]   ;;  %v8491_v16 = vld [vmem:[%s11532_s2 + $0x10] sm:$0xff]   ;;  %vm428_vm2 = vsmask.f32 7440 }
  0x1c   : > { %6791 = vmatprep.subr.bf16.mxu0 %v11569_v1  ;;  %6925 = vmatprep.mubr.msk.bf16.mxu1 %vm8321_vm0, %v11569_v1  ;;  %s334_s12 = scalar_select %p333_p13, %s8442_s20, 19  ;;  %v7986_v28 = vld [vmem:[%s11532_s2 + $0x68] sm:$0xff]   ;;  %v8504_v33 = vld [vmem:[%s11532_s2 + $0x18] sm:$0xff]   ;;  %v7987_v38 = vld [vmem:[%s11532_s2 + $0x70] sm:$0xff]   ;;  %v11620_v42 = vmov 0  ;;  %vm1349_vm4 = vcmask 1042432  }
  0x1d   : > { %s7905_s13 = smul.u32 80, %s8450_s29  ;;  %7769 = vmatpush3.bf16.msra.mxu1 %v8461_v4  ;;  %vm8512_vm3 = vmor %vm427_vm1, %vm428_vm2  ;;  %v8519_v46 = vld [vmem:[%s11532_s2 + $0x20] sm:$0xff]   ;;  %v7988_v54 = vld [vmem:[%s11532_s2 + $0x78] sm:$0xff]   ;;  %vm1350_vm5 = vcmask 1046532   ;;  %s6147_s16 = sadd.s32 4294967295, %s8442_s20  ;;  %vm11601_vm1 = vcmask 1046528  }
  0x1e   : > { %s5828_s14 = sshll.u32 %s334_s12, 2  ;;  %7762 = vmatprep.subr.bf16.mxu1 %v11569_v1  ;;  %v11621_v42 = vsel %vm8512_vm3, 4294967295, %v11620_v42  ;;  %v8544_v59 = vld [vmem:[%s11532_s2 + $0x28] sm:$0xff]   ;;  %vm9294_vm6 = vmor %vm1349_vm4, %vm1350_vm5  ;;  %vm11600_vm2 = vsmask.f32 7424 }
  0x1f   : > { %6792 = vmatpush3.bf16.msra.mxu0 %v7982_v2  ;;  %s337_s8 = sadd.s32 %s7905_s13, %s5828_s14  ;;  %11622 = vst [vmem:[#allocation7_spill] sm:$0xff] %v11621_v42  ;;  %s6424_s14 = sshll.u32 %s8306_s25, 5 }
  0x20   : > { %6793 = vmatprep.subr.bf16.mxu0 %v11569_v1  ;;  %s5829_s7 = sshll.u32 %s337_s8, 2 }
  0x21   : > { %s8478_s17 = scalar_lea.vmem %s11530_s0, %s5829_s7  ;;  %7770 = vmatpush3.bf16.msra.mxu1 %v8471_v6  ;;  %s6437_s7 = sadd.s32 8, %s8442_s20 }
  0x22   : > { %v363_v7 = vld [vmem:[%s8478_s17] sm:$0xf]  ;;  %v364_v8 = vld [vmem:[%s8478_s17 + $0x4] sm:$0xf]  ;;  %v367_v14 = vld [vmem:[%s8478_s17 + $0x10] sm:$0xf]  ;;  %7763 = vmatprep.subr.bf16.mxu1 %v11569_v1 }
  0x23   : > { %6794 = vmatpush3.bf16.msra.mxu0 %v7983_v3  ;;  %v431_v10 = vshrl.u32 %v363_v7, 16  ;;  %v434_v11 = vshll.u32 %v363_v7, 16  ;;  %v440_v12 = vshll.u32 %v364_v8, 16  ;;  %v444_v13 = vshrl.u32 %v364_v8, 16  ;;  %v368_v15 = vld [vmem:[%s8478_s17 + $0x14] sm:$0xf] }
  0x24   : > { %6795 = vmatprep.subr.bf16.mxu0 %v11569_v1  ;;  %v365_v17 = vld [vmem:[%s8478_s17 + $0x8] sm:$0xf]  ;;  %v465_v22 = vshrl.u32 %v367_v14, 16  ;;  %v468_v25 = vshll.u32 %v367_v14, 16  ;;  %v474_v26 = vshll.u32 %v368_v15, 16  ;;  %v478_v32 = vshrl.u32 %v368_v15, 16 }
  0x25   : > { %v433_v18 = vrot.slane %v431_v10, 4  ;;  %v436_v19 = vrot.slane %v434_v11, 5  ;;  %v442_v20 = vrot.slane %v440_v12, 5  ;;  %v446_v21 = vrot.slane %v444_v13, 4  ;;  %v369_v27 = vld [vmem:[%s8478_s17 + $0x18] sm:$0xf]  ;;  %7771 = vmatpush3.bf16.msra.mxu1 %v8491_v16 }
  0x26   : > { %v454_v24 = vshrl.u32 %v365_v17, 16  ;;  %v450_v30 = vshll.u32 %v365_v17, 16  ;;  %v467_v31 = vrot.slane %v465_v22, 4  ;;  %v470_v34 = vrot.slane %v468_v25, 5  ;;  %7764 = vmatprep.subr.bf16.mxu1 %v11569_v1  ;;  %v366_v47 = vld [vmem:[%s8478_s17 + $0xc] sm:$0x1] }
  0x27   : > { %6796 = vmatpush3.bf16.msra.mxu0 %v7984_v5  ;;  %v437_v23 = vor.u32 %v436_v19, %v433_v18  ;;  %v447_v29 = vor.u32 %v446_v21, %v442_v20  ;;  %v476_v35 = vrot.slane %v474_v26, 5  ;;  %v480_v36 = vrot.slane %v478_v32, 4  ;;  %v370_v61 = vld [vmem:[%s8478_s17 + $0x1c] sm:$0x1]  ;;  %v8552_v62 = vld [vmem:[%s8478_s17 + $0x20] sm:$0xf] }
  0x28   : > { %6797 = vmatprep.subr.bf16.mxu0 %v11569_v1  ;;  %v484_v37 = vshll.u32 %v369_v27, 16  ;;  %v456_v40 = vrot.slane %v454_v24, 4  ;;  %v471_v41 = vor.u32 %v470_v34, %v467_v31  ;;  %v452_v44 = vrot.slane %v450_v30, 5  ;;  %v372_v2 = vld [vmem:[%s8478_s17 + $0x24] sm:$0xf]  ;;  %v8561_v7 = vld [vmem:[%s11532_s2 + $0x30] sm:$0xff]  }
  0x29   : > { %v438_v39 = vrot.slane %v437_v23, 4  ;;  %v448_v43 = vrot.slane %v447_v29, 4  ;;  %v481_v45 = vor.u32 %v480_v36, %v476_v35  ;;  %7772 = vmatpush3.bf16.msra.mxu1 %v8504_v33  ;;  %v488_v53 = vshrl.u32 %v369_v27, 16  ;;  %v8572_v15 = vld [vmem:[%s8478_s17 + $0x28] sm:$0xf]  ;;  %v8579_v18 = vld [vmem:[%s11532_s2 + $0x38] sm:$0xff]  }
  0x2a   : > { %v472_v48 = vrot.slane %v471_v41, 4  ;;  %7765 = vmatprep.subr.bf16.mxu1 %v11569_v1  ;;  %v486_v50 = vrot.slane %v484_v37, 5  ;;  %v457_v52 = vor.u32 %v456_v40, %v452_v44  ;;  %v460_v56 = vshll.u32 %v366_v47, 16  ;;  %v375_v17 = vld [vmem:[%s8478_s17 + $0x30] sm:$0xf]  ;;  %p8601_p0 = scmp.lt.s32.totalorder %s6437_s7, 19 }
  0x2b   : > { %6798 = vmatpush3.bf16.msra.mxu0 %v7985_v9  ;;  %v482_v49 = vrot.slane %v481_v45, 4  ;;  %v443_v51 = vsel %vm8512_vm3, %v438_v39, %v442_v20  ;;  %v453_v55 = vsel %vm8512_vm3, %v448_v43, %v452_v44  ;;  %v490_v0 = vrot.slane %v488_v53, 4  ;;  %v377_v30 = vld [vmem:[%s8478_s17 + $0x38] sm:$0xf]  ;;  %v374_v32 = vld [vmem:[%s8478_s17 + $0x2c] sm:$0x1] }
  0x2c   : > { %6799 = vmatprep.subr.bf16.mxu0 %v11569_v1  ;;  %v8534_v57 = vsel %vm8512_vm3, %v472_v48, %v476_v35  ;;  %v5850_v63 = vcombine.low %v443_v51, %v453_v55  ;;  %v458_v3 = vrot.slane %v457_v52, 4  ;;  %v462_v5 = vrot.slane %v460_v56, 5  ;;  %v8597_v34 = vld [vmem:[%s8478_s17 + $0x34] sm:$0xf]  ;;  %v379_v39 = vld [vmem:[%s8478_s17 + $0x40] sm:$0xf] }
  0x2d   : > { %v8538_v58 = vsel %vm8512_vm3, %v482_v49, %v486_v50  ;;  %7773 = vmatpush3.bf16.msra.mxu1 %v8519_v46  ;;  %v494_v8 = vshll.u32 %v370_v61, 16  ;;  %v499_v9 = vshrl.u32 %v8552_v62, 16  ;;  %v502_v10 = vshll.u32 %v8552_v62, 16  ;;  %v378_v49 = vld [vmem:[%s8478_s17 + $0x3c] sm:$0x1]  ;;  %s11954_s7 = smov (!%p8601_p0, %s6437_s7), 19 }
  0x2e   : > { %7766 = vmatprep.subr.bf16.mxu1 %v11569_v1  ;;  %v508_v11 = vshll.u32 %v372_v2, 16  ;;  %v491_v12 = vor.u32 %v490_v0, %v486_v50  ;;  %v512_v13 = vshrl.u32 %v372_v2, 16  ;;  %v463_v14 = vsel %vm8512_vm3, %v458_v3, %v462_v5  ;;  %v380_v55 = vld [vmem:[%s8478_s17 + $0x44] sm:$0xf]  ;;  %v381_v56 = vld [vmem:[%s8478_s17 + $0x48] sm:$0xf] }
  0x2f   : > { %6800 = vmatpush3.bf16.msra.mxu0 %v7986_v28  ;;  %v501_v19 = vrot.slane %v499_v9, 4  ;;  %v504_v20 = vrot.slane %v502_v10, 5  ;;  %v5851_v22 = vcombine.low %v463_v14, %v8534_v57  ;;  %v522_v25 = vshrl.u32 %v8572_v15, 16  ;;  %v382_v10 = vld [vmem:[%s8478_s17 + $0x4c] sm:$0x1]  ;;  %s5832_s19 = sshll.u32 %s11954_s7, 2 }
  0x30   : > { %6801 = vmatprep.subr.bf16.mxu0 %v11569_v1  ;;  %v510_v21 = vrot.slane %v508_v11, 5  ;;  %v492_v23 = vrot.slane %v491_v12, 4  ;;  %v514_v24 = vrot.slane %v512_v13, 4  ;;  %v533_v26 = vshrl.u32 %v375_v17, 16  ;;  %v383_v11 = vld [vmem:[%s8478_s17 + $0x50] sm:$0xf]  ;;  %s8645_s30 = sadd.s32 %s7905_s13, %s5832_s19 }
  0x31   : > { %7774 = vmatpush3.bf16.msra.mxu1 %v8544_v59  ;;  %v536_v27 = vshll.u32 %v375_v17, 16  ;;  %v505_v28 = vor.u32 %v504_v20, %v501_v19  ;;  %v518_v29 = vshll.u32 %v8572_v15, 16  ;;  %v524_v35 = vrot.slane %v522_v25, 4  ;;  %s5833_s29 = sshll.u32 %s8645_s30, 2  ;;  %s8322_s13 = smov [#allocation2]  }
  0x32   : > { %7767 = vmatprep.subr.bf16.mxu1 %v11569_v1  ;;  %v515_v31 = vor.u32 %v514_v24, %v510_v21  ;;  %v535_v36 = vrot.slane %v533_v26, 4  ;;  %v552_v40 = vshll.u32 %v377_v30, 16  ;;  %v556_v41 = vshrl.u32 %v377_v30, 16  ;;  %v385_v24 = vld [vmem:[%s8478_s17 + $0x58] sm:$0xf]  ;;  %s8709_s12 = scalar_lea.vmem %s11531_s1, %s5833_s29  ;;  %s322_s29 = sand.u32 1, %s8294_s22  }
  0x33   : > { %6802 = vmatpush3.bf16.msra.mxu0 %v7987_v38  ;;  %v538_v37 = vrot.slane %v536_v27, 5  ;;  %v546_v38 = vshrl.u32 %v8597_v34, 16  ;;  %v506_v43 = vrot.slane %v505_v28, 4  ;;  %v520_v44 = vrot.slane %v518_v29, 5  ;;  %v8653_v26 = vld [vmem:[%s8478_s17 + $0x54] sm:$0xf] }
  0x34   : > { %6803 = vmatprep.subr.bf16.mxu0 %v11569_v1  ;;  %v528_v45 = vshll.u32 %v374_v32, 16  ;;  %v542_v47 = vshll.u32 %v8597_v34, 16  ;;  %v516_v48 = vrot.slane %v515_v31, 4  ;;  %v567_v50 = vshrl.u32 %v379_v39, 16  ;;  %v8661_v32 = vld [vmem:[%s8478_s17 + $0x60] sm:$0xf] }
  0x35   : > { %7775 = vmatpush3.bf16.msra.mxu1 %v8561_v7  ;;  %v570_v51 = vshll.u32 %v379_v39, 16  ;;  %v525_v52 = vor.u32 %v524_v35, %v520_v44  ;;  %v539_v53 = vor.u32 %v538_v37, %v535_v36  ;;  %v8624_v61 = vrot.slane %v552_v40, 5  ;;  %v388_v35 = vld [vmem:[%s8478_s17 + $0x64] sm:$0xf]  ;;  %v8679_v39 = vld [vmem:[%s8478_s17 + $0x74] sm:$0xf] }
  0x36   : > { %7768 = vmatprep.subr.bf16.mxu1 %v11569_v1  ;;  %v8629_v0 = vsel %vm8512_vm3, %v506_v43, %v510_v21  ;;  %v530_v2 = vrot.slane %v528_v45, 5  ;;  %v544_v3 = vrot.slane %v542_v47, 5  ;;  %v8633_v5 = vsel %vm8512_vm3, %v516_v48, %v520_v44  ;;  %v8682_v40 = vld [vmem:[%s8478_s17 + $0x78] sm:$0xf]  ;;  %v391_v47 = vld [vmem:[%s8478_s17 + $0x70] sm:$0xf] }
  0x37   : > { %6804 = vmatpush3.bf16.msra.mxu0 %v7988_v54  ;;  %v548_v54 = vrot.slane %v546_v38, 4  ;;  %v572_v9 = vrot.slane %v570_v51, 5  ;;  %v526_v12 = vrot.slane %v525_v52, 4  ;;  %v540_v13 = vrot.slane %v539_v53, 4  ;;  %s11478_s19 = scalar_lea.sflag [#allocation3], %s322_s29  ;;  %s8228_s9 = sshll.u32 %s8322_s13, 4  ;;  %s8229_s9 = int_to_ptr.vmem [resolvable:$false] %s8228_s9 }
  0x38   : > { %6865 = vmatprep.subr.bf16.mxu0 %v11569_v1  ;;  %v576_v17 = vshll.u32 %v380_v55, 16  ;;  %v580_v19 = vshrl.u32 %v380_v55, 16  ;;  %v586_v20 = vshll.u32 %v381_v56, 16  ;;  %v590_v21 = vshrl.u32 %v381_v56, 16 }
  0x39   : > { %7776 = vmatpush3.bf16.msra.mxu1 %v8579_v18  ;;  %v549_v14 = vor.u32 %v548_v54, %v544_v3  ;;  %v596_v27 = vshll.u32 %v382_v10, 16  ;;  %v601_v28 = vshrl.u32 %v383_v11, 16  ;;  %v8668_v36 = vsel %vm8512_vm3, %v526_v12, %v530_v2  ;;  %v8727_v12 = vld [vmem:[%s8709_s12] sm:$0xf] }
  0x3a   : > { %6806 = vmatmul.mubr.bf16.vlgmr.msra.gmra.mrb[0].mxu0 %v5850_v63  ;;  %7017 = vmatprep.subr.bf16.mxu1 %v11569_v1  ;;  %v558_v63 = vrot.slane %v556_v41, 4  ;;  %v8656_v30 = vrot.slane %v576_v17, 5  ;;  %v8658_v31 = vrot.slane %v580_v19, 4  ;;  %v8674_v37 = vrot.slane %v586_v20, 5 }
  0x3b   : > { %6866 = vmatpush3.bf16.msra.mxu0 %v8461_v4  ;;  %6809 = vmatprep.mubr.msk.bf16.mxu0 %vm8321_vm0, %v11569_v1  ;;  %v496_v4 = vrot.slane %v494_v8, 5  ;;  %v569_v8 = vrot.slane %v567_v50, 4  ;;  %v8676_v38 = vrot.slane %v590_v21, 4  ;;  %v604_v43 = vshll.u32 %v383_v11, 16 }
  0x3c   : > { %6867 = vmatprep.subr.bf16.mxu0 %v11569_v1  ;;  %v614_v44 = vshrl.u32 %v8653_v26, 16  ;;  %v620_v45 = vshll.u32 %v385_v24, 16  ;;  %v603_v48 = vrot.slane %v601_v28, 4  ;;  %v610_v51 = vshll.u32 %v8653_v26, 16 }
  0x3d   : > { %v624_v52 = vshrl.u32 %v385_v24, 16  ;;  %v8704_v53 = vcombine.low %v8679_v39, %v8682_v40  ;;  %v638_v54 = vshll.u32 %v8661_v32, 16  ;;  %v644_v55 = vshll.u32 %v388_v35, 16  ;;  %v390_v24 = vld [vmem:[%s8478_s17 + $0x6c] sm:$0x1] }
  0x3e   : > { %v648_v56 = vshrl.u32 %v388_v35, 16  ;;  %v616_v2 = vrot.slane %v614_v44, 4  ;;  %v669_v10 = vshrl.u32 %v391_v47, 16  ;;  %v672_v11 = vshll.u32 %v391_v47, 16 }
  0x3f   : > { %6868 = vmatpush3.bf16.msra.mxu0 %v8471_v6  ;;  %v8593_v6 = vsel %vm8512_vm3, %v492_v23, %v496_v4  ;;  %v559_v4 = vor.u32 %v558_v63, %v8624_v61  ;;  %v573_v23 = vor.u32 %v572_v9, %v569_v8  ;;  %11624 = vst [vmem:[#allocation8_spill] sm:$0xff] %v8704_v53  ;;  %v606_v63 = vrot.slane %v604_v43, 5  ;;  %v386_v9 = vld [vmem:[%s8478_s17 + $0x5c] sm:$0x1] }
  0x40   : > { %6869 = vmatprep.subr.bf16.mxu0 %v11569_v1  ;;  %6926 = vmatmul.mubr.bf16.vlgmr.msra.gmra.mrb[0].mxu1 %v8704_v53  ;;  %v626_v17 = vrot.slane %v624_v52, 4  ;;  %v640_v20 = vrot.slane %v638_v54, 5  ;;  %v8741_v21 = vrot.slane %v644_v55, 5  ;;  %v593_v28 = vor.u32 %v8676_v38, %v8674_v37  ;;  %v402_v53 = vld [vmem:[%s8709_s12 + $0x1c] sm:$0x1] }
  0x41   : > { %v560_v29 = vrot.slane %v559_v4, 4  ;;  %v8685_v41 = vrot.slane %v573_v23, 4  ;;  %6929 = vmatprep.mubr.msk.bf16.mxu1 %vm8321_vm0, %v11569_v1  ;;  %v650_v23 = vrot.slane %v648_v56, 4  ;;  %v674_v35 = vrot.slane %v672_v11, 5  ;;  %v394_v56 = vld [vmem:[%s8478_s17 + $0x7c] sm:$0x1] }
  0x42   : > { %6810 = vmatmul.mubr.bf16.gmra.mrb[4].mxu0 %v5851_v22  ;;  %v8649_v22 = vcombine.low %v8629_v0, %v8633_v5  ;;  %v630_v44 = vshll.u32 %v386_v9, 16  ;;  %v678_v47 = vshll.u32 %v8679_v39, 16  ;;  %v664_v55 = vshll.u32 %v390_v24, 16 }
  0x43   : > { %6813 = vmatprep.mubr.msk.bf16.mxu0 %vm8321_vm0, %v11569_v1  ;;  %6870 = vmatpush3.bf16.msra.mxu0 %v8491_v16  ;;  %v5852_v16 = vcombine.low %v8538_v58, %v8593_v6  ;;  %v651_v54 = vor.u32 %v650_v23, %v8741_v21 }
  0x44   : > { %6871 = vmatprep.subr.bf16.mxu0 %v11569_v1  ;;  %v632_v11 = vrot.slane %v630_v44, 5  ;;  %v698_v44 = vshll.u32 %v394_v56, 16  ;;  %v8015_v56 = vld [vmem:[%s11532_s2 + $0xc0] sm:$0xff]  }
  0x45   : > { %v8783_v24 = vrot.slane %v651_v54, 4  ;;  %v706_v54 = vshll.u32 %v8727_v12, 16  ;;  %7018 = vmatpush3.bf16.msra.mxu1 %v8015_v56 }
  0x46   : > { %7019 = vmatprep.subr.bf16.mxu1 %v11569_v1 }
  0x47   : > { %6872 = vmatpush3.bf16.msra.mxu0 %v8504_v33  ;;  %v562_v33 = vshll.u32 %v378_v49, 16  ;;  %v8694_v49 = vld [vmem:[%s8478_s17 + $0x68] sm:$0xf] }
  0x48   : > { %6873 = vmatprep.subr.bf16.mxu0 %v11569_v1  ;;  %v654_v4 = vshll.u32 %v8694_v49, 16 }
  0x49   : > { %v564_v25 = vrot.slane %v562_v33, 5  ;;  %v658_v33 = vshrl.u32 %v8694_v49, 16 }
  0x4a   : > { %6814 = vmatmul.mubr.bf16.gmra.mrb[8].mxu0 %v5852_v16  ;;  %v8691_v16 = vrot.slane %v596_v27, 5 }
  0x4b   : > { %6817 = vmatprep.mubr.msk.bf16.mxu0 %vm8321_vm0, %v11569_v1  ;;  %6874 = vmatpush3.bf16.msra.mxu0 %v8519_v46  ;;  %v550_v46 = vrot.slane %v549_v14, 4  ;;  %v8735_v14 = vsel %vm8512_vm3, %v560_v29, %v564_v25  ;;  %v682_v25 = vshrl.u32 %v8679_v39, 16  ;;  %v607_v29 = vor.u32 %v606_v63, %v603_v48 }
  0x4c   : > { %6875 = vmatprep.subr.bf16.mxu0 %v11569_v1  ;;  %v594_v39 = vrot.slane %v593_v28, 4 }
  0x4d   : > { %v8721_v8 = vsel %vm8512_vm3, %v550_v46, %v8624_v61  ;;  %v583_v61 = vor.u32 %v8658_v31, %v8656_v30  ;;  %v660_v46 = vrot.slane %v658_v33, 4  ;;  %v671_v31 = vrot.slane %v669_v10, 4  ;;  %v8775_v10 = vld [vmem:[%s8709_s12 + $0x10] sm:$0xf] }
  0x4e   : > { %v8764_v38 = vcombine.low %v8721_v8, %v8735_v14  ;;  %v684_v63 = vrot.slane %v682_v25, 4  ;;  %v608_v33 = vrot.slane %v607_v29, 4  ;;  %v8788_v25 = vrot.slane %v664_v55, 5 }
  0x4f   : > { %6876 = vmatpush3.bf16.msra.mxu0 %v8544_v59  ;;  %v8672_v59 = vsel %vm8512_vm3, %v540_v13, %v544_v3  ;;  %v8714_v3 = vrot.slane %v620_v45, 5  ;;  %v8730_v13 = vld [vmem:[%s8709_s12 + $0x4] sm:$0xf]  ;;  %v584_v43 = vrot.slane %v583_v61, 4  ;;  %v8756_v45 = vrot.slane %v654_v4, 5 }
  0x50   : > { %6877 = vmatprep.subr.bf16.mxu0 %v11569_v1  ;;  %v8699_v50 = vcombine.low %v8668_v36, %v8672_v59  ;;  %v8750_v27 = vcombine.low %v8727_v12, %v8730_v13  ;;  %v675_v9 = vor.u32 %v674_v35, %v671_v31  ;;  %v8777_v61 = vrot.slane %v678_v47, 5 }
  0x51   : > { %v627_v52 = vor.u32 %v626_v17, %v8714_v3  ;;  %v661_v48 = vor.u32 %v660_v46, %v8756_v45  ;;  %v688_v17 = vshll.u32 %v8682_v40, 16  ;;  %v692_v4 = vshrl.u32 %v8682_v40, 16 }
  0x52   : > { %6818 = vmatmul.mubr.bf16.gmra.mrb[12].mxu0 %v8649_v22  ;;  %11625 = vst [vmem:[#allocation9_spill] sm:$0xff] %v8750_v27  ;;  %6930 = vmatmul.mubr.bf16.gmra.mrb[4].mxu1 %v8750_v27  ;;  %v685_v28 = vor.u32 %v684_v63, %v8777_v61  ;;  %v8801_v40 = vsel %vm8512_vm3, %v8685_v41, %v8656_v30  ;;  %v8808_v35 = vrot.slane %v675_v9, 4  ;;  %v703_v30 = vshrl.u32 %v8727_v12, 16  ;;  %v8821_v41 = vld [vmem:[%s8709_s12 + $0x14] sm:$0xf] }
  0x53   : > { %6821 = vmatprep.mubr.msk.bf16.mxu0 %vm8321_vm0, %v11569_v1  ;;  %6878 = vmatpush3.bf16.msra.mxu0 %v8561_v7  ;;  %v635_v7 = vshrl.u32 %v8661_v32, 16  ;;  %v8786_v46 = vrot.slane %v661_v48, 4  ;;  %v8806_v31 = vsel %vm8512_vm3, %v584_v43, %v8674_v37  ;;  %v8810_v47 = vrot.slane %v688_v17, 5  ;;  %v8826_v37 = vld [vmem:[%s8709_s12 + $0x18] sm:$0xf] }
  0x54   : > { %6879 = vmatprep.subr.bf16.mxu0 %v11569_v1  ;;  %6933 = vmatprep.mubr.msk.bf16.mxu1 %vm8321_vm0, %v11569_v1  ;;  %v8829_v43 = vrot.slane %v698_v44, 5  ;;  %v712_v48 = vshll.u32 %v8730_v13, 16  ;;  %v8835_v55 = vcombine.low %v8821_v41, %v8826_v37  ;;  %v8845_v63 = vsel %vm8512_vm3, %v594_v39, %v8691_v16  ;;  %v8019_v44 = vld [vmem:[%s11532_s2 + $0xd0] sm:$0xff]  }
  0x55   : > { %v637_v19 = vrot.slane %v635_v7, 4  ;;  %v705_v17 = vrot.slane %v703_v30, 4  ;;  %v760_v27 = vshrl.u32 %v8826_v37, 16 }
  0x56   : > { %11627 = vst [vmem:[#allocation11_spill] sm:$0xff] %v8835_v55  ;;  %v8866_v39 = vrot.slane %v712_v48, 5  ;;  %v8020_v48 = vld [vmem:[%s11532_s2 + $0xd8] sm:$0xff]  }
  0x57   : > { %6880 = vmatpush3.bf16.msra.mxu0 %v8579_v18  ;;  %v8745_v18 = vrot.slane %v610_v51, 5  ;;  %v641_v7 = vor.u32 %v640_v20, %v637_v19  ;;  %v628_v20 = vrot.slane %v627_v52, 4  ;;  %v8814_v52 = vcombine.low %v8801_v40, %v8806_v31 }
  0x58   : > { %6941 = vmatprep.subr.bf16.mxu0 %v11569_v1 }
  0x59   : > { %v617_v51 = vor.u32 %v616_v2, %v8745_v18  ;;  %v8770_v2 = vld [vmem:[%s8709_s12 + $0x8] sm:$0xf]  ;;  %v8781_v23 = vrot.slane %v641_v7, 4  ;;  %v8816_v7 = vrot.slane %v685_v28, 4  ;;  %v8850_v9 = vsel %vm8512_vm3, %v608_v33, %v8745_v18 }
  0x5a   : > { %6822 = vmatmul.mubr.bf16.gmra.mrb[16].mxu0 %v8699_v50  ;;  %v8793_v29 = vcombine.low %v8770_v2, %v8775_v10  ;;  %v8858_v28 = vcombine.low %v8845_v63, %v8850_v9  ;;  %v708_v18 = vrot.slane %v706_v54, 5  ;;  %v716_v33 = vshrl.u32 %v8730_v13, 16 }
  0x5b   : > { %6825 = vmatprep.mubr.msk.bf16.mxu0 %vm8321_vm0, %v11569_v1  ;;  %v618_v19 = vrot.slane %v617_v51, 4  ;;  %v694_v51 = vrot.slane %v692_v4, 4  ;;  %v8016_v4 = vld [vmem:[%s11532_s2 + $0xc8] sm:$0xff]   ;;  %v8881_v30 = vsel %vm8512_vm3, %v628_v20, %v632_v11  ;;  %v722_v11 = vshll.u32 %v8770_v2, 16  ;;  %v8022_v20 = vld [vmem:[%s11532_s2 + $0xe0] sm:$0xff]  }
  0x5c   : > { %11626 = vst [vmem:[#allocation10_spill] sm:$0xff] %v8793_v29  ;;  %6934 = vmatmul.mubr.bf16.gmra.mrb[8].mxu1 %v8793_v29  ;;  %11628 = vst [vmem:[#allocation12_spill] sm:$0xff] %v8881_v30  ;;  %v756_v29 = vshll.u32 %v8826_v37, 16 }
  0x5d   : > { %6937 = vmatprep.mubr.msk.bf16.mxu1 %vm8321_vm0, %v11569_v1  ;;  %v695_v16 = vor.u32 %v694_v51, %v8810_v47  ;;  %7020 = vmatpush3.bf16.msra.mxu1 %v8016_v4  ;;  %v8877_v51 = vsel %vm8512_vm3, %v618_v19, %v8714_v3  ;;  %v398_v4 = vld [vmem:[%s8709_s12 + $0xc] sm:$0x1]  ;;  %v718_v3 = vrot.slane %v716_v33, 4  ;;  %v726_v19 = vshrl.u32 %v8770_v2, 16 }
  0x5e   : > { %7021 = vmatprep.subr.bf16.mxu1 %v11569_v1  ;;  %v8889_v56 = vcombine.low %v8877_v51, %v8881_v30  ;;  %v8911_v33 = vsel %vm8512_vm3, %v8783_v24, %v8756_v45  ;;  %v8928_v45 = vsel %vm8512_vm3, %v8786_v46, %v8788_v25  ;;  %v8934_v24 = vsel %vm8512_vm3, %v8808_v35, %v8777_v61  ;;  %v8027_v61 = vld [vmem:[%s11532_s2 + $0xf8] sm:$0xff]   ;;  %v8182_v30 = vld [vmem:[%s8478_s17 + $0xc] sm:$0x1] }
  0x5f   : > { %v696_v54 = vrot.slane %v695_v16, 4  ;;  %v8905_v16 = vsel %vm8512_vm3, %v8781_v23, %v8741_v21  ;;  %11630 = vst [vmem:[#allocation14_spill] sm:$0xff] %v8911_v33  ;;  %v709_v21 = vor.u32 %v708_v18, %v705_v17  ;;  %v719_v23 = vor.u32 %v718_v3, %v8866_v39  ;;  %11631 = vst [vmem:[#allocation15_spill] sm:$0xff] %v8928_v45  ;;  %v8026_v18 = vld [vmem:[%s11532_s2 + $0xf0] sm:$0xff]  }
  0x60   : > { %11629 = vst [vmem:[#allocation13_spill] sm:$0xff] %v8905_v16  ;;  %v8919_v60 = vcombine.low %v8905_v16, %v8911_v33  ;;  %11632 = vst [vmem:[#allocation16_spill] sm:$0xff] %v8934_v24  ;;  %v737_v17 = vshrl.u32 %v8775_v10, 16  ;;  %v724_v3 = vrot.slane %v722_v11, 5  ;;  %v728_v46 = vrot.slane %v726_v19, 4 }
  0x61   : > { %7022 = vmatpush3.bf16.msra.mxu1 %v8019_v44  ;;  %v732_v44 = vshll.u32 %v398_v4, 16  ;;  %v710_v4 = vrot.slane %v709_v21, 4  ;;  %v740_v25 = vshll.u32 %v8775_v10, 16  ;;  %v720_v35 = vrot.slane %v719_v23, 4 }
  0x62   : > { %6826 = vmatmul.mubr.bf16.gmra.mrb[20].mxu0 %v8764_v38  ;;  %7023 = vmatprep.subr.bf16.mxu1 %v11569_v1  ;;  %v8950_v21 = vcombine.low %v8928_v45, %v8934_v24  ;;  %v739_v11 = vrot.slane %v737_v17, 4  ;;  %v8973_v17 = vsel %vm8512_vm3, %v696_v54, %v8829_v43  ;;  %v8987_v43 = vld [vmem:[%s8478_s17 + $0x18] sm:$0xf] }
  0x63   : > { %6829 = vmatprep.mubr.msk.bf16.mxu0 %vm8321_vm0, %v11569_v1  ;;  %v742_v19 = vrot.slane %v740_v25, 5  ;;  %11635 = vst [vmem:[#allocation19_spill] sm:$0xff] %v8973_v17  ;;  %v5962_v54 = vcombine.low %v8987_v43, %v8552_v62  ;;  %v766_v62 = vshll.u32 %v402_v53, 16 }
  0x64   : > { %6938 = vmatmul.mubr.bf16.gmra.mrb[12].mxu1 %v8835_v55  ;;  %11633 = vst [vmem:[#allocation17_spill] sm:$0xff] %v8950_v21  ;;  %v750_v55 = vshrl.u32 %v8821_v41, 16 }
  0x65   : > { %7033 = vmatprep.mubr.msk.bf16.mxu1 %vm8321_vm0, %v11569_v1  ;;  %7024 = vmatpush3.bf16.msra.mxu1 %v8020_v48  ;;  %v8024_v48 = vld [vmem:[%s11532_s2 + $0xe8] sm:$0xff]   ;;  %v743_v24 = vor.u32 %v742_v19, %v739_v11 }
  0x66   : > { %7025 = vmatprep.subr.bf16.mxu1 %v11569_v1  ;;  %v752_v19 = vrot.slane %v750_v55, 4 }
  0x69   : > { %7026 = vmatpush3.bf16.msra.mxu1 %v8022_v20  ;;  %v734_v20 = vrot.slane %v732_v44, 5  ;;  %v8955_v44 = vld [vmem:[%s8478_s17 + $0x10] sm:$0xf] }
  0x6a   : > { %6830 = vmatmul.mubr.bf16.gmra.mrb[24].mxu0 %v8814_v52  ;;  %7027 = vmatprep.subr.bf16.mxu1 %v11569_v1 }
  0x6b   : > { %6833 = vmatprep.mubr.msk.bf16.mxu0 %vm8321_vm0, %v11569_v1 }
  0x6d   : > { %7028 = vmatpush3.bf16.msra.mxu1 %v8024_v48  ;;  %v746_v48 = vshll.u32 %v8821_v41, 16 }
  0x6e   : > { %7029 = vmatprep.subr.bf16.mxu1 %v11569_v1 }
  0x6f   : > { %v748_v25 = vrot.slane %v746_v48, 5  ;;  %v8996_v48 = vsel %vm8512_vm3, %v710_v4, %v8866_v39 }
  0x70   : > { %11637 = vst [vmem:[#allocation21_spill] sm:$0xff] %v8996_v48 }
  0x71   : > { %7030 = vmatpush3.bf16.msra.mxu1 %v8026_v18  ;;  %v8958_v18 = vld [vmem:[%s8478_s17 + $0x14] sm:$0xf]  ;;  %v753_v39 = vor.u32 %v752_v19, %v748_v25  ;;  %v8002_v19 = vld [vmem:[%s11532_s2 + $0x80] sm:$0xff]  }
  0x72   : > { %6834 = vmatmul.mubr.bf16.gmra.mrb[28].mxu0 %v8858_v28  ;;  %7031 = vmatprep.subr.bf16.mxu1 %v11569_v1  ;;  %v5961_v23 = vcombine.low %v8955_v44, %v8958_v18 }
  0x73   : > { %6837 = vmatprep.mubr.msk.bf16.mxu0 %vm8321_vm0, %v11569_v1 }
  0x75   : > { %7032 = vmatpush3.bf16.msra.mxu1 %v8027_v61  ;;  %v8968_v61 = vsel %vm8512_vm3, %v8816_v7, %v8810_v47  ;;  %v729_v7 = vor.u32 %v728_v46, %v724_v3  ;;  %v9000_v46 = vsel %vm8512_vm3, %v720_v35, %v724_v3  ;;  %v9010_v3 = vld [vmem:[%s8478_s17 + $0x24] sm:$0xf]  ;;  %v768_v35 = vrot.slane %v766_v62, 5 }
  0x76   : > { %7169 = vmatprep.subr.bf16.mxu1 %v11569_v1  ;;  %11634 = vst [vmem:[#allocation18_spill] sm:$0xff] %v8968_v61  ;;  %v8982_v47 = vcombine.low %v8968_v61, %v8973_v17  ;;  %11638 = vst [vmem:[#allocation22_spill] sm:$0xff] %v9000_v46  ;;  %v758_v17 = vrot.slane %v756_v29, 5  ;;  %v762_v61 = vrot.slane %v760_v27, 4  ;;  %v9006_v33 = vcombine.low %v8996_v48, %v9000_v46  ;;  %v9072_v62 = vld [vmem:[%s8478_s17 + $0x4] sm:$0xf] }
  0x77   : > { %v730_v11 = vrot.slane %v729_v7, 4  ;;  %v5963_v55 = vcombine.low %v9010_v3, %v8572_v15  ;;  %v754_v29 = vrot.slane %v753_v39, 4  ;;  %v8057_v46 = vld [vmem:[%s11532_s2 + $0x170] sm:$0xff]  }
  0x78   : > { %7034 = vmatmul.mubr.bf16.vlgmr.msra.gmra.mrb[16].mxu1 %v5961_v23  ;;  %11636 = vst [vmem:[#allocation20_spill] sm:$0xff] %v8982_v47  ;;  %v744_v23 = vrot.slane %v743_v24, 4  ;;  %11639 = vst [vmem:[#allocation23_spill] sm:$0xff] %v9006_v33  ;;  %v763_v4 = vor.u32 %v762_v61, %v758_v17 }
  0x79   : > { %7037 = vmatprep.mubr.msk.bf16.mxu1 %vm8321_vm0, %v11569_v1  ;;  %v9018_v53 = vsel %vm8512_vm3, %v730_v11, %v734_v20  ;;  %v9032_v20 = vld [vmem:[%s8478_s17 + $0x30] sm:$0xf] }
  0x7a   : > { %6838 = vmatmul.mubr.bf16.gmra.mrb[32].mxu0 %v8889_v56  ;;  %11640 = vst [vmem:[#allocation24_spill] sm:$0xff] %v9018_v53  ;;  %v9022_v27 = vsel %vm8512_vm3, %v744_v23, %v748_v25  ;;  %v764_v24 = vrot.slane %v763_v4, 4  ;;  %v5964_v61 = vcombine.low %v9032_v20, %v8597_v34  ;;  %v9040_v25 = vsel %vm8512_vm3, %v754_v29, %v758_v17  ;;  %v9057_v17 = vld [vmem:[%s8478_s17 + $0x40] sm:$0xf]  ;;  %v9077_v4 = vld [vmem:[%s8478_s17 + $0x44] sm:$0xf] }
  0x7b   : > { %6841 = vmatprep.mubr.msk.bf16.mxu0 %vm8321_vm0, %v11569_v1  ;;  %11641 = vst [vmem:[#allocation25_spill] sm:$0xff] %v9022_v27  ;;  %v9028_v15 = vcombine.low %v9018_v53, %v9022_v27  ;;  %11643 = vst [vmem:[#allocation27_spill] sm:$0xff] %v9040_v25  ;;  %v9069_v23 = vld [vmem:[%s8478_s17] sm:$0xf]  ;;  %v9180_v27 = vld [vmem:[%s8478_s17 + $0x34] sm:$0xf] }
  0x7c   : > { %v9044_v7 = vsel %vm8512_vm3, %v764_v24, %v768_v35  ;;  %v5873_v39 = vcombine.low %v9069_v23, %v9072_v62  ;;  %v8004_v24 = vld [vmem:[%s11532_s2 + $0x88] sm:$0xff]  }
  0x7d   : > { %11642 = vst [vmem:[#allocation26_spill] sm:$0xff] %v9028_v15  ;;  %11644 = vst [vmem:[#allocation28_spill] sm:$0xff] %v9044_v7  ;;  %v9050_v34 = vcombine.low %v9040_v25, %v9044_v7  ;;  %v9093_v35 = vld [vmem:[%s8478_s17 + $0x8] sm:$0xf]  ;;  %v9171_v7 = vld [vmem:[%s8478_s17 + $0x70] sm:$0xf] }
  0x7e   : > { %v9287_v53 = vld [vmem:[%s8478_s17 + $0x68] sm:$0xf] }
  0x7f   : > { %11645 = vst [vmem:[#allocation29_spill] sm:$0xff] %v9050_v34 }
  0x80   : > { %7038 = vmatmul.mubr.bf16.gmra.mrb[20].mxu1 %v5962_v54  ;;  %v9054_v54 = vld [vmem:[%s8478_s17 + $0x38] sm:$0xf] }
  0x81   : > { %7041 = vmatprep.mubr.msk.bf16.mxu1 %vm8321_vm0, %v11569_v1  ;;  %v5965_v11 = vcombine.low %v9054_v54, %v9057_v17 }
  0x82   : > { %6842 = vmatmul.mubr.bf16.gmra.mrb[36].mxu0 %v8919_v60 }
  0x83   : > { %6845 = vmatprep.mubr.msk.bf16.mxu0 %vm8321_vm0, %v11569_v1 }
  0x88   : > { %7042 = vmatmul.mubr.bf16.gmra.mrb[24].mxu1 %v5963_v55  ;;  %v9080_v55 = vld [vmem:[%s8478_s17 + $0x48] sm:$0xf] }
  0x89   : > { %7045 = vmatprep.mubr.msk.bf16.mxu1 %vm8321_vm0, %v11569_v1  ;;  %v5966_v29 = vcombine.low %v9077_v4, %v9080_v55 }
  0x8a   : > { %6846 = vmatmul.mubr.bf16.gmra.mrb[40].mxu0 %v8950_v21 }
  0x8b   : > { %6849 = vmatprep.mubr.msk.bf16.mxu0 %vm8321_vm0, %v11569_v1 }
  0x90   : > { %7046 = vmatmul.mubr.bf16.gmra.mrb[28].mxu1 %v5964_v61  ;;  %v5874_v61 = vcombine.low %v9093_v35, %v8955_v44 }
  0x91   : > { %7049 = vmatprep.mubr.msk.bf16.mxu1 %vm8321_vm0, %v11569_v1 }
  0x92   : > { %6850 = vmatmul.mubr.bf16.gmra.mrb[44].mxu0 %v8982_v47 }
  0x93   : > { %6853 = vmatprep.mubr.msk.bf16.mxu0 %vm8321_vm0, %v11569_v1 }
  0x98   : > { %7050 = vmatmul.mubr.bf16.gmra.mrb[32].mxu1 %v5965_v11  ;;  %v8006_v11 = vld [vmem:[%s11532_s2 + $0x90] sm:$0xff]  }
  0x99   : > { %7053 = vmatprep.mubr.msk.bf16.mxu1 %vm8321_vm0, %v11569_v1 }
  0x9a   : > { %6854 = vmatmul.mubr.bf16.gmra.mrb[48].mxu0 %v9006_v33 }
  0x9b   : > { %6857 = vmatprep.mubr.msk.bf16.mxu0 %vm8321_vm0, %v11569_v1 }
  0xa0   : > { %7054 = vmatmul.mubr.bf16.gmra.mrb[36].mxu1 %v5966_v29  ;;  %v8009_v29 = vld [vmem:[%s11532_s2 + $0x98] sm:$0xff]  }
  0xa1   : > { %7057 = vmatprep.mubr.msk.bf16.mxu1 %vm8321_vm0, %v11569_v1 }
  0xa2   : > { %6858 = vmatmul.mubr.bf16.gmra.mrb[52].mxu0 %v9028_v15  ;;  %v8058_v15 = vld [vmem:[%s11532_s2 + $0x178] sm:$0xff]  }
  0xa3   : > { %6861 = vmatprep.mubr.msk.bf16.mxu0 %vm8321_vm0, %v11569_v1 }
  0xaa   : > { %6862 = vmatmul.mubr.bf16.gmra.mrb[56].mxu0 %v9050_v34  ;;  %v9291_v34 = vcombine.low %v9287_v53, %v9171_v7 }
  0xab   : > { %6881 = vmatprep.mubr.msk.bf16.mxu0 %vm8321_vm0, %v11569_v1 }
  0xac   : > { %11653 = vst [vmem:[#allocation37_spill] sm:$0xff] %v9291_v34 }
  0xb2   : > { %6882 = vmatmul.mubr.bf16.vlgmr.msra.gmra.mrb[60].mxu0 %v5873_v39 }
  0xb3   : > { %6942 = vmatpush3.bf16.msra.mxu0 %v8002_v19  ;;  %6885 = vmatprep.mubr.msk.bf16.mxu0 %vm8321_vm0, %v11569_v1  ;;  %v9102_v19 = vld [vmem:[%s8478_s17 + $0x50] sm:$0xf] }
  0xb4   : > { %6943 = vmatprep.subr.bf16.mxu0 %v11569_v1  ;;  %v5967_v39 = vcombine.low %v9102_v19, %v8653_v26  ;;  %v8011_v26 = vld [vmem:[%s11532_s2 + $0xa0] sm:$0xff]  }
  0xb6   : > { %7058 = vmatmul.mubr.bf16.gmra.mrb[40].mxu1 %v5967_v39  ;;  %v8014_v39 = vld [vmem:[%s11532_s2 + $0xa8] sm:$0xff]  }
  0xb7   : > { %6944 = vmatpush3.bf16.msra.mxu0 %v8004_v24  ;;  %7061 = vmatprep.mubr.msk.bf16.mxu1 %vm8321_vm0, %v11569_v1  ;;  %v5875_v24 = vcombine.low %v8958_v18, %v8987_v43 }
  0xb8   : > { %6945 = vmatprep.subr.bf16.mxu0 %v11569_v1 }
  0xba   : > { %6886 = vmatmul.mubr.bf16.gmra.mrb[64].mxu0 %v5874_v61  ;;  %v9121_v61 = vld [vmem:[%s8478_s17 + $0x58] sm:$0xf] }
  0xbb   : > { %6889 = vmatprep.mubr.msk.bf16.mxu0 %vm8321_vm0, %v11569_v1  ;;  %6946 = vmatpush3.bf16.msra.mxu0 %v8006_v11  ;;  %v5968_v11 = vcombine.low %v9121_v61, %v8661_v32 }
  0xbc   : > { %6947 = vmatprep.subr.bf16.mxu0 %v11569_v1 }
  0xbe   : > { %7062 = vmatmul.mubr.bf16.gmra.mrb[44].mxu1 %v5968_v11 }
  0xbf   : > { %6948 = vmatpush3.bf16.msra.mxu0 %v8009_v29  ;;  %7065 = vmatprep.mubr.msk.bf16.mxu1 %vm8321_vm0, %v11569_v1  ;;  %v9134_v29 = vld [vmem:[%s8478_s17 + $0x20] sm:$0xf] }
  0xc0   : > { %6949 = vmatprep.subr.bf16.mxu0 %v11569_v1  ;;  %v9138_v32 = vcombine.low %v9134_v29, %v9010_v3  ;;  %v5898_v45 = vrot.slane %v9134_v29, 9 }
  0xc2   : > { %6890 = vmatmul.mubr.bf16.gmra.mrb[68].mxu0 %v5875_v24  ;;  %11646 = vst [vmem:[#allocation30_spill] sm:$0xff] %v9138_v32  ;;  %v8018_v24 = vld [vmem:[%s11532_s2 + $0xb0] sm:$0xff]  }
  0xc3   : > { %6893 = vmatprep.mubr.msk.bf16.mxu0 %vm8321_vm0, %v11569_v1  ;;  %6950 = vmatpush3.bf16.msra.mxu0 %v8011_v26  ;;  %v9146_v26 = vld [vmem:[%s8478_s17 + $0x64] sm:$0xf] }
  0xc4   : > { %6951 = vmatprep.subr.bf16.mxu0 %v11569_v1  ;;  %v5969_v11 = vcombine.low %v9146_v26, %v8694_v49  ;;  %v1414_v16 = vrot.slane %v9146_v26, 5 }
  0xc6   : > { %7066 = vmatmul.mubr.bf16.gmra.mrb[48].mxu1 %v5969_v11 }
  0xc7   : > { %6952 = vmatpush3.bf16.msra.mxu0 %v8014_v39  ;;  %v8023_v39 = vld [vmem:[%s11532_s2 + $0xb8] sm:$0xff]   ;;  %7069 = vmatprep.mubr.msk.bf16.mxu1 %vm8321_vm0, %v11569_v1 }
  0xc8   : > { %6953 = vmatprep.subr.bf16.mxu0 %v11569_v1 }
  0xca   : > { %6894 = vmatmul.mubr.bf16.gmra.mrb[72].mxu0 %v9138_v32  ;;  %v9159_v32 = vld [vmem:[%s8478_s17 + $0x28] sm:$0xf] }
  0xcb   : > { %6897 = vmatprep.mubr.msk.bf16.mxu0 %vm8321_vm0, %v11569_v1  ;;  %6954 = vmatpush3.bf16.msra.mxu0 %v8018_v24  ;;  %v9163_v49 = vcombine.low %v9159_v32, %v9032_v20  ;;  %v9168_v24 = vld [vmem:[%s8478_s17 + $0x74] sm:$0xf] }
  0xcc   : > { %6955 = vmatprep.subr.bf16.mxu0 %v11569_v1  ;;  %v5970_v11 = vcombine.low %v9171_v7, %v9168_v24 }
  0xcd   : > { %11647 = vst [vmem:[#allocation31_spill] sm:$0xff] %v9163_v49 }
  0xce   : > { %7070 = vmatmul.mubr.bf16.gmra.mrb[52].mxu1 %v5970_v11  ;;  %v9198_v11 = vcombine.low %v9057_v17, %v9077_v4 }
  0xcf   : > { %6956 = vmatpush3.bf16.msra.mxu0 %v8023_v39  ;;  %7073 = vmatprep.mubr.msk.bf16.mxu1 %vm8321_vm0, %v11569_v1  ;;  %v9184_v39 = vcombine.low %v9180_v27, %v9054_v54 }
  0xd0   : > { %7093 = vmatprep.subr.bf16.mxu0 %v11569_v1  ;;  %11649 = vst [vmem:[#allocation33_spill] sm:$0xff] %v9198_v11 }
  0xd1   : > { %11648 = vst [vmem:[#allocation32_spill] sm:$0xff] %v9184_v39 }
  0xd2   : > { %6898 = vmatmul.mubr.bf16.gmra.mrb[76].mxu0 %v9163_v49  ;;  %v9188_v49 = vld [vmem:[%s8478_s17 + $0x78] sm:$0xf] }
  0xd3   : > { %6901 = vmatprep.mubr.msk.bf16.mxu0 %vm8321_vm0, %v11569_v1  ;;  %v5971_v25 = vcombine.low %v9188_v49, %v8727_v12  ;;  %v8046_v12 = vld [vmem:[%s11532_s2 + $0x140] sm:$0xff]  }
  0xd4   : > { %7170 = vmatpush3.bf16.msra.mxu1 %v8046_v12  ;;  %v9230_v12 = vld [vmem:[%s8478_s17 + $0x54] sm:$0xf] }
  0xd5   : > { %7171 = vmatprep.subr.bf16.mxu1 %v11569_v1 }
  0xd6   : > { %7074 = vmatmul.mubr.bf16.gmra.mrb[56].mxu1 %v5971_v25  ;;  %v9212_v25 = vcombine.low %v9080_v55, %v9102_v19 }
  0xd7   : > { %7077 = vmatprep.mubr.msk.bf16.mxu1 %vm8321_vm0, %v11569_v1 }
  0xd8   : > { %11650 = vst [vmem:[#allocation34_spill] sm:$0xff] %v9212_v25 }
  0xda   : > { %6902 = vmatmul.mubr.bf16.gmra.mrb[80].mxu0 %v9184_v39  ;;  %v5972_v39 = vcombine.low %v8730_v13, %v8770_v2  ;;  %v8047_v13 = vld [vmem:[%s11532_s2 + $0x148] sm:$0xff]   ;;  %v5973_v2 = vcombine.low %v8775_v10, %v8821_v41  ;;  %v9234_v10 = vcombine.low %v9230_v12, %v9121_v61  ;;  %v8050_v41 = vld [vmem:[%s11532_s2 + $0x158] sm:$0xff]  }
  0xdb   : > { %6905 = vmatprep.mubr.msk.bf16.mxu0 %vm8321_vm0, %v11569_v1  ;;  %7172 = vmatpush3.bf16.msra.mxu1 %v8047_v13  ;;  %v9241_v13 = vld [vmem:[%s8709_s12 + $0x20] sm:$0xf] }
  0xdc   : > { %7173 = vmatprep.subr.bf16.mxu1 %v11569_v1  ;;  %11651 = vst [vmem:[#allocation35_spill] sm:$0xff] %v9234_v10 }
  0xde   : > { %7078 = vmatmul.mubr.bf16.gmra.mrb[60].mxu1 %v5972_v39  ;;  %v8049_v39 = vld [vmem:[%s11532_s2 + $0x150] sm:$0xff]  }
  0xdf   : > { %7081 = vmatprep.mubr.msk.bf16.mxu1 %vm8321_vm0, %v11569_v1  ;;  %7174 = vmatpush3.bf16.msra.mxu1 %v8049_v39  ;;  %v8053_v39 = vld [vmem:[%s11532_s2 + $0x160] sm:$0xff]  }
  0xe0   : > { %7175 = vmatprep.subr.bf16.mxu1 %v11569_v1 }
  0xe2   : > { %6906 = vmatmul.mubr.bf16.gmra.mrb[84].mxu0 %v9198_v11 }
  0xe3   : > { %6909 = vmatprep.mubr.msk.bf16.mxu0 %vm8321_vm0, %v11569_v1  ;;  %7176 = vmatpush3.bf16.msra.mxu1 %v8050_v41  ;;  %v9255_v41 = vld [vmem:[%s8478_s17 + $0x60] sm:$0xf] }
  0xe4   : > { %7177 = vmatprep.subr.bf16.mxu1 %v11569_v1 }
  0xe6   : > { %7082 = vmatmul.mubr.bf16.gmra.mrb[64].mxu1 %v5973_v2  ;;  %v5974_v2 = vcombine.low %v8826_v37, %v9241_v13  ;;  %v8054_v37 = vld [vmem:[%s11532_s2 + $0x168] sm:$0xff]  }
  0xe7   : > { %7085 = vmatprep.mubr.msk.bf16.mxu1 %vm8321_vm0, %v11569_v1  ;;  %7178 = vmatpush3.bf16.msra.mxu1 %v8053_v39  ;;  %v9270_v39 = vld [vmem:[%s8709_s12 + $0x28] sm:$0xf] }
  0xe8   : > { %7179 = vmatprep.subr.bf16.mxu1 %v11569_v1 }
  0xea   : > { %6910 = vmatmul.mubr.bf16.gmra.mrb[88].mxu0 %v9212_v25  ;;  %v1364_v25 = vrot.slane %v8958_v18, 5  ;;  %v1354_v18 = vrot.slane %v9072_v62, 5  ;;  %v5896_v62 = vrot.slane %v9069_v23, 9 }
  0xeb   : > { %6913 = vmatprep.mubr.msk.bf16.mxu0 %vm8321_vm0, %v11569_v1  ;;  %7180 = vmatpush3.bf16.msra.mxu1 %v8054_v37  ;;  %v5897_v37 = vrot.slane %v8955_v44, 9  ;;  %v11654_v44 = vmov 0 }
  0xec   : > { %7181 = vmatprep.subr.bf16.mxu1 %v11569_v1  ;;  %v1366_v42 = vrot.slane %v1364_v25, 4  ;;  %v11655_v44 = vsel %vm9294_vm6, 4294967295, %v11654_v44  ;;  %v1355_v23 = vsel %vm9294_vm6, %v5896_v62, %v1354_v18  ;;  %v1374_v62 = vrot.slane %v9010_v3, 5 }
  0xed   : > { %11656 = vst [vmem:[#allocation38_spill] sm:$0xff] %v11655_v44  ;;  %v1377_v3 = vrot.slane %v9159_v32, 5  ;;  %v8034_v32 = vld [vmem:[%s11532_s2 + $0x110] sm:$0xff]  }
  0xee   : > { %7086 = vmatmul.mubr.bf16.gmra.mrb[68].mxu1 %v5974_v2  ;;  %v9267_v2 = vld [vmem:[%s8709_s12 + $0x24] sm:$0xf]  ;;  %v1375_v29 = vsel %vm9294_vm6, %v5898_v45, %v1374_v62  ;;  %v1376_v45 = vrot.slane %v1374_v62, 4 }
  0xef   : > { %7089 = vmatprep.mubr.msk.bf16.mxu1 %vm8321_vm0, %v11569_v1  ;;  %v5975_v11 = vcombine.low %v9267_v2, %v9270_v39  ;;  %7182 = vmatpush3.bf16.msra.mxu1 %v8057_v46  ;;  %v1357_v46 = vrot.slane %v9093_v35, 5 }
  0xf0   : > { %7183 = vmatprep.subr.bf16.mxu1 %v11569_v1 }
  0xf1   : > { %v1359_v47 = vrot.slane %v1357_v46, 4 }
  0xf2   : > { %6914 = vmatmul.mubr.bf16.gmra.mrb[92].mxu0 %v9234_v10  ;;  %v9259_v10 = vcombine.low %v9255_v41, %v9146_v26 }
  0xf3   : > { %6917 = vmatprep.mubr.msk.bf16.mxu0 %vm8321_vm0, %v11569_v1  ;;  %7184 = vmatpush3.bf16.msra.mxu1 %v8058_v15 }
  0xf4   : > { %11652 = vst [vmem:[#allocation36_spill] sm:$0xff] %v9259_v10  ;;  %7321 = vmatprep.subr.bf16.mxu1 %v11569_v1 }
  0xf6   : > { %7090 = vmatmul.mubr.bf16.gmra.mrb[72].mxu1 %v5975_v11  ;;  %v1365_v11 = vsel %vm9294_vm6, %v5897_v37, %v1364_v25  ;;  %v8181_v25 = vld [vmem:[%s8478_s17 + $0x1c] sm:$0x1] }
  0xf7   : > { %7185 = vmatprep.mubr.msk.bf16.mxu1 %vm8321_vm0, %v11569_v1  ;;  %v1370_v37 = vrot.slane %v8181_v25, 5 }
  0xfa   : > { %6918 = vmatmul.mubr.bf16.gmra.mrb[96].mxu0 %v9259_v10  ;;  %v1367_v10 = vrot.slane %v8987_v43, 5  ;;  %v1356_v43 = vrot.slane %v1354_v18, 4  ;;  %v1360_v18 = vrot.slane %v8182_v30, 5  ;;  %v8031_v30 = vld [vmem:[%s11532_s2 + $0x108] sm:$0xff]  }
  0xfb   : > { %6921 = vmatprep.mubr.msk.bf16.mxu0 %vm8321_vm0, %v11569_v1 }
  0xfc   : > { %v9305_v48 = vsel %vm9294_vm6, %v1366_v42, %v1367_v10  ;;  %v1358_v42 = vsel %vm9294_vm6, %v1356_v43, %v1357_v46  ;;  %v1369_v35 = vrot.slane %v1367_v10, 4  ;;  %v1361_v43 = vsel %vm9294_vm6, %v1359_v47, %v1360_v18 }
  0xfd   : > { %v6040_v33 = vcombine.low %v1365_v11, %v9305_v48  ;;  %v5922_v15 = vcombine.low %v1355_v23, %v1358_v42  ;;  %v1379_v23 = vrot.slane %v1377_v3, 4  ;;  %v5923_v47 = vcombine.low %v1361_v43, %v1365_v11 }
  0xfe   : > { %v1384_v11 = vrot.slane %v9180_v27, 5  ;;  %v1387_v27 = vrot.slane %v9054_v54, 5  ;;  %v8043_v54 = vld [vmem:[%s11532_s2 + $0x128] sm:$0xff]  }
  0xff   : > { %7186 = vmatmul.mubr.bf16.vlgmr.msra.gmra.mrb[76].mxu1 %v6040_v33  ;;  %v1371_v33 = vsel %vm9294_vm6, %v1369_v35, %v1370_v37 }
 0x100   : > { %7189 = vmatprep.mubr.msk.bf16.mxu1 %vm8321_vm0, %v11569_v1  ;;  %v6041_v10 = vcombine.low %v1371_v33, %v1375_v29 }
 0x102   : > { %6922 = vmatmul.mubr.bf16.gmra.mrb[100].mxu0 %v9291_v34  ;;  %v8028_v34 = vld [vmem:[%s11532_s2 + $0x100] sm:$0xff]  }
 0x103   : > { %6957 = vmatprep.mubr.msk.bf16.mxu0 %vm8321_vm0, %v11569_v1 }
 0x107   : > { %7190 = vmatmul.mubr.bf16.gmra.mrb[80].mxu1 %v6041_v10  ;;  %v8037_v10 = vld [vmem:[%s11532_s2 + $0x118] sm:$0xff]  }
 0x108   : > { %7193 = vmatprep.mubr.msk.bf16.mxu1 %vm8321_vm0, %v11569_v1 }
 0x10a   : > { %6958 = vmatmul.mubr.bf16.vlgmr.msra.gmra.mrb[104].mxu0 %v5922_v15  ;;  %v1378_v15 = vsel %vm9294_vm6, %v1376_v45, %v1377_v3  ;;  %v1386_v3 = vrot.slane %v1384_v11, 4 }
 0x10b   : > { %7094 = vmatpush3.bf16.msra.mxu0 %v8028_v34  ;;  %6961 = vmatprep.mubr.msk.bf16.mxu0 %vm8321_vm0, %v11569_v1  ;;  %v8183_v34 = vld [vmem:[%s8478_s17 + $0x2c] sm:$0x1] }
 0x10c   : > { %7095 = vmatprep.subr.bf16.mxu0 %v11569_v1  ;;  %v1380_v42 = vrot.slane %v8183_v34, 5 }
 0x10d   : > { %v9341_v46 = vpop.f32.mrb[0].mxu0 }
 0x10e   : > { %v6807_v35 = vpop.f32.mrb[1].mxu0  ;;  %v1381_v18 = vsel %vm9294_vm6, %v1379_v23, %v1380_v42  ;;  %v5924_v23 = vcombine.low %v9305_v48, %v1371_v33  ;;  %v8040_v42 = vld [vmem:[%s11532_s2 + $0x120] sm:$0xff]  }
 0x10f   : > { %v9346_v25 = vpop.f32.mrb[2].mxu0  ;;  %7096 = vmatpush3.bf16.msra.mxu0 %v8031_v30  ;;  %v6042_v62 = vcombine.low %v1378_v15, %v1381_v18  ;;  %v5899_v30 = vrot.slane %v9032_v20, 9 }
 0x110   : > { %v6808_v37 = vpop.f32.mrb[3].mxu0  ;;  %7097 = vmatprep.subr.bf16.mxu0 %v11569_v1 }
 0x111   : > { %7194 = vmatmul.mubr.bf16.gmra.mrb[84].mxu1 %v6042_v62  ;;  %v1385_v20 = vsel %vm9294_vm6, %v5899_v30, %v1384_v11  ;;  %v8184_v37 = vld [vmem:[%s8478_s17 + $0x3c] sm:$0x1]  ;;  %v5900_v11 = vrot.slane %v9057_v17, 9  ;;  %v9392_v30 = vcombine.low %v1375_v29, %v1378_v15 }
 0x112   : > { %6962 = vmatmul.mubr.bf16.gmra.mrb[108].mxu0 %v5923_v47  ;;  %7197 = vmatprep.mubr.msk.bf16.mxu1 %vm8321_vm0, %v11569_v1  ;;  %v1388_v47 = vsel %vm9294_vm6, %v1386_v3, %v1387_v27  ;;  %v1390_v62 = vrot.slane %v8184_v37, 5 }
 0x113   : > { %6965 = vmatprep.mubr.msk.bf16.mxu0 %vm8321_vm0, %v11569_v1  ;;  %7098 = vmatpush3.bf16.msra.mxu0 %v8034_v32  ;;  %v6043_v48 = vcombine.low %v1385_v20, %v1388_v47  ;;  %v1389_v32 = vrot.slane %v1387_v27, 4  ;;  %11657 = vst [vmem:[#allocation39_spill] sm:$0xff] %v9392_v30 }
 0x114   : > { %7099 = vmatprep.subr.bf16.mxu0 %v11569_v1 }
 0x115   : > { %v9363_v43 = vpop.f32.mrb[4].mxu0  ;;  %v1391_v17 = vsel %vm9294_vm6, %v1389_v32, %v1390_v62  ;;  %v8185_v32 = vld [vmem:[%s8478_s17 + $0x4c] sm:$0x1] }
 0x116   : > { %v6811_v45 = vpop.f32.mrb[5].mxu0  ;;  %v1400_v37 = vrot.slane %v8185_v32, 5 }
 0x117   : > { %v9369_v34 = vpop.f32.mrb[6].mxu0  ;;  %7100 = vmatpush3.bf16.msra.mxu0 %v8037_v10  ;;  %v1394_v45 = vrot.slane %v9077_v4, 5  ;;  %v1397_v4 = vrot.slane %v9080_v55, 5 }
 0x118   : > { %v6812_v35 = vpop.f32.mrb[7].mxu0  ;;  %7101 = vmatprep.subr.bf16.mxu0 %v11569_v1 }
 0x119   : > { %7198 = vmatmul.mubr.bf16.gmra.mrb[88].mxu1 %v6043_v48  ;;  %v1395_v29 = vsel %vm9294_vm6, %v5900_v11, %v1394_v45  ;;  %v1396_v48 = vrot.slane %v1394_v45, 4  ;;  %v9418_v11 = vcombine.low %v1381_v18, %v1385_v20  ;;  %v1404_v18 = vrot.slane %v9230_v12, 5 }
 0x11a   : > { %6966 = vmatmul.mubr.bf16.gmra.mrb[112].mxu0 %v5924_v23  ;;  %7201 = vmatprep.mubr.msk.bf16.mxu1 %vm8321_vm0, %v11569_v1  ;;  %v8045_v23 = vld [vmem:[%s11532_s2 + $0x130] sm:$0xff]   ;;  %v6044_v15 = vcombine.low %v1391_v17, %v1395_v29  ;;  %v1407_v12 = vrot.slane %v9121_v61, 5 }
 0x11b   : > { %6969 = vmatprep.mubr.msk.bf16.mxu0 %vm8321_vm0, %v11569_v1  ;;  %7102 = vmatpush3.bf16.msra.mxu0 %v8040_v42  ;;  %v8052_v42 = vld [vmem:[%s11532_s2 + $0x138] sm:$0xff]   ;;  %11658 = vst [vmem:[#allocation40_spill] sm:$0xff] %v9418_v11 }
 0x11c   : > { %7103 = vmatprep.subr.bf16.mxu0 %v11569_v1 }
 0x11d   : > { %v9386_v33 = vpop.f32.mrb[8].mxu0 }
 0x11e   : > { %v6815_v10 = vpop.f32.mrb[9].mxu0 }
 0x11f   : > { %v9394_v3 = vpop.f32.mrb[10].mxu0  ;;  %7104 = vmatpush3.bf16.msra.mxu0 %v8043_v54  ;;  %v1399_v54 = vrot.slane %v1397_v4, 4 }
 0x120   : > { %v6816_v27 = vpop.f32.mrb[11].mxu0  ;;  %7105 = vmatprep.subr.bf16.mxu0 %v11569_v1 }
 0x121   : > { %7202 = vmatmul.mubr.bf16.gmra.mrb[92].mxu1 %v6044_v15  ;;  %v1401_v45 = vsel %vm9294_vm6, %v1399_v54, %v1400_v37  ;;  %v9427_v27 = vpop.f32.mrb[0].mxu1  ;;  %v9440_v37 = vcombine.low %v1388_v47, %v1391_v17  ;;  %v11660_v47 = vmov 0.0  }
 0x122   : > { %6970 = vmatmul.mubr.bf16.gmra.mrb[116].mxu0 %v9392_v30  ;;  %7205 = vmatprep.mubr.msk.bf16.mxu1 %vm8321_vm0, %v11569_v1  ;;  %v6927_v15 = vpop.f32.mrb[1].mxu1 }
 0x123   : > { %6973 = vmatprep.mubr.msk.bf16.mxu0 %vm8321_vm0, %v11569_v1  ;;  %7106 = vmatpush3.bf16.msra.mxu0 %v8045_v23  ;;  %v1398_v23 = vsel %vm9294_vm6, %v1396_v48, %v1397_v4  ;;  %v9433_v20 = vpop.f32.mrb[2].mxu1  ;;  %v5901_v4 = vrot.slane %v9102_v19, 9  ;;  %v1406_v48 = vrot.slane %v1404_v18, 4  ;;  %11659 = vst [vmem:[#allocation41_spill] sm:$0xff] %v9440_v37 }
 0x124   : > { %7107 = vmatprep.subr.bf16.mxu0 %v11569_v1  ;;  %v6045_v32 = vcombine.low %v1398_v23, %v1401_v45 }
 0x125   : > { %v9413_v35 = vpop.f32.mrb[12].mxu0 }
 0x126   : > { %v6819_v62 = vpop.f32.mrb[13].mxu0 }
 0x127   : > { %v9420_v55 = vpop.f32.mrb[14].mxu0  ;;  %7108 = vmatpush3.bf16.msra.mxu0 %v8052_v42  ;;  %v6928_v42 = vpop.f32.mrb[3].mxu1 }
 0x128   : > { %v6820_v10 = vpop.f32.mrb[15].mxu0  ;;  %7245 = vmatprep.subr.bf16.mxu0 %v11569_v1  ;;  %v1408_v42 = vsel %vm9294_vm6, %v1406_v48, %v1407_v12  ;;  %v9449_v19 = vpop.f32.mrb[4].mxu1  ;;  %v5902_v48 = vrot.slane %v9255_v41, 9 }
 0x129   : > { %7206 = vmatmul.mubr.bf16.gmra.mrb[96].mxu1 %v6045_v32  ;;  %v1405_v32 = vsel %vm9294_vm6, %v5901_v4, %v1404_v18  ;;  %v8186_v18 = vld [vmem:[%s8478_s17 + $0x5c] sm:$0x1] }
 0x12a   : > { %6974 = vmatmul.mubr.bf16.gmra.mrb[120].mxu0 %v9418_v11  ;;  %7209 = vmatprep.mubr.msk.bf16.mxu1 %vm8321_vm0, %v11569_v1  ;;  %v1410_v4 = vrot.slane %v8186_v18, 5 }
 0x12b   : > { %6977 = vmatprep.mubr.msk.bf16.mxu0 %vm8321_vm0, %v11569_v1  ;;  %v6931_v1 = vpop.f32.mrb[5].mxu1 }
 0x12c   : > { %v9454_v17 = vpop.f32.mrb[6].mxu1  ;;  %v9462_v1 = vcombine.low %v1395_v29, %v1398_v23  ;;  %v1417_v29 = vrot.slane %v9287_v53, 5 }
 0x12d   : > { %v9435_v62 = vpop.f32.mrb[16].mxu0  ;;  %v6932_v11 = vpop.f32.mrb[7].mxu1 }
 0x12e   : > { %v6823_v54 = vpop.f32.mrb[17].mxu0  ;;  %11662 = vst [vmem:[#allocation43_spill] sm:$0xff] %v9462_v1 }
 0x12f   : > { %v9442_v10 = vpop.f32.mrb[18].mxu0  ;;  %v6046_v54 = vcombine.low %v1405_v32, %v1408_v42  ;;  %v9471_v18 = vpop.f32.mrb[8].mxu1 }
 0x130   : > { %v6824_v15 = vpop.f32.mrb[19].mxu0  ;;  %v6935_v41 = vpop.f32.mrb[9].mxu1 }
 0x131   : > { %7210 = vmatmul.mubr.bf16.gmra.mrb[100].mxu1 %v6046_v54  ;;  %v1409_v15 = vrot.slane %v1407_v12, 4  ;;  %v1415_v12 = vsel %vm9294_vm6, %v5902_v48, %v1414_v16  ;;  %v9477_v26 = vpop.f32.mrb[10].mxu1  ;;  %v8187_v48 = vld [vmem:[%s8478_s17 + $0x6c] sm:$0x1] }
 0x132   : > { %6978 = vmatmul.mubr.bf16.gmra.mrb[124].mxu0 %v9440_v37  ;;  %7213 = vmatprep.mubr.msk.bf16.mxu1 %vm8321_vm0, %v11660_v47  ;;  %v6936_v23 = vpop.f32.mrb[11].mxu1  ;;  %v1420_v21 = vrot.slane %v8187_v48, 5 }
 0x133   : > { %6981 = vmatprep.mubr.msk.bf16.mxu0 %vm8321_vm0, %v11660_v47  ;;  %v1411_v54 = vsel %vm9294_vm6, %v1409_v15, %v1410_v4  ;;  %v1416_v15 = vrot.slane %v1414_v16, 4  ;;  %v1419_v4 = vrot.slane %v1417_v29, 4 }
 0x135   : > { %v9456_v61 = vpop.f32.mrb[20].mxu0  ;;  %v1418_v53 = vsel %vm9294_vm6, %v1416_v15, %v1417_v29  ;;  %v5903_v29 = vrot.slane %v9171_v7, 9 }
 0x136   : > { %11661 = vst [vmem:[#allocation42_spill] sm:$0xff] %v9456_v61  ;;  %v6827_v37 = vpop.f32.mrb[21].mxu0 }
 0x137   : > { %v9464_v30 = vpop.f32.mrb[22].mxu0  ;;  %v6047_v37 = vcombine.low %v1411_v54, %v1415_v12  ;;  %v9492_v23 = vpop.f32.mrb[12].mxu1 }
 0x138   : > { %11663 = vst [vmem:[#allocation44_spill] sm:$0xff] %v9464_v30  ;;  %v6828_v11 = vpop.f32.mrb[23].mxu0  ;;  %v6939_v16 = vpop.f32.mrb[13].mxu1 }
 0x139   : > { %7214 = vmatmul.mubr.bf16.gmra.mrb[104].mxu1 %v6047_v37  ;;  %v1421_v37 = vsel %vm9294_vm6, %v1419_v4, %v1420_v21  ;;  %v9505_v4 = vcombine.low %v1408_v42, %v1411_v54 }
 0x13a   : > { %6982 = vmatmul.mubr.bf16.gmra.mrb[128].mxu0 %v9462_v1  ;;  %7217 = vmatprep.mubr.msk.bf16.mxu1 %vm8321_vm0, %v11660_v47  ;;  %v9484_v1 = vcombine.low %v1401_v45, %v1405_v32  ;;  %v6048_v48 = vcombine.low %v1418_v53, %v1421_v37  ;;  %v1424_v45 = vrot.slane %v9168_v24, 5  ;;  %v9498_v32 = vpop.f32.mrb[14].mxu1  ;;  %v1427_v24 = vrot.slane %v9188_v49, 5 }
 0x13b   : > { %6985 = vmatprep.mubr.msk.bf16.mxu0 %vm8321_vm0, %v11660_v47  ;;  %11666 = vst [vmem:[#allocation47_spill] sm:$0xff] %v9505_v4 }
 0x13c   : > { %11664 = vst [vmem:[#allocation45_spill] sm:$0xff] %v9484_v1  ;;  %v1426_v21 = vrot.slane %v1424_v45, 4  ;;  %v1429_v54 = vrot.slane %v1427_v24, 4 }
 0x13d   : > { %v9479_v11 = vpop.f32.mrb[24].mxu0 }
 0x13e   : > { %v6831_v41 = vpop.f32.mrb[25].mxu0  ;;  %v1428_v7 = vsel %vm9294_vm6, %v1426_v21, %v1427_v24 }
 0x13f   : > { %v9486_v30 = vpop.f32.mrb[26].mxu0 }
 0x140   : > { %v6832_v61 = vpop.f32.mrb[27].mxu0 }
 0x141   : > { %7218 = vmatmul.mubr.bf16.gmra.mrb[108].mxu1 %v6048_v48  ;;  %v6940_v61 = vpop.f32.mrb[15].mxu1  ;;  %v1425_v48 = vsel %vm9294_vm6, %v5903_v29, %v1424_v45  ;;  %v9523_v29 = vcombine.low %v1415_v12, %v1418_v53  ;;  %v8191_v12 = vld [vmem:[%s8709_s12 + $0x8] sm:$0xf] }
 0x142   : > { %6986 = vmatmul.mubr.bf16.gmra.mrb[132].mxu0 %v9484_v1  ;;  %7221 = vmatprep.mubr.msk.bf16.mxu1 %vm8321_vm0, %v11660_v47  ;;  %v6049_v61 = vcombine.low %v1425_v48, %v1428_v7  ;;  %v1437_v53 = vrot.slane %v8191_v12, 5 }
 0x143   : > { %6989 = vmatprep.mubr.msk.bf16.mxu0 %vm8321_vm0, %v11660_v47  ;;  %11669 = vst [vmem:[#allocation50_spill] sm:$0xff] %v9523_v29 }
 0x145   : > { %v9500_v41 = vpop.f32.mrb[28].mxu0 }
 0x146   : > { %11665 = vst [vmem:[#allocation46_spill] sm:$0xff] %v9500_v41  ;;  %v6835_v15 = vpop.f32.mrb[29].mxu0 }
 0x147   : > { %v9507_v16 = vpop.f32.mrb[30].mxu0  ;;  %v8188_v15 = vld [vmem:[%s8478_s17 + $0x7c] sm:$0x1] }
 0x148   : > { %11667 = vst [vmem:[#allocation48_spill] sm:$0xff] %v9507_v16  ;;  %v6836_v1 = vpop.f32.mrb[31].mxu0  ;;  %v1430_v49 = vrot.slane %v8188_v15, 5 }
 0x149   : > { %7222 = vmatmul.mubr.bf16.gmra.mrb[112].mxu1 %v6049_v61  ;;  %v8189_v1 = vld [vmem:[%s8709_s12] sm:$0xf] }
 0x14a   : > { %6990 = vmatmul.mubr.bf16.gmra.mrb[136].mxu0 %v9505_v4  ;;  %v5904_v16 = vrot.slane %v8189_v1, 9  ;;  %7225 = vmatprep.mubr.msk.bf16.mxu1 %vm8321_vm0, %v11660_v47  ;;  %v8190_v4 = vld [vmem:[%s8709_s12 + $0x4] sm:$0xf]  ;;  %v1431_v24 = vsel %vm9294_vm6, %v1429_v54, %v1430_v49  ;;  %v9541_v54 = vcombine.low %v1421_v37, %v1425_v48  ;;  %v8193_v37 = vld [vmem:[%s8709_s12 + $0x14] sm:$0xf] }
 0x14b   : > { %6993 = vmatprep.mubr.msk.bf16.mxu0 %vm8321_vm0, %v11660_v47  ;;  %v1434_v41 = vrot.slane %v8190_v4, 5  ;;  %v1444_v48 = vrot.slane %v8193_v37, 5 }
 0x14c   : > { %11672 = vst [vmem:[#allocation53_spill] sm:$0xff] %v9541_v54 }
 0x14d   : > { %v9517_v42 = vpop.f32.mrb[32].mxu0  ;;  %v1435_v15 = vsel %vm9294_vm6, %v5904_v16, %v1434_v41  ;;  %v1436_v4 = vrot.slane %v1434_v41, 4 }
 0x14e   : > { %11668 = vst [vmem:[#allocation49_spill] sm:$0xff] %v9517_v42  ;;  %v6839_v45 = vpop.f32.mrb[33].mxu0  ;;  %v6050_v1 = vcombine.low %v1431_v24, %v1435_v15 }
 0x14f   : > { %v9525_v21 = vpop.f32.mrb[34].mxu0 }
 0x150   : > { %11670 = vst [vmem:[#allocation51_spill] sm:$0xff] %v9525_v21  ;;  %v6840_v61 = vpop.f32.mrb[35].mxu0  ;;  %v8192_v21 = vld [vmem:[%s8709_s12 + $0xc] sm:$0x1] }
 0x151   : > { %7226 = vmatmul.mubr.bf16.gmra.mrb[116].mxu1 %v6050_v1  ;;  %v1439_v61 = vrot.slane %v1437_v53, 4  ;;  %v1440_v42 = vrot.slane %v8192_v21, 5  ;;  %v1438_v1 = vsel %vm9294_vm6, %v1436_v4, %v1437_v53  ;;  %v8194_v53 = vld [vmem:[%s8709_s12 + $0x10] sm:$0xf]  ;;  %v1446_v4 = vrot.slane %v1444_v48, 4 }
 0x152   : > { %6994 = vmatmul.mubr.bf16.gmra.mrb[140].mxu0 %v9523_v29  ;;  %7229 = vmatprep.mubr.msk.bf16.mxu1 %vm8321_vm0, %v11660_v47 }
 0x153   : > { %6997 = vmatprep.mubr.msk.bf16.mxu0 %vm8321_vm0, %v11660_v47  ;;  %v9549_v12 = vsel %vm9294_vm6, %v1439_v61, %v1440_v42  ;;  %v5905_v42 = vrot.slane %v8194_v53, 9 }
 0x154   : > { %v6051_v41 = vcombine.low %v1438_v1, %v9549_v12 }
 0x155   : > { %v9536_v45 = vpop.f32.mrb[36].mxu0 }
 0x156   : > { %11671 = vst [vmem:[#allocation52_spill] sm:$0xff] %v9536_v45  ;;  %v6843_v16 = vpop.f32.mrb[37].mxu0  ;;  %v9570_v45 = vpop.f32.mrb[16].mxu1 }
 0x157   : > { %v9543_v49 = vpop.f32.mrb[38].mxu0  ;;  %v9564_v16 = vcombine.low %v1428_v7, %v1431_v24  ;;  %11676 = vst [vmem:[#allocation57_spill] sm:$0xff] %v9570_v45  ;;  %v7035_v53 = vpop.f32.mrb[17].mxu1 }
 0x158   : > { %11673 = vst [vmem:[#allocation54_spill] sm:$0xff] %v9543_v49  ;;  %v6844_v29 = vpop.f32.mrb[39].mxu0  ;;  %v9581_v24 = vpop.f32.mrb[18].mxu1 }
 0x159   : > { %v8066_v29 = vld [vmem:[%s11532_s2 + $0x1c0] sm:$0xff]   ;;  %7230 = vmatmul.mubr.bf16.gmra.mrb[120].mxu1 %v6051_v41  ;;  %11674 = vst [vmem:[#allocation55_spill] sm:$0xff] %v9564_v16  ;;  %v8067_v41 = vld [vmem:[%s11532_s2 + $0x1c8] sm:$0xff]   ;;  %11677 = vst [vmem:[#allocation58_spill] sm:$0xff] %v9581_v24  ;;  %v7036_v45 = vpop.f32.mrb[19].mxu1 }
 0x15a   : > { %6998 = vmatmul.mubr.bf16.gmra.mrb[144].mxu0 %v9541_v54  ;;  %7322 = vmatpush3.bf16.msra.mxu1 %v8066_v29  ;;  %v8195_v54 = vld [vmem:[%s8709_s12 + $0x18] sm:$0xf] }
 0x15b   : > { %7001 = vmatprep.mubr.msk.bf16.mxu0 %vm8321_vm0, %v11660_v47  ;;  %7233 = vmatprep.mubr.msk.bf16.mxu1 %vm8321_vm0, %v11660_v47  ;;  %v1447_v49 = vrot.slane %v8195_v54, 5 }
 0x15c   : > { %7323 = vmatprep.subr.bf16.mxu1 %v11660_v47 }
 0x15d   : > { %v9559_v21 = vpop.f32.mrb[40].mxu0  ;;  %v9579_v7 = vsel %vm9294_vm6, %v1446_v4, %v1447_v49  ;;  %v1449_v4 = vrot.slane %v1447_v49, 4  ;;  %v8069_v49 = vld [vmem:[%s11532_s2 + $0x1d8] sm:$0xff]  }
 0x15e   : > { %v6847_v61 = vpop.f32.mrb[41].mxu0  ;;  %7324 = vmatpush3.bf16.msra.mxu1 %v8067_v41 }
 0x15f   : > { %v9567_v37 = vpop.f32.mrb[42].mxu0  ;;  %v1445_v61 = vsel %vm9294_vm6, %v5905_v42, %v1444_v48  ;;  %7325 = vmatprep.subr.bf16.mxu1 %v11660_v47  ;;  %v8068_v48 = vld [vmem:[%s11532_s2 + $0x1d0] sm:$0xff]  }
 0x160   : > { %11675 = vst [vmem:[#allocation56_spill] sm:$0xff] %v9567_v37  ;;  %v6848_v29 = vpop.f32.mrb[43].mxu0  ;;  %v6052_v54 = vcombine.low %v1445_v61, %v9579_v7  ;;  %v9600_v37 = vpop.f32.mrb[20].mxu1 }
 0x161   : > { %v8196_v29 = vld [vmem:[%s8709_s12 + $0x1c] sm:$0x1] }
 0x162   : > { %7002 = vmatmul.mubr.bf16.gmra.mrb[148].mxu0 %v9564_v16  ;;  %7234 = vmatmul.mubr.bf16.gmra.mrb[124].mxu1 %v6052_v54  ;;  %v1450_v53 = vrot.slane %v8196_v29, 5  ;;  %v9597_v16 = vcombine.low %v1435_v15, %v1438_v1  ;;  %v6023_v54 = vrot.slane %v9241_v13, 9 }
 0x163   : > { %7005 = vmatprep.mubr.msk.bf16.mxu0 %vm8321_vm0, %v11660_v47  ;;  %7326 = vmatpush3.bf16.msra.mxu1 %v8068_v48  ;;  %v2362_v48 = vrot.slane %v9267_v2, 5 }
 0x164   : > { %7237 = vmatprep.mubr.msk.bf16.mxu1 %vm8321_vm0, %v11660_v47  ;;  %11679 = vst [vmem:[#allocation60_spill] sm:$0xff] %v9597_v16  ;;  %7327 = vmatprep.subr.bf16.mxu1 %v11660_v47  ;;  %v1451_v15 = vsel %vm9294_vm6, %v1449_v4, %v1450_v53  ;;  %v2365_v4 = vrot.slane %v9270_v39, 5 }
 0x165   : > { %v1017_v42 = vpop.f32.mrb[44].mxu0 }
 0x166   : > { %v9595_v41 = vadd.f32 %v9427_v27, %v1017_v42  ;;  %v6851_v45 = vpop.f32.mrb[45].mxu0  ;;  %v7039_v42 = vpop.f32.mrb[21].mxu1  ;;  %v2367_v39 = vrot.slane %v2365_v4, 4 }
 0x167   : > { %v1020_v24 = vpop.f32.mrb[46].mxu0  ;;  %v9612_v1 = vpop.f32.mrb[22].mxu1  ;;  %7328 = vmatpush3.bf16.msra.mxu1 %v8069_v49  ;;  %v9616_v45 = vsel %vm9294_vm6, %v6023_v54, %v2362_v48  ;;  %v9633_v54 = vcombine.low %v9549_v12, %v1445_v61 }
 0x168   : > { %11678 = vst [vmem:[#allocation59_spill] sm:$0xff] %v9595_v41  ;;  %v9608_v29 = vadd.f32 %v9433_v20, %v1020_v24  ;;  %v6852_v27 = vpop.f32.mrb[47].mxu0  ;;  %11681 = vst [vmem:[#allocation62_spill] sm:$0xff] %v9616_v45  ;;  %v6053_v13 = vcombine.low %v1451_v15, %v9616_v45  ;;  %7329 = vmatprep.subr.bf16.mxu1 %v11660_v47  ;;  %v7040_v2 = vpop.f32.mrb[23].mxu1  ;;  %v8071_v20 = vld [vmem:[%s11532_s2 + $0x1e0] sm:$0xff]  }
 0x169   : > { %11683 = vst [vmem:[#allocation64_spill] sm:$0xff] %v9633_v54  ;;  %v9637_v27 = vld [vmem:[%s8709_s12 + $0x2c] sm:$0x1] }
 0x16a   : > { %11680 = vst [vmem:[#allocation61_spill] sm:$0xff] %v9608_v29  ;;  %7006 = vmatmul.mubr.bf16.gmra.mrb[152].mxu0 %v9597_v16  ;;  %7238 = vmatmul.mubr.bf16.gmra.mrb[128].mxu1 %v6053_v13  ;;  %v9639_v13 = vpop.f32.mrb[24].mxu1  ;;  %v8072_v2 = vld [vmem:[%s11532_s2 + $0x1e8] sm:$0xff]  }
 0x16b   : > { %7009 = vmatprep.mubr.msk.bf16.mxu0 %vm8321_vm0, %v11660_v47  ;;  %7330 = vmatpush3.bf16.msra.mxu1 %v8071_v20  ;;  %v2364_v20 = vrot.slane %v2362_v48, 4  ;;  %v7043_v61 = vpop.f32.mrb[25].mxu1 }
 0x16c   : > { %7241 = vmatprep.mubr.msk.bf16.mxu1 %vm8321_vm0, %v11660_v47  ;;  %7331 = vmatprep.subr.bf16.mxu1 %v11660_v47 }
 0x16d   : > { %v1025_v24 = vpop.f32.mrb[48].mxu0  ;;  %v9652_v16 = vsel %vm9294_vm6, %v2364_v20, %v2365_v4  ;;  %v8075_v4 = vld [vmem:[%s11532_s2 + $0x1f0] sm:$0xff]  }
 0x16e   : > { %v9630_v53 = vadd.f32 %v9449_v19, %v1025_v24  ;;  %v6855_v49 = vpop.f32.mrb[49].mxu0  ;;  %v2368_v19 = vrot.slane %v9637_v27, 5  ;;  %11685 = vst [vmem:[#allocation66_spill] sm:$0xff] %v9652_v16 }
 0x16f   : > { %v1028_v42 = vpop.f32.mrb[50].mxu0  ;;  %v9648_v49 = vpop.f32.mrb[26].mxu1  ;;  %7332 = vmatpush3.bf16.msra.mxu1 %v8072_v2 }
 0x170   : > { %11682 = vst [vmem:[#allocation63_spill] sm:$0xff] %v9630_v53  ;;  %v9646_v24 = vadd.f32 %v9454_v17, %v1028_v42  ;;  %v6856_v12 = vpop.f32.mrb[51].mxu0  ;;  %v9656_v53 = vsel %vm9294_vm6, %v2367_v39, %v2368_v19  ;;  %7333 = vmatprep.subr.bf16.mxu1 %v11660_v47  ;;  %v7044_v42 = vpop.f32.mrb[27].mxu1  ;;  %v9675_v19 = vcombine.low %v9579_v7, %v1451_v15 }
 0x171   : > { %11686 = vst [vmem:[#allocation67_spill] sm:$0xff] %v9656_v53  ;;  %v6054_v48 = vcombine.low %v9652_v16, %v9656_v53  ;;  %v9678_v61 = vpop.f32.mrb[28].mxu1  ;;  %v11692_v53 = vcombine.low %v8534_v57, %v8538_v58  ;;  %v6001_v57 = vcombine.low %v8593_v6, %v8629_v0  ;;  %v8062_v0 = vld [vmem:[%s11532_s2 + $0x198] sm:$0xff]  }
 0x172   : > { %11684 = vst [vmem:[#allocation65_spill] sm:$0xff] %v9646_v24  ;;  %7010 = vmatmul.mubr.bf16.gmra.mrb[156].mxu0 %v9633_v54  ;;  %11688 = vst [vmem:[#allocation69_spill] sm:$0xff] %v9675_v19  ;;  %v7047_v17 = vpop.f32.mrb[29].mxu1 }
 0x173   : > { %7013 = vmatprep.mubr.msk.bf16.mxu0 %vm8321_vm0, %v11660_v47  ;;  %7242 = vmatmul.mubr.bf16.gmra.mrb[132].mxu1 %v6054_v48  ;;  %v8076_v48 = vld [vmem:[%s11532_s2 + $0x1f8] sm:$0xff]  }
 0x174   : > { %7334 = vmatpush3.bf16.msra.mxu1 %v8075_v4  ;;  %7337 = vmatprep.mubr.msk.bf16.mxu1 %vm8321_vm0, %v11660_v47 }
 0x175   : > { %v1033_v2 = vpop.f32.mrb[52].mxu0  ;;  %7335 = vmatprep.subr.bf16.mxu1 %v11660_v47 }
 0x176   : > { %v9672_v20 = vadd.f32 %v9471_v18, %v1033_v2  ;;  %v6859_v39 = vpop.f32.mrb[53].mxu0  ;;  %v9686_v18 = vpop.f32.mrb[30].mxu1 }
 0x177   : > { %v1036_v12 = vpop.f32.mrb[54].mxu0  ;;  %v7048_v7 = vpop.f32.mrb[31].mxu1  ;;  %v8059_v39 = vld [vmem:[%s11532_s2 + $0x180] sm:$0xff]  }
 0x178   : > { %11687 = vst [vmem:[#allocation68_spill] sm:$0xff] %v9672_v20  ;;  %v9684_v4 = vadd.f32 %v9477_v26, %v1036_v12  ;;  %v6860_v42 = vpop.f32.mrb[55].mxu0  ;;  %7336 = vmatpush3.bf16.msra.mxu1 %v8076_v48  ;;  %v9700_v12 = vpop.f32.mrb[32].mxu1 }
 0x17a   : > { %11689 = vst [vmem:[#allocation70_spill] sm:$0xff] %v9684_v4  ;;  %7014 = vmatmul.mubr.bf16.gmra.mrb[160].mxu0 %v9675_v19 }
 0x17b   : > { %7109 = vmatprep.mubr.msk.bf16.mxu0 %vm8321_vm0, %v11660_v47  ;;  %7338 = vmatmul.mubr.bf16.vlgmr.msra.gmra.mrb[136].mxu1 %v8649_v22  ;;  %v7051_v22 = vpop.f32.mrb[33].mxu1 }
 0x17c   : > { %7341 = vmatprep.mubr.msk.bf16.mxu1 %vm8321_vm0, %v11660_v47  ;;  %v9705_v7 = vpop.f32.mrb[34].mxu1 }
 0x17d   : > { %v1041_v15 = vpop.f32.mrb[56].mxu0 }
 0x17e   : > { %v9695_v26 = vadd.f32 %v9492_v23, %v1041_v15  ;;  %v6863_v2 = vpop.f32.mrb[57].mxu0  ;;  %v7052_v23 = vpop.f32.mrb[35].mxu1  ;;  %v8060_v15 = vld [vmem:[%s11532_s2 + $0x188] sm:$0xff]  }
 0x17f   : > { %v1044_v17 = vpop.f32.mrb[58].mxu0 }
 0x180   : > { %11690 = vst [vmem:[#allocation71_spill] sm:$0xff] %v9695_v26  ;;  %v9703_v48 = vadd.f32 %v9498_v32, %v1044_v17  ;;  %v6864_v42 = vpop.f32.mrb[59].mxu0  ;;  %v8061_v17 = vld [vmem:[%s11532_s2 + $0x190] sm:$0xff]  }
 0x182   : > { %11691 = vst [vmem:[#allocation72_spill] sm:$0xff] %v9703_v48  ;;  %7110 = vmatmul.mubr.bf16.vlgmr.msra.gmra.mrb[164].mxu0 %v11692_v53 }
 0x183   : > { %7246 = vmatpush3.bf16.msra.mxu0 %v8059_v39  ;;  %7113 = vmatprep.mubr.msk.bf16.mxu0 %vm8321_vm0, %v11660_v47  ;;  %v9727_v39 = vpop.f32.mrb[36].mxu1 }
 0x184   : > { %7247 = vmatprep.subr.bf16.mxu0 %v11660_v47  ;;  %7342 = vmatmul.mubr.bf16.gmra.mrb[140].mxu1 %v8699_v50  ;;  %v7055_v22 = vpop.f32.mrb[37].mxu1 }
 0x185   : > { %v1220_v32 = vpop.f32.mrb[60].mxu0  ;;  %7345 = vmatprep.mubr.msk.bf16.mxu1 %vm8321_vm0, %v11660_v47  ;;  %v9733_v23 = vpop.f32.mrb[38].mxu1 }
 0x186   : > { %v6883_v2 = vpop.f32.mrb[61].mxu0  ;;  %v9722_v58 = vadd.f32 %v1220_v32, %v9341_v46  ;;  %v7056_v6 = vpop.f32.mrb[39].mxu1 }
 0x187   : > { %v1223_v53 = vpop.f32.mrb[62].mxu0  ;;  %7248 = vmatpush3.bf16.msra.mxu0 %v8060_v15  ;;  %v6002_v15 = vcombine.low %v8633_v5, %v8668_v36  ;;  %v8064_v36 = vld [vmem:[%s11532_s2 + $0x1a8] sm:$0xff]   ;;  %v6003_v6 = vcombine.low %v8672_v59, %v8721_v8  ;;  %v8070_v8 = vld [vmem:[%s11532_s2 + $0x1b8] sm:$0xff]  }
 0x188   : > { %v6884_v50 = vpop.f32.mrb[63].mxu0  ;;  %7249 = vmatprep.subr.bf16.mxu0 %v11660_v47  ;;  %v9731_v42 = vadd.f32 %v1223_v53, %v9346_v25 }
 0x189   : > { %v9752_v53 = vpop.f32.mrb[40].mxu1 }
 0x18a   : > { %7114 = vmatmul.mubr.bf16.gmra.mrb[168].mxu0 %v6001_v57  ;;  %v8063_v57 = vld [vmem:[%s11532_s2 + $0x1a0] sm:$0xff]   ;;  %v7059_v50 = vpop.f32.mrb[41].mxu1 }
 0x18b   : > { %7117 = vmatprep.mubr.msk.bf16.mxu0 %vm8321_vm0, %v11660_v47  ;;  %7250 = vmatpush3.bf16.msra.mxu0 %v8061_v17  ;;  %v9758_v22 = vpop.f32.mrb[42].mxu1  ;;  %v6004_v50 = vcombine.low %v8735_v14, %v8801_v40 }
 0x18c   : > { %7251 = vmatprep.subr.bf16.mxu0 %v11660_v47  ;;  %7346 = vmatmul.mubr.bf16.gmra.mrb[144].mxu1 %v8764_v38  ;;  %v7060_v5 = vpop.f32.mrb[43].mxu1 }
 0x18d   : > { %v1228_v46 = vpop.f32.mrb[64].mxu0  ;;  %7349 = vmatprep.mubr.msk.bf16.mxu1 %vm8321_vm0, %v11660_v47 }
 0x18e   : > { %v6887_v25 = vpop.f32.mrb[65].mxu0  ;;  %v9747_v32 = vadd.f32 %v1228_v46, %v9363_v43 }
 0x18f   : > { %v1231_v2 = vpop.f32.mrb[66].mxu0  ;;  %7252 = vmatpush3.bf16.msra.mxu0 %v8062_v0  ;;  %v8065_v25 = vld [vmem:[%s11532_s2 + $0x1b0] sm:$0xff]  }
 0x190   : > { %v6888_v38 = vpop.f32.mrb[67].mxu0  ;;  %7253 = vmatprep.subr.bf16.mxu0 %v11660_v47  ;;  %v9756_v17 = vadd.f32 %v1231_v2, %v9369_v34 }
 0x192   : > { %7118 = vmatmul.mubr.bf16.gmra.mrb[172].mxu0 %v6002_v15  ;;  %v9777_v15 = vpop.f32.mrb[44].mxu1 }
 0x193   : > { %7121 = vmatprep.mubr.msk.bf16.mxu0 %vm8321_vm0, %v11660_v47  ;;  %7254 = vmatpush3.bf16.msra.mxu0 %v8063_v57  ;;  %v7063_v57 = vpop.f32.mrb[45].mxu1 }
 0x194   : > { %7255 = vmatprep.subr.bf16.mxu0 %v11660_v47  ;;  %7350 = vmatmul.mubr.bf16.gmra.mrb[148].mxu1 %v8814_v52  ;;  %v9783_v38 = vpop.f32.mrb[46].mxu1 }
 0x195   : > { %v1236_v43 = vpop.f32.mrb[68].mxu0  ;;  %7353 = vmatprep.mubr.msk.bf16.mxu1 %vm8321_vm0, %v11660_v47  ;;  %v7064_v59 = vpop.f32.mrb[47].mxu1 }
 0x196   : > { %v6891_v34 = vpop.f32.mrb[69].mxu0  ;;  %v9772_v0 = vadd.f32 %v1236_v43, %v9386_v33 }
 0x197   : > { %v1239_v46 = vpop.f32.mrb[70].mxu0  ;;  %7256 = vmatpush3.bf16.msra.mxu0 %v8064_v36 }
 0x198   : > { %v6892_v52 = vpop.f32.mrb[71].mxu0  ;;  %7257 = vmatprep.subr.bf16.mxu0 %v11660_v47  ;;  %v9781_v2 = vadd.f32 %v1239_v46, %v9394_v3 }
 0x199   : > { %v9799_v43 = vpop.f32.mrb[48].mxu1 }
 0x19a   : > { %7122 = vmatmul.mubr.bf16.gmra.mrb[176].mxu0 %v6003_v6 }
 0x19b   : > { %7125 = vmatprep.mubr.msk.bf16.mxu0 %vm8321_vm0, %v11660_v47  ;;  %7258 = vmatpush3.bf16.msra.mxu0 %v8065_v25 }
 0x19c   : > { %7259 = vmatprep.subr.bf16.mxu0 %v11660_v47  ;;  %7354 = vmatmul.mubr.bf16.gmra.mrb[152].mxu1 %v8858_v28  ;;  %v7067_v28 = vpop.f32.mrb[49].mxu1 }
 0x19d   : > { %v1244_v33 = vpop.f32.mrb[72].mxu0  ;;  %7357 = vmatprep.mubr.msk.bf16.mxu1 %vm8321_vm0, %v11660_v47  ;;  %v9805_v46 = vpop.f32.mrb[50].mxu1 }
 0x19e   : > { %v6895_v3 = vpop.f32.mrb[73].mxu0  ;;  %v9797_v5 = vadd.f32 %v1244_v33, %v9413_v35  ;;  %v7068_v25 = vpop.f32.mrb[51].mxu1  ;;  %v6005_v35 = vcombine.low %v8806_v31, %v8845_v63 }
 0x19f   : > { %v1247_v36 = vpop.f32.mrb[74].mxu0  ;;  %7260 = vmatpush3.bf16.msra.mxu0 %v8070_v8  ;;  %v11695_v25 = vld [vmem:[#allocation44_spill] sm:$0xff] }
 0x1a0   : > { %v6896_v34 = vpop.f32.mrb[75].mxu0  ;;  %v9802_v6 = vadd.f32 %v1247_v36, %v9420_v55  ;;  %7397 = vmatprep.subr.bf16.mxu0 %v11660_v47 }
 0x1a1   : > { %v9817_v57 = vpop.f32.mrb[52].mxu1 }
 0x1a2   : > { %7126 = vmatmul.mubr.bf16.gmra.mrb[180].mxu0 %v6004_v50  ;;  %v7071_v33 = vpop.f32.mrb[53].mxu1 }
 0x1a3   : > { %7129 = vmatprep.mubr.msk.bf16.mxu0 %vm8321_vm0, %v11660_v47  ;;  %v11699_v33 = vld [vmem:[#allocation12_spill] sm:$0xff] }
 0x1a4   : > { %7358 = vmatmul.mubr.bf16.gmra.mrb[156].mxu1 %v8889_v56  ;;  %v9822_v56 = vpop.f32.mrb[54].mxu1 }
 0x1a5   : > { %v1252_v14 = vpop.f32.mrb[76].mxu0  ;;  %7361 = vmatprep.mubr.msk.bf16.mxu1 %vm8321_vm0, %v11660_v47  ;;  %v7072_v3 = vpop.f32.mrb[55].mxu1 }
 0x1a6   : > { %v6899_v40 = vpop.f32.mrb[77].mxu0  ;;  %v9815_v55 = vadd.f32 %v1252_v14, %v9435_v62  ;;  %v6006_v62 = vcombine.low %v8850_v9, %v8877_v51 }
 0x1a7   : > { %v1255_v52 = vpop.f32.mrb[78].mxu0 }
 0x1a8   : > { %v6900_v59 = vpop.f32.mrb[79].mxu0  ;;  %v9820_v8 = vadd.f32 %v1255_v52, %v9442_v10  ;;  %v11693_v10 = vld [vmem:[#allocation42_spill] sm:$0xff]  ;;  %v11697_v52 = vld [vmem:[#allocation17_spill] sm:$0xff] }
 0x1a9   : > { %v9834_v34 = vpop.f32.mrb[56].mxu1  ;;  %v11698_v59 = vld [vmem:[#allocation13_spill] sm:$0xff] }
 0x1aa   : > { %7130 = vmatmul.mubr.bf16.gmra.mrb[184].mxu0 %v6005_v35  ;;  %11694 = vst [vmem:[#allocation42_spill] sm:$0xff] %v9834_v34  ;;  %v7075_v40 = vpop.f32.mrb[57].mxu1  ;;  %v6007_v3 = vcombine.low %v11699_v33, %v11698_v59  ;;  %v11705_v59 = vld [vmem:[#allocation14_spill] sm:$0xff]  ;;  %v11740_v34 = vld [vmem:[#allocation57_spill] sm:$0xff] }
 0x1ab   : > { %7133 = vmatprep.mubr.msk.bf16.mxu0 %vm8321_vm0, %v11660_v47 }
 0x1ac   : > { %7362 = vmatmul.mubr.bf16.gmra.mrb[160].mxu1 %v8919_v60  ;;  %v9839_v60 = vpop.f32.mrb[58].mxu1 }
 0x1ad   : > { %v1260_v31 = vpop.f32.mrb[80].mxu0  ;;  %7365 = vmatprep.mubr.msk.bf16.mxu1 %vm8321_vm0, %v11660_v47  ;;  %11696 = vst [vmem:[#allocation44_spill] sm:$0xff] %v9839_v60  ;;  %v7076_v35 = vpop.f32.mrb[59].mxu1  ;;  %v9969_v60 = vld [vmem:[%s8709_s12 + $0x38] sm:$0xf] }
 0x1ae   : > { %v6903_v63 = vpop.f32.mrb[81].mxu0  ;;  %v9832_v50 = vadd.f32 %v1260_v31, %v11693_v10  ;;  %v11702_v35 = vld [vmem:[#allocation20_spill] sm:$0xff] }
 0x1af   : > { %v1263_v36 = vpop.f32.mrb[82].mxu0 }
 0x1b0   : > { %v6904_v28 = vpop.f32.mrb[83].mxu0  ;;  %v9837_v14 = vadd.f32 %v1263_v36, %v11695_v25 }
 0x1b1   : > { %v9851_v10 = vpop.f32.mrb[60].mxu1 }
 0x1b2   : > { %7134 = vmatmul.mubr.bf16.gmra.mrb[188].mxu0 %v6006_v62  ;;  %11700 = vst [vmem:[#allocation17_spill] sm:$0xff] %v9851_v10  ;;  %v7079_v28 = vpop.f32.mrb[61].mxu1 }
 0x1b3   : > { %7137 = vmatprep.mubr.msk.bf16.mxu0 %vm8321_vm0, %v11660_v47  ;;  %v9856_v25 = vpop.f32.mrb[62].mxu1 }
 0x1b4   : > { %7366 = vmatmul.mubr.bf16.gmra.mrb[164].mxu1 %v11697_v52  ;;  %11701 = vst [vmem:[#allocation13_spill] sm:$0xff] %v9856_v25  ;;  %v7080_v40 = vpop.f32.mrb[63].mxu1 }
 0x1b5   : > { %v1268_v9 = vpop.f32.mrb[84].mxu0  ;;  %7369 = vmatprep.mubr.msk.bf16.mxu1 %vm8321_vm0, %v11660_v47 }
 0x1b6   : > { %v6907_v51 = vpop.f32.mrb[85].mxu0  ;;  %v9849_v31 = vadd.f32 %v1268_v9, %v9479_v11  ;;  %v11703_v11 = vld [vmem:[#allocation46_spill] sm:$0xff] }
 0x1b7   : > { %v1271_v63 = vpop.f32.mrb[86].mxu0 }
 0x1b8   : > { %v6908_v62 = vpop.f32.mrb[87].mxu0  ;;  %v9854_v36 = vadd.f32 %v1271_v63, %v9486_v30  ;;  %v11704_v30 = vld [vmem:[#allocation15_spill] sm:$0xff] }
 0x1b9   : > { %v6008_v33 = vcombine.low %v11705_v59, %v11704_v30  ;;  %v9868_v62 = vpop.f32.mrb[64].mxu1 }
 0x1ba   : > { %7138 = vmatmul.mubr.bf16.gmra.mrb[192].mxu0 %v6007_v3  ;;  %11706 = vst [vmem:[#allocation12_spill] sm:$0xff] %v9868_v62  ;;  %v11707_v3 = vld [vmem:[#allocation48_spill] sm:$0xff]  ;;  %v7083_v44 = vpop.f32.mrb[65].mxu1 }
 0x1bb   : > { %7141 = vmatprep.mubr.msk.bf16.mxu0 %vm8321_vm0, %v11660_v47  ;;  %v11711_v44 = vld [vmem:[#allocation18_spill] sm:$0xff] }
 0x1bc   : > { %7370 = vmatmul.mubr.bf16.gmra.mrb[168].mxu1 %v11702_v35  ;;  %v9873_v35 = vpop.f32.mrb[66].mxu1 }
 0x1bd   : > { %v1276_v52 = vpop.f32.mrb[88].mxu0  ;;  %7373 = vmatprep.mubr.msk.bf16.mxu1 %vm8321_vm0, %v11660_v47  ;;  %11708 = vst [vmem:[#allocation20_spill] sm:$0xff] %v9873_v35  ;;  %v7084_v16 = vpop.f32.mrb[67].mxu1 }
 0x1be   : > { %v9864_v9 = vadd.f32 %v1276_v52, %v11703_v11  ;;  %v6911_v51 = vpop.f32.mrb[89].mxu0  ;;  %v11709_v52 = vld [vmem:[#allocation23_spill] sm:$0xff] }
 0x1bf   : > { %v1279_v63 = vpop.f32.mrb[90].mxu0  ;;  %v11710_v51 = vld [vmem:[#allocation49_spill] sm:$0xff]  ;;  %v11714_v16 = vld [vmem:[#allocation51_spill] sm:$0xff] }
 0x1c0   : > { %v9871_v28 = vadd.f32 %v1279_v63, %v11707_v3  ;;  %v6912_v40 = vpop.f32.mrb[91].mxu0  ;;  %v11712_v63 = vld [vmem:[#allocation16_spill] sm:$0xff] }
 0x1c1   : > { %v6009_v3 = vcombine.low %v11712_v63, %v11711_v44 }
 0x1c2   : > { %7142 = vmatmul.mubr.bf16.gmra.mrb[196].mxu0 %v6008_v33  ;;  %v9885_v33 = vpop.f32.mrb[68].mxu1 }
 0x1c3   : > { %7145 = vmatprep.mubr.msk.bf16.mxu0 %vm8321_vm0, %v11660_v47  ;;  %11713 = vst [vmem:[#allocation46_spill] sm:$0xff] %v9885_v33  ;;  %v7087_v54 = vpop.f32.mrb[69].mxu1  ;;  %v11719_v33 = vld [vmem:[#allocation52_spill] sm:$0xff] }
 0x1c4   : > { %7374 = vmatmul.mubr.bf16.gmra.mrb[172].mxu1 %v11709_v52  ;;  %v9891_v52 = vld [vmem:[%s8709_s12 + $0x20] sm:$0xf] }
 0x1c5   : > { %v1284_v11 = vpop.f32.mrb[92].mxu0  ;;  %7377 = vmatprep.mubr.msk.bf16.mxu1 %vm8321_vm0, %v11660_v47  ;;  %11715 = vst [vmem:[#allocation15_spill] sm:$0xff] %v9891_v52  ;;  %v2045_v48 = vshrl.u32 %v9891_v52, 16  ;;  %v2048_v26 = vshll.u32 %v9891_v52, 16 }
 0x1c6   : > { %v9881_v30 = vadd.f32 %v1284_v11, %v11710_v51  ;;  %v6915_v59 = vpop.f32.mrb[93].mxu0  ;;  %v9896_v11 = vld [vmem:[%s8709_s12 + $0x24] sm:$0xf] }
 0x1c7   : > { %v1287_v40 = vpop.f32.mrb[94].mxu0  ;;  %11716 = vst [vmem:[#allocation14_spill] sm:$0xff] %v9896_v11  ;;  %v2058_v51 = vshrl.u32 %v9896_v11, 16  ;;  %v9899_v59 = vpop.f32.mrb[70].mxu1  ;;  %v2054_v54 = vshll.u32 %v9896_v11, 16  ;;  %v11723_v11 = vld [vmem:[#allocation54_spill] sm:$0xff] }
 0x1c8   : > { %v9888_v45 = vadd.f32 %v1287_v40, %v11714_v16  ;;  %v6916_v19 = vpop.f32.mrb[95].mxu0  ;;  %11717 = vst [vmem:[#allocation48_spill] sm:$0xff] %v9899_v59  ;;  %v7088_v44 = vpop.f32.mrb[71].mxu1  ;;  %v2047_v40 = vrot.slane %v2045_v48, 4  ;;  %v2050_v16 = vrot.slane %v2048_v26, 5  ;;  %v11721_v59 = vld [vmem:[#allocation19_spill] sm:$0xff] }
 0x1c9   : > { %v11718_v19 = vld [vmem:[#allocation26_spill] sm:$0xff]  ;;  %v2060_v52 = vrot.slane %v2058_v51, 4  ;;  %v11720_v44 = vld [vmem:[#allocation21_spill] sm:$0xff]  ;;  %v2056_v62 = vrot.slane %v2054_v54, 5  ;;  %v9912_v24 = vpop.f32.mrb[72].mxu1  ;;  %11738 = vst [vmem:[#allocation19_spill] sm:$0xff] %v9969_v60 }
 0x1ca   : > { %7146 = vmatmul.mubr.bf16.gmra.mrb[200].mxu0 %v6009_v3  ;;  %v6010_v20 = vcombine.low %v11721_v59, %v11720_v44  ;;  %11722 = vst [vmem:[#allocation23_spill] sm:$0xff] %v9912_v24  ;;  %v9918_v26 = vld [vmem:[%s8709_s12 + $0x28] sm:$0xf]  ;;  %v11726_v54 = vld [vmem:[#allocation29_spill] sm:$0xff] }
 0x1cb   : > { %7149 = vmatprep.mubr.msk.bf16.mxu0 %vm8321_vm0, %v11660_v47  ;;  %11724 = vst [vmem:[#allocation49_spill] sm:$0xff] %v9918_v26  ;;  %v2064_v51 = vshll.u32 %v9918_v26, 16  ;;  %v2068_v25 = vshrl.u32 %v9918_v26, 16 }
 0x1cc   : > { %7378 = vmatmul.mubr.bf16.gmra.mrb[176].mxu1 %v11718_v19 }
 0x1cd   : > { %v1292_v63 = vpop.f32.mrb[96].mxu0  ;;  %7381 = vmatprep.mubr.msk.bf16.mxu1 %vm8321_vm0, %v11660_v47 }
 0x1ce   : > { %v9908_v4 = vadd.f32 %v1292_v63, %v11719_v33  ;;  %v6919_v3 = vpop.f32.mrb[97].mxu0  ;;  %v7091_v33 = vpop.f32.mrb[73].mxu1  ;;  %v2051_v63 = vor.u32 %v2050_v16, %v2047_v40  ;;  %v11727_v16 = vld [vmem:[#allocation24_spill] sm:$0xff] }
 0x1cf   : > { %v1295_v35 = vpop.f32.mrb[98].mxu0  ;;  %v2061_v3 = vor.u32 %v2060_v52, %v2056_v62  ;;  %v9922_v10 = vpop.f32.mrb[74].mxu1 }
 0x1d0   : > { %v9915_v19 = vadd.f32 %v1295_v35, %v11723_v11  ;;  %v6920_v48 = vpop.f32.mrb[99].mxu0  ;;  %11725 = vst [vmem:[#allocation18_spill] sm:$0xff] %v9922_v10  ;;  %v7092_v59 = vpop.f32.mrb[75].mxu1  ;;  %v2066_v35 = vrot.slane %v2064_v51, 5  ;;  %v2070_v11 = vrot.slane %v2068_v25, 4  ;;  %v2074_v10 = vshll.u32 %v9637_v27, 16 }
 0x1d1   : > { %v2052_v48 = vrot.slane %v2051_v63, 4  ;;  %v2062_v24 = vrot.slane %v2061_v3, 4  ;;  %v9935_v59 = vld [vmem:[%s8709_s12 + $0x30] sm:$0xf] }
 0x1d2   : > { %7150 = vmatmul.mubr.bf16.gmra.mrb[204].mxu0 %v6010_v20  ;;  %v11728_v20 = vld [vmem:[#allocation22_spill] sm:$0xff]  ;;  %11729 = vst [vmem:[#allocation16_spill] sm:$0xff] %v9935_v59  ;;  %v9937_v25 = vpop.f32.mrb[76].mxu1  ;;  %v2071_v3 = vor.u32 %v2070_v11, %v2066_v35  ;;  %v2076_v11 = vrot.slane %v2074_v10, 5 }
 0x1d3   : > { %7153 = vmatprep.mubr.msk.bf16.mxu0 %vm8321_vm0, %v11660_v47  ;;  %v6011_v33 = vcombine.low %v11728_v20, %v11727_v16  ;;  %11730 = vst [vmem:[#allocation51_spill] sm:$0xff] %v9937_v25  ;;  %v7187_v29 = vpop.f32.mrb[77].mxu1  ;;  %v2912_v20 = vshrl.u32 %v9935_v59, 16  ;;  %v11736_v25 = vld [vmem:[#allocation27_spill] sm:$0xff] }
 0x1d4   : > { %7382 = vmatmul.mubr.bf16.gmra.mrb[180].mxu1 %v11726_v54  ;;  %v11731_v54 = vld [vmem:[#allocation56_spill] sm:$0xff]  ;;  %v9951_v16 = vpop.f32.mrb[78].mxu1 }
 0x1d5   : > { %v1300_v44 = vpop.f32.mrb[100].mxu0  ;;  %7385 = vmatprep.mubr.msk.bf16.mxu1 %vm8321_vm0, %v11660_v47  ;;  %11734 = vst [vmem:[#allocation52_spill] sm:$0xff] %v9951_v16  ;;  %v7188_v27 = vpop.f32.mrb[79].mxu1 }
 0x1d6   : > { %v9930_v40 = vadd.f32 %v1300_v44, %v9559_v21  ;;  %v6923_v52 = vpop.f32.mrb[101].mxu0  ;;  %v9945_v44 = vsel %vm8512_vm3, %v2052_v48, %v2056_v62  ;;  %v2914_v62 = vrot.slane %v2912_v20, 4  ;;  %v11737_v27 = vld [vmem:[#allocation25_spill] sm:$0xff] }
 0x1d7   : > { %v1303_v51 = vpop.f32.mrb[102].mxu0  ;;  %v9949_v52 = vsel %vm8512_vm3, %v2062_v24, %v2066_v35  ;;  %v2072_v35 = vrot.slane %v2071_v3, 4  ;;  %v6012_v41 = vcombine.low %v11737_v27, %v11736_v25 }
 0x1d8   : > { %v9940_v26 = vadd.f32 %v1303_v51, %v11731_v54  ;;  %v6924_v63 = vpop.f32.mrb[103].mxu0  ;;  %v2915_v51 = vshll.u32 %v9935_v59, 16  ;;  %v9956_v54 = vld [vmem:[%s8709_s12 + $0x34] sm:$0xf]  ;;  %v6106_v29 = vcombine.low %v9945_v44, %v9949_v52 }
 0x1d9   : > { %11735 = vst [vmem:[#allocation21_spill] sm:$0xff] %v9956_v54  ;;  %v2921_v63 = vshll.u32 %v9956_v54, 16 }
 0x1da   : > { %11732 = vst [vmem:[#allocation26_spill] sm:$0xff] %v9940_v26  ;;  %7154 = vmatmul.mubr.bf16.gmra.mrb[208].mxu0 %v6011_v33  ;;  %v2917_v24 = vrot.slane %v2915_v51, 5  ;;  %v9971_v51 = vpop.f32.mrb[80].mxu1 }
 0x1db   : > { %7157 = vmatprep.mubr.msk.bf16.mxu0 %vm8321_vm0, %v11660_v47  ;;  %11739 = vst [vmem:[#allocation54_spill] sm:$0xff] %v9971_v51  ;;  %v2923_v3 = vrot.slane %v2921_v63, 5  ;;  %v11742_v63 = vld [vmem:[#allocation58_spill] sm:$0xff] }
 0x1dc   : > { %7386 = vmatmul.mubr.bf16.gmra.mrb[184].mxu1 %v6106_v29  ;;  %v2918_v33 = vor.u32 %v2917_v24, %v2914_v62 }
 0x1dd   : > { %v1611_v48 = vpop.f32.mrb[104].mxu0  ;;  %7389 = vmatprep.mubr.msk.bf16.mxu1 %vm8321_vm0, %v11660_v47 }
 0x1de   : > { %v1730_v59 = vadd.f32 %v1611_v48, %v9722_v58  ;;  %v6959_v16 = vpop.f32.mrb[105].mxu0  ;;  %v2919_v10 = vrot.slane %v2918_v33, 4  ;;  %v2077_v58 = vsel %vm8512_vm3, %v2072_v35, %v2076_v11  ;;  %v2925_v48 = vshrl.u32 %v9956_v54, 16 }
 0x1df   : > { %v1614_v20 = vpop.f32.mrb[106].mxu0  ;;  %v7191_v16 = vpop.f32.mrb[81].mxu1  ;;  %v2931_v33 = vshll.u32 %v9969_v60, 16 }
 0x1e0   : > { %v1731_v29 = vadd.f32 %v1614_v20, %v9731_v42  ;;  %v9975_v26 = vadd.f32 %v11740_v34, %v1730_v59  ;;  %v6960_v62 = vpop.f32.mrb[107].mxu0  ;;  %v9979_v24 = vpop.f32.mrb[82].mxu1  ;;  %v2924_v25 = vsel %vm8512_vm3, %v2919_v10, %v2923_v3  ;;  %v2935_v42 = vshrl.u32 %v9969_v60, 16  ;;  %v9992_v10 = vld [vmem:[%s8709_s12 + $0x3c] sm:$0x1] }
 0x1e1   : > { %11741 = vst [vmem:[#allocation29_spill] sm:$0xff] %v9979_v24  ;;  %v6107_v59 = vcombine.low %v2077_v58, %v2924_v25  ;;  %v7192_v27 = vpop.f32.mrb[83].mxu1  ;;  %v2927_v35 = vrot.slane %v2925_v48, 4  ;;  %v2933_v11 = vrot.slane %v2931_v33, 5  ;;  %11743 = vst [vmem:[#allocation24_spill] sm:$0xff] %v9992_v10 }
 0x1e2   : > { %v9987_v34 = vadd.f32 %v11742_v63, %v1731_v29  ;;  %7158 = vmatmul.mubr.bf16.gmra.mrb[212].mxu0 %v6012_v41  ;;  %v2937_v20 = vrot.slane %v2935_v42, 4  ;;  %v2941_v29 = vshll.u32 %v9992_v10, 16  ;;  %v11744_v63 = vld [vmem:[#allocation28_spill] sm:$0xff] }
 0x1e3   : > { %7161 = vmatprep.mubr.msk.bf16.mxu0 %vm8321_vm0, %v11660_v47  ;;  %v2928_v16 = vor.u32 %v2927_v35, %v2923_v3  ;;  %v6013_v27 = vcombine.low %v11744_v63, %v9945_v44 }
 0x1e4   : > { %7390 = vmatmul.mubr.bf16.gmra.mrb[188].mxu1 %v6107_v59  ;;  %v2938_v54 = vor.u32 %v2937_v20, %v2933_v11  ;;  %v10000_v33 = vpop.f32.mrb[84].mxu1  ;;  %v2943_v60 = vrot.slane %v2941_v29, 5 }
 0x1e5   : > { %v1619_v62 = vpop.f32.mrb[108].mxu0  ;;  %7393 = vmatprep.mubr.msk.bf16.mxu1 %vm8321_vm0, %v11660_v47  ;;  %v2929_v42 = vrot.slane %v2928_v16, 4  ;;  %v7195_v35 = vpop.f32.mrb[85].mxu1 }
 0x1e6   : > { %v1732_v41 = vadd.f32 %v1619_v62, %v9747_v32  ;;  %v6963_v25 = vpop.f32.mrb[109].mxu0  ;;  %v2939_v59 = vrot.slane %v2938_v54, 4  ;;  %v10006_v20 = vpop.f32.mrb[86].mxu1 }
 0x1e7   : > { %v1622_v48 = vpop.f32.mrb[110].mxu0  ;;  %v2934_v32 = vsel %vm8512_vm3, %v2929_v42, %v2933_v11  ;;  %v7196_v16 = vpop.f32.mrb[87].mxu1 }
 0x1e8   : > { %v1733_v24 = vadd.f32 %v1622_v48, %v9756_v17  ;;  %v10004_v51 = vadd.f32 %v9600_v37, %v1732_v41  ;;  %v6964_v3 = vpop.f32.mrb[111].mxu0  ;;  %v2944_v44 = vsel %vm8512_vm3, %v2939_v59, %v2943_v60  ;;  %v6014_v41 = vcombine.low %v9949_v52, %v2077_v58 }
 0x1e9   : > { %v6108_v54 = vcombine.low %v2934_v32, %v2944_v44 }
 0x1ea   : > { %v10013_v62 = vadd.f32 %v9612_v1, %v1733_v24  ;;  %7162 = vmatmul.mubr.bf16.gmra.mrb[216].mxu0 %v6013_v27 }
 0x1eb   : > { %7165 = vmatprep.mubr.msk.bf16.mxu0 %vm8321_vm0, %v11660_v47 }
 0x1ec   : > { %7394 = vmatmul.mubr.bf16.gmra.mrb[192].mxu1 %v6108_v54  ;;  %v10019_v25 = vpop.f32.mrb[88].mxu1 }
 0x1ed   : > { %v1627_v37 = vpop.f32.mrb[112].mxu0  ;;  %v7199_v24 = vpop.f32.mrb[89].mxu1 }
 0x1ee   : > { %v1734_v17 = vadd.f32 %v1627_v37, %v9772_v0  ;;  %v6967_v29 = vpop.f32.mrb[113].mxu0  ;;  %v10025_v63 = vpop.f32.mrb[90].mxu1 }
 0x1ef   : > { %v1630_v11 = vpop.f32.mrb[114].mxu0  ;;  %v7200_v0 = vpop.f32.mrb[91].mxu1 }
 0x1f0   : > { %v1735_v60 = vadd.f32 %v1630_v11, %v9781_v2  ;;  %v10023_v1 = vadd.f32 %v9639_v13, %v1734_v17  ;;  %v6968_v21 = vpop.f32.mrb[115].mxu0  ;;  %v8077_v13 = vld [vmem:[%s11532_s2 + $0x200] sm:$0xff]  }
 0x1f1   : > { %v11746_v0 = vld [vmem:[#allocation31_spill] sm:$0xff] }
 0x1f2   : > { %v10028_v27 = vadd.f32 %v9648_v49, %v1735_v60  ;;  %7166 = vmatmul.mubr.bf16.gmra.mrb[220].mxu0 %v6014_v41 }
 0x1f3   : > { %7261 = vmatprep.mubr.msk.bf16.mxu0 %vm8321_vm0, %v11660_v47 }
 0x1f4   : > { %v10036_v42 = vpop.f32.mrb[92].mxu1 }
 0x1f5   : > { %v1635_v52 = vpop.f32.mrb[116].mxu0  ;;  %v7203_v35 = vpop.f32.mrb[93].mxu1 }
 0x1f6   : > { %v1736_v58 = vadd.f32 %v1635_v52, %v9797_v5  ;;  %v6971_v48 = vpop.f32.mrb[117].mxu0  ;;  %v10042_v32 = vpop.f32.mrb[94].mxu1  ;;  %v11745_v5 = vld [vmem:[#allocation30_spill] sm:$0xff] }
 0x1f7   : > { %v1638_v2 = vpop.f32.mrb[118].mxu0  ;;  %v7204_v54 = vpop.f32.mrb[95].mxu1 }
 0x1f8   : > { %v1737_v59 = vadd.f32 %v1638_v2, %v9802_v6  ;;  %v10040_v49 = vadd.f32 %v9678_v61, %v1736_v58  ;;  %v6972_v3 = vpop.f32.mrb[119].mxu0  ;;  %v8078_v6 = vld [vmem:[%s11532_s2 + $0x208] sm:$0xff]  }
 0x1fa   : > { %v10045_v44 = vadd.f32 %v9686_v18, %v1737_v59  ;;  %7262 = vmatmul.mubr.bf16.vlgmr.msra.gmra.mrb[224].mxu0 %v11745_v5  ;;  %v8079_v18 = vld [vmem:[%s11532_s2 + $0x210] sm:$0xff]  }
 0x1fb   : > { %7398 = vmatpush3.bf16.msra.mxu0 %v8077_v13  ;;  %7265 = vmatprep.mubr.msk.bf16.mxu0 %vm8321_vm0, %v11660_v47 }
 0x1fc   : > { %7399 = vmatprep.subr.bf16.mxu0 %v11660_v47  ;;  %v10058_v29 = vpop.f32.mrb[96].mxu1 }
 0x1fd   : > { %v1643_v61 = vpop.f32.mrb[120].mxu0  ;;  %v7207_v21 = vpop.f32.mrb[97].mxu1 }
 0x1fe   : > { %v1738_v16 = vadd.f32 %v1643_v61, %v9815_v55  ;;  %v6975_v37 = vpop.f32.mrb[121].mxu0  ;;  %v10065_v24 = vpop.f32.mrb[98].mxu1 }
 0x1ff   : > { %v1646_v17 = vpop.f32.mrb[122].mxu0  ;;  %7400 = vmatpush3.bf16.msra.mxu0 %v8078_v6  ;;  %v7208_v52 = vpop.f32.mrb[99].mxu1  ;;  %v11747_v6 = vld [vmem:[#allocation32_spill] sm:$0xff] }
 0x200   : > { %v1739_v41 = vadd.f32 %v1646_v17, %v9820_v8  ;;  %v10062_v11 = vadd.f32 %v9700_v12, %v1738_v16  ;;  %v6976_v60 = vpop.f32.mrb[123].mxu0  ;;  %7401 = vmatprep.subr.bf16.mxu0 %v11660_v47  ;;  %v8080_v12 = vld [vmem:[%s11532_s2 + $0x218] sm:$0xff]  }
 0x202   : > { %v10068_v55 = vadd.f32 %v9705_v7, %v1739_v41  ;;  %7266 = vmatmul.mubr.bf16.gmra.mrb[228].mxu0 %v11746_v0  ;;  %v8081_v7 = vld [vmem:[%s11532_s2 + $0x220] sm:$0xff]  }
 0x203   : > { %7269 = vmatprep.mubr.msk.bf16.mxu0 %vm8321_vm0, %v11660_v47  ;;  %7402 = vmatpush3.bf16.msra.mxu0 %v8079_v18 }
 0x204   : > { %7403 = vmatprep.subr.bf16.mxu0 %v11660_v47  ;;  %v10081_v13 = vpop.f32.mrb[100].mxu1 }
 0x205   : > { %v1651_v8 = vpop.f32.mrb[124].mxu0  ;;  %v7211_v5 = vpop.f32.mrb[101].mxu1 }
 0x206   : > { %v1740_v58 = vadd.f32 %v1651_v8, %v9832_v50  ;;  %v6979_v48 = vpop.f32.mrb[125].mxu0  ;;  %v10088_v54 = vpop.f32.mrb[102].mxu1 }
 0x207   : > { %v1654_v2 = vpop.f32.mrb[126].mxu0  ;;  %7404 = vmatpush3.bf16.msra.mxu0 %v8080_v12  ;;  %v7212_v61 = vpop.f32.mrb[103].mxu1  ;;  %v11748_v12 = vld [vmem:[#allocation33_spill] sm:$0xff] }
 0x208   : > { %v1741_v59 = vadd.f32 %v1654_v2, %v9837_v14  ;;  %v10085_v3 = vadd.f32 %v9727_v39, %v1740_v58  ;;  %v6980_v35 = vpop.f32.mrb[127].mxu0  ;;  %7405 = vmatprep.subr.bf16.mxu0 %v11660_v47  ;;  %v8082_v39 = vld [vmem:[%s11532_s2 + $0x228] sm:$0xff]  }
 0x20a   : > { %v10091_v50 = vadd.f32 %v9733_v23, %v1741_v59  ;;  %7270 = vmatmul.mubr.bf16.gmra.mrb[232].mxu0 %v11747_v6  ;;  %v8083_v23 = vld [vmem:[%s11532_s2 + $0x230] sm:$0xff]  }
 0x20b   : > { %7273 = vmatprep.mubr.msk.bf16.mxu0 %vm8321_vm0, %v11660_v47  ;;  %7406 = vmatpush3.bf16.msra.mxu0 %v8081_v7 }
 0x20c   : > { %7407 = vmatprep.subr.bf16.mxu0 %v11660_v47  ;;  %v10104_v18 = vpop.f32.mrb[104].mxu1 }
 0x20d   : > { %v1659_v14 = vpop.f32.mrb[128].mxu0  ;;  %v7215_v0 = vpop.f32.mrb[105].mxu1 }
 0x20e   : > { %v1742_v16 = vadd.f32 %v1659_v14, %v9849_v31  ;;  %v6983_v37 = vpop.f32.mrb[129].mxu0  ;;  %v10111_v52 = vpop.f32.mrb[106].mxu1 }
 0x20f   : > { %v1662_v17 = vpop.f32.mrb[130].mxu0  ;;  %7408 = vmatpush3.bf16.msra.mxu0 %v8082_v39  ;;  %v7216_v8 = vpop.f32.mrb[107].mxu1  ;;  %v11749_v39 = vld [vmem:[#allocation34_spill] sm:$0xff] }
 0x210   : > { %v1743_v41 = vadd.f32 %v1662_v17, %v9854_v36  ;;  %v10108_v60 = vadd.f32 %v9752_v53, %v1742_v16  ;;  %v6984_v21 = vpop.f32.mrb[131].mxu0  ;;  %7409 = vmatprep.subr.bf16.mxu0 %v11660_v47  ;;  %v8084_v53 = vld [vmem:[%s11532_s2 + $0x238] sm:$0xff]  }
 0x212   : > { %v10114_v31 = vadd.f32 %v9758_v22, %v1743_v41  ;;  %7274 = vmatmul.mubr.bf16.gmra.mrb[236].mxu0 %v11748_v12  ;;  %v11750_v12 = vld [vmem:[#allocation35_spill] sm:$0xff] }
 0x213   : > { %7277 = vmatprep.mubr.msk.bf16.mxu0 %vm8321_vm0, %v11660_v47  ;;  %7410 = vmatpush3.bf16.msra.mxu0 %v8083_v23 }
 0x214   : > { %7411 = vmatprep.subr.bf16.mxu0 %v11660_v47  ;;  %v10124_v22 = vpop.f32.mrb[108].mxu1 }
 0x215   : > { %v1667_v36 = vpop.f32.mrb[132].mxu0  ;;  %v7219_v5 = vpop.f32.mrb[109].mxu1 }
 0x216   : > { %v1744_v58 = vadd.f32 %v1667_v36, %v9864_v9  ;;  %v6987_v48 = vpop.f32.mrb[133].mxu0  ;;  %v10130_v6 = vpop.f32.mrb[110].mxu1  ;;  %v11751_v5 = vld [vmem:[#allocation36_spill] sm:$0xff] }
 0x217   : > { %v1670_v2 = vpop.f32.mrb[134].mxu0  ;;  %7412 = vmatpush3.bf16.msra.mxu0 %v8084_v53  ;;  %v7220_v9 = vpop.f32.mrb[111].mxu1 }
 0x218   : > { %v1745_v7 = vadd.f32 %v1670_v2, %v9871_v28  ;;  %v10128_v59 = vadd.f32 %v9777_v15, %v1744_v58  ;;  %v6988_v35 = vpop.f32.mrb[135].mxu0 }
 0x21a   : > { %v10133_v61 = vadd.f32 %v9783_v38, %v1745_v7  ;;  %7278 = vmatmul.mubr.bf16.gmra.mrb[240].mxu0 %v11749_v39 }
 0x21b   : > { %7281 = vmatprep.mubr.msk.bf16.mxu0 %vm8321_vm0, %v11660_v47 }
 0x21c   : > { %v10139_v15 = vpop.f32.mrb[112].mxu1 }
 0x21d   : > { %v1675_v14 = vpop.f32.mrb[136].mxu0  ;;  %v7223_v41 = vpop.f32.mrb[113].mxu1 }
 0x21e   : > { %v1746_v16 = vadd.f32 %v1675_v14, %v9881_v30  ;;  %v6991_v28 = vpop.f32.mrb[137].mxu0  ;;  %v10145_v21 = vpop.f32.mrb[114].mxu1 }
 0x21f   : > { %v1678_v37 = vpop.f32.mrb[138].mxu0  ;;  %v7224_v8 = vpop.f32.mrb[115].mxu1 }
 0x220   : > { %v1747_v17 = vadd.f32 %v1678_v37, %v9888_v45  ;;  %v10143_v23 = vadd.f32 %v9799_v43, %v1746_v16  ;;  %v6992_v38 = vpop.f32.mrb[139].mxu0  ;;  %v11752_v16 = vld [vmem:[#allocation26_spill] sm:$0xff] }
 0x221   : > { %v11753_v37 = vld [vmem:[#allocation42_spill] sm:$0xff] }
 0x222   : > { %v10148_v0 = vadd.f32 %v9805_v46, %v1747_v17  ;;  %7282 = vmatmul.mubr.bf16.gmra.mrb[244].mxu0 %v11750_v12  ;;  %v11754_v12 = vld [vmem:[#allocation44_spill] sm:$0xff] }
 0x223   : > { %7285 = vmatprep.mubr.msk.bf16.mxu0 %vm8321_vm0, %v11660_v47 }
 0x224   : > { %v10154_v43 = vpop.f32.mrb[116].mxu1 }
 0x225   : > { %v1683_v30 = vpop.f32.mrb[140].mxu0  ;;  %v7227_v2 = vpop.f32.mrb[117].mxu1 }
 0x226   : > { %v1748_v53 = vadd.f32 %v1683_v30, %v9908_v4  ;;  %v6995_v45 = vpop.f32.mrb[141].mxu0  ;;  %v10160_v7 = vpop.f32.mrb[118].mxu1  ;;  %v11755_v30 = vld [vmem:[#allocation37_spill] sm:$0xff] }
 0x227   : > { %v1686_v36 = vpop.f32.mrb[142].mxu0  ;;  %v7228_v39 = vpop.f32.mrb[119].mxu1  ;;  %v11756_v45 = vld [vmem:[#allocation59_spill] sm:$0xff] }
 0x228   : > { %v1749_v58 = vadd.f32 %v1686_v36, %v9915_v19  ;;  %v10158_v48 = vadd.f32 %v9817_v57, %v1748_v53  ;;  %v6996_v46 = vpop.f32.mrb[143].mxu0 }
 0x22a   : > { %v10163_v35 = vadd.f32 %v9822_v56, %v1749_v58  ;;  %7286 = vmatmul.mubr.bf16.gmra.mrb[248].mxu0 %v11751_v5  ;;  %v11758_v5 = vld [vmem:[#allocation61_spill] sm:$0xff] }
 0x22b   : > { %7289 = vmatprep.mubr.msk.bf16.mxu0 %vm8321_vm0, %v11660_v47 }
 0x22c   : > { %v10169_v57 = vpop.f32.mrb[120].mxu1 }
 0x22d   : > { %v1691_v4 = vpop.f32.mrb[144].mxu0  ;;  %v7231_v38 = vpop.f32.mrb[121].mxu1 }
 0x22e   : > { %v1750_v9 = vadd.f32 %v1691_v4, %v9930_v40  ;;  %v6999_v19 = vpop.f32.mrb[145].mxu0  ;;  %v10175_v41 = vpop.f32.mrb[122].mxu1  ;;  %v11759_v4 = vld [vmem:[#allocation17_spill] sm:$0xff] }
 0x22f   : > { %v1694_v14 = vpop.f32.mrb[146].mxu0  ;;  %v7232_v53 = vpop.f32.mrb[123].mxu1 }
 0x230   : > { %v1751_v28 = vadd.f32 %v1694_v14, %v11752_v16  ;;  %v10173_v17 = vadd.f32 %v11753_v37, %v1750_v9  ;;  %v7000_v56 = vpop.f32.mrb[147].mxu0 }
 0x231   : > { %v11762_v56 = vld [vmem:[#allocation8_spill] sm:$0xff] }
 0x232   : > { %v10178_v8 = vadd.f32 %v11754_v12, %v1751_v28  ;;  %7290 = vmatmul.mubr.bf16.gmra.mrb[252].mxu0 %v11755_v30  ;;  %v11761_v28 = vld [vmem:[#allocation13_spill] sm:$0xff]  ;;  %v11763_v30 = vld [vmem:[#allocation63_spill] sm:$0xff] }
 0x233   : > { %7293 = vmatprep.mubr.msk.bf16.mxu0 %vm8321_vm0, %v11660_v47 }
 0x235   : > { %v1699_v40 = vpop.f32.mrb[148].mxu0  ;;  %v10184_v2 = vpop.f32.mrb[124].mxu1 }
 0x236   : > { %v1752_v36 = vadd.f32 %v1699_v40, %v11756_v45  ;;  %v7003_v58 = vpop.f32.mrb[149].mxu0  ;;  %11757 = vst [vmem:[#allocation22_spill] sm:$0xff] %v10184_v2  ;;  %v7235_v14 = vpop.f32.mrb[125].mxu1 }
 0x237   : > { %v1702_v46 = vpop.f32.mrb[150].mxu0  ;;  %v10190_v16 = vpop.f32.mrb[126].mxu1  ;;  %v11765_v58 = vld [vmem:[#allocation65_spill] sm:$0xff] }
 0x238   : > { %v1753_v39 = vadd.f32 %v1702_v46, %v11758_v5  ;;  %v10188_v9 = vadd.f32 %v11759_v4, %v1752_v36  ;;  %v7004_v19 = vpop.f32.mrb[151].mxu0  ;;  %11760 = vst [vmem:[#allocation56_spill] sm:$0xff] %v10190_v16  ;;  %v7236_v38 = vpop.f32.mrb[127].mxu1  ;;  %v11766_v5 = vld [vmem:[#allocation12_spill] sm:$0xff]  ;;  %v11778_v16 = vld [vmem:[#allocation10_spill] sm:$0xff] }
 0x239   : > { %v11769_v38 = vld [vmem:[#allocation9_spill] sm:$0xff] }
 0x23a   : > { %v10193_v37 = vadd.f32 %v11761_v28, %v1753_v39  ;;  %7294 = vmatmul.mubr.bf16.gmra.mrb[0].mxu0 %v11762_v56  ;;  %v11768_v28 = vld [vmem:[#allocation20_spill] sm:$0xff] }
 0x23b   : > { %7297 = vmatprep.mubr.msk.bf16.mxu0 %vm8321_vm0, %v11660_v47 }
 0x23d   : > { %v1707_v12 = vpop.f32.mrb[152].mxu0  ;;  %v10199_v36 = vpop.f32.mrb[128].mxu1 }
 0x23e   : > { %v1754_v53 = vadd.f32 %v1707_v12, %v11763_v30  ;;  %v7007_v40 = vpop.f32.mrb[153].mxu0  ;;  %11764 = vst [vmem:[#allocation7_spill] sm:$0xff] %v10199_v36  ;;  %v7239_v19 = vpop.f32.mrb[129].mxu1  ;;  %v11770_v30 = vld [vmem:[#allocation68_spill] sm:$0xff] }
 0x23f   : > { %v1710_v45 = vpop.f32.mrb[154].mxu0  ;;  %v10205_v14 = vpop.f32.mrb[130].mxu1  ;;  %v11773_v19 = vld [vmem:[#allocation46_spill] sm:$0xff] }
 0x240   : > { %v1755_v46 = vadd.f32 %v1710_v45, %v11765_v58  ;;  %v10203_v4 = vadd.f32 %v11766_v5, %v1754_v53  ;;  %v7008_v39 = vpop.f32.mrb[155].mxu0  ;;  %11767 = vst [vmem:[#allocation27_spill] sm:$0xff] %v10205_v14  ;;  %v7240_v10 = vpop.f32.mrb[131].mxu1  ;;  %v11772_v5 = vld [vmem:[#allocation70_spill] sm:$0xff] }
 0x241   : > { %v11776_v10 = vld [vmem:[#allocation48_spill] sm:$0xff] }
 0x242   : > { %v10208_v56 = vadd.f32 %v11768_v28, %v1755_v46  ;;  %7298 = vmatmul.mubr.bf16.gmra.mrb[4].mxu0 %v11769_v38 }
 0x243   : > { %7301 = vmatprep.mubr.msk.bf16.mxu0 %vm8321_vm0, %v11660_v47 }
 0x245   : > { %v1715_v12 = vpop.f32.mrb[156].mxu0 }
 0x246   : > { %v1756_v40 = vadd.f32 %v1715_v12, %v11770_v30  ;;  %v7011_v45 = vpop.f32.mrb[157].mxu0  ;;  %v10214_v53 = vpop.f32.mrb[132].mxu1  ;;  %v11779_v30 = vld [vmem:[#allocation71_spill] sm:$0xff] }
 0x247   : > { %v1718_v58 = vpop.f32.mrb[158].mxu0  ;;  %11771 = vst [vmem:[#allocation25_spill] sm:$0xff] %v10214_v53  ;;  %v7243_v28 = vpop.f32.mrb[133].mxu1 }
 0x248   : > { %v1757_v39 = vadd.f32 %v1718_v58, %v11772_v5  ;;  %v10218_v14 = vadd.f32 %v11773_v19, %v1756_v40  ;;  %v7012_v46 = vpop.f32.mrb[159].mxu0  ;;  %v10220_v36 = vpop.f32.mrb[134].mxu1  ;;  %v11781_v19 = vld [vmem:[#allocation72_spill] sm:$0xff]  ;;  %v11782_v28 = vld [vmem:[#allocation23_spill] sm:$0xff] }
 0x249   : > { %11775 = vst [vmem:[#allocation58_spill] sm:$0xff] %v10220_v36  ;;  %v7244_v2 = vpop.f32.mrb[135].mxu1 }
 0x24a   : > { %11774 = vst [vmem:[#allocation57_spill] sm:$0xff] %v10218_v14  ;;  %v10223_v38 = vadd.f32 %v11776_v10, %v1757_v39  ;;  %7302 = vmatmul.mubr.bf16.gmra.mrb[8].mxu0 %v11778_v16  ;;  %v11784_v2 = vld [vmem:[#allocation18_spill] sm:$0xff] }
 0x24b   : > { %7305 = vmatprep.mubr.msk.bf16.mxu0 %vm8321_vm0, %v11660_v47 }
 0x24c   : > { %11777 = vst [vmem:[#allocation28_spill] sm:$0xff] %v10223_v38  ;;  %v11786_v38 = vld [vmem:[#allocation11_spill] sm:$0xff] }
 0x24d   : > { %v1723_v12 = vpop.f32.mrb[160].mxu0 }
 0x24e   : > { %v1758_v45 = vadd.f32 %v1723_v12, %v11779_v30  ;;  %v7015_v58 = vpop.f32.mrb[161].mxu0  ;;  %v10229_v40 = vpop.f32.mrb[136].mxu1  ;;  %v11787_v30 = vld [vmem:[#allocation14_spill] sm:$0xff] }
 0x24f   : > { %v1726_v5 = vpop.f32.mrb[162].mxu0  ;;  %11780 = vst [vmem:[#allocation30_spill] sm:$0xff] %v10229_v40  ;;  %v7339_v10 = vpop.f32.mrb[137].mxu1  ;;  %v11788_v58 = vld [vmem:[#allocation15_spill] sm:$0xff]  ;;  %v11792_v40 = vld [vmem:[#allocation52_spill] sm:$0xff] }
 0x250   : > { %v1759_v46 = vadd.f32 %v1726_v5, %v11781_v19  ;;  %v10233_v36 = vadd.f32 %v11782_v28, %v1758_v45  ;;  %v7016_v39 = vpop.f32.mrb[163].mxu0  ;;  %v10235_v53 = vpop.f32.mrb[138].mxu1  ;;  %v6079_v5 = vcombine.low %v11788_v58, %v11787_v30  ;;  %v11794_v58 = vld [vmem:[#allocation49_spill] sm:$0xff] }
 0x251   : > { %11783 = vst [vmem:[#allocation31_spill] sm:$0xff] %v10235_v53  ;;  %v7340_v14 = vpop.f32.mrb[139].mxu1 }
 0x252   : > { %v10238_v16 = vadd.f32 %v11784_v2, %v1759_v46  ;;  %7306 = vmatmul.mubr.bf16.gmra.mrb[12].mxu0 %v11786_v38  ;;  %v11790_v46 = vld [vmem:[#allocation51_spill] sm:$0xff] }
 0x253   : > { %7309 = vmatprep.mubr.msk.bf16.mxu0 %vm8321_vm0, %v11660_v47 }
 0x254   : > { %11785 = vst [vmem:[#allocation32_spill] sm:$0xff] %v10238_v16 }
 0x255   : > { %v2210_v12 = vpop.f32.mrb[164].mxu0 }
 0x256   : > { %v2329_v45 = vadd.f32 %v2210_v12, %v9975_v26  ;;  %v7111_v19 = vpop.f32.mrb[165].mxu0  ;;  %v11793_v12 = vld [vmem:[#allocation16_spill] sm:$0xff] }
 0x257   : > { %v2213_v28 = vpop.f32.mrb[166].mxu0  ;;  %v10246_v39 = vpop.f32.mrb[140].mxu1  ;;  %v6080_v19 = vcombine.low %v11794_v58, %v11793_v12 }
 0x258   : > { %11789 = vst [vmem:[#allocation33_spill] sm:$0xff] %v10246_v39  ;;  %v2330_v10 = vadd.f32 %v2213_v28, %v9987_v34  ;;  %v10250_v2 = vadd.f32 %v11790_v46, %v2329_v45  ;;  %v7112_v38 = vpop.f32.mrb[167].mxu0  ;;  %v7343_v14 = vpop.f32.mrb[141].mxu1 }
 0x259   : > { %v10252_v53 = vpop.f32.mrb[142].mxu1  ;;  %v11796_v14 = vld [vmem:[#allocation54_spill] sm:$0xff] }
 0x25a   : > { %11791 = vst [vmem:[#allocation34_spill] sm:$0xff] %v10252_v53  ;;  %v10255_v16 = vadd.f32 %v11792_v40, %v2330_v10  ;;  %7310 = vmatmul.mubr.bf16.gmra.mrb[16].mxu0 %v6079_v5  ;;  %v7344_v30 = vpop.f32.mrb[143].mxu1  ;;  %v11798_v53 = vld [vmem:[#allocation29_spill] sm:$0xff] }
 0x25b   : > { %7313 = vmatprep.mubr.msk.bf16.mxu0 %vm8321_vm0, %v11660_v47 }
 0x25d   : > { %v2218_v26 = vpop.f32.mrb[168].mxu0 }
 0x25e   : > { %v2331_v34 = vadd.f32 %v2218_v26, %v10004_v51  ;;  %v7115_v45 = vpop.f32.mrb[169].mxu0  ;;  %v11799_v26 = vld [vmem:[#allocation19_spill] sm:$0xff] }
 0x25f   : > { %v2221_v28 = vpop.f32.mrb[170].mxu0  ;;  %v10262_v46 = vpop.f32.mrb[144].mxu1  ;;  %v11800_v45 = vld [vmem:[#allocation21_spill] sm:$0xff] }
 0x260   : > { %11795 = vst [vmem:[#allocation35_spill] sm:$0xff] %v10262_v46  ;;  %v2332_v38 = vadd.f32 %v2221_v28, %v10013_v62  ;;  %v10266_v40 = vadd.f32 %v11796_v14, %v2331_v34  ;;  %v7116_v5 = vpop.f32.mrb[171].mxu0  ;;  %v7347_v10 = vpop.f32.mrb[145].mxu1  ;;  %v6081_v46 = vcombine.low %v11800_v45, %v11799_v26 }
 0x261   : > { %v10268_v30 = vpop.f32.mrb[146].mxu1 }
 0x262   : > { %11797 = vst [vmem:[#allocation36_spill] sm:$0xff] %v10268_v30  ;;  %v10271_v39 = vadd.f32 %v11798_v53, %v2332_v38  ;;  %7314 = vmatmul.mubr.bf16.gmra.mrb[20].mxu0 %v6080_v19  ;;  %v7348_v58 = vpop.f32.mrb[147].mxu1 }
 0x263   : > { %7317 = vmatprep.mubr.msk.bf16.mxu0 %vm8321_vm0, %v11660_v47 }
 0x265   : > { %v2226_v51 = vpop.f32.mrb[172].mxu0 }
 0x266   : > { %v2333_v62 = vadd.f32 %v2226_v51, %v10023_v1  ;;  %v7119_v34 = vpop.f32.mrb[173].mxu0 }
 0x267   : > { %v2229_v28 = vpop.f32.mrb[174].mxu0  ;;  %v10278_v14 = vpop.f32.mrb[148].mxu1 }
 0x268   : > { %v2334_v5 = vadd.f32 %v2229_v28, %v10028_v27  ;;  %v10282_v53 = vadd.f32 %v10000_v33, %v2333_v62  ;;  %v7120_v19 = vpop.f32.mrb[175].mxu0  ;;  %v7351_v38 = vpop.f32.mrb[149].mxu1 }
 0x269   : > { %v10284_v10 = vpop.f32.mrb[150].mxu1 }
 0x26a   : > { %v10287_v58 = vadd.f32 %v10006_v20, %v2334_v5  ;;  %7318 = vmatmul.mubr.bf16.gmra.mrb[24].mxu0 %v6081_v46  ;;  %v7352_v30 = vpop.f32.mrb[151].mxu1 }
 0x26b   : > { %7413 = vmatprep.mubr.msk.bf16.mxu0 %vm8321_vm0, %v11660_v47  ;;  %v11801_v30 = vld [vmem:[#allocation39_spill] sm:$0xff] }
 0x26d   : > { %v2234_v1 = vpop.f32.mrb[176].mxu0 }
 0x26e   : > { %v2335_v51 = vadd.f32 %v2234_v1, %v10040_v49  ;;  %v7123_v34 = vpop.f32.mrb[177].mxu0 }
 0x26f   : > { %v2237_v27 = vpop.f32.mrb[178].mxu0  ;;  %v10292_v28 = vpop.f32.mrb[152].mxu1 }
 0x270   : > { %v2336_v33 = vadd.f32 %v2237_v27, %v10045_v44  ;;  %v10296_v62 = vadd.f32 %v10019_v25, %v2335_v51  ;;  %v7124_v19 = vpop.f32.mrb[179].mxu0  ;;  %v7355_v20 = vpop.f32.mrb[153].mxu1 }
 0x271   : > { %v10298_v5 = vpop.f32.mrb[154].mxu1 }
 0x272   : > { %v10301_v46 = vadd.f32 %v10025_v63, %v2336_v33  ;;  %7414 = vmatmul.mubr.bf16.vlgmr.msra.gmra.mrb[28].mxu0 %v11801_v30  ;;  %v7356_v38 = vpop.f32.mrb[155].mxu1  ;;  %v11802_v30 = vld [vmem:[#allocation40_spill] sm:$0xff] }
 0x273   : > { %7417 = vmatprep.mubr.msk.bf16.mxu0 %vm8321_vm0, %v11660_v47 }
 0x275   : > { %v2242_v49 = vpop.f32.mrb[180].mxu0 }
 0x276   : > { %v2337_v1 = vadd.f32 %v2242_v49, %v10062_v11  ;;  %v7127_v44 = vpop.f32.mrb[181].mxu0 }
 0x277   : > { %v2245_v34 = vpop.f32.mrb[182].mxu0  ;;  %v10307_v25 = vpop.f32.mrb[156].mxu1 }
 0x278   : > { %v2338_v51 = vadd.f32 %v2245_v34, %v10068_v55  ;;  %v10311_v27 = vadd.f32 %v10036_v42, %v2337_v1  ;;  %v7128_v63 = vpop.f32.mrb[183].mxu0  ;;  %v7359_v33 = vpop.f32.mrb[157].mxu1 }
 0x279   : > { %v10313_v19 = vpop.f32.mrb[158].mxu1 }
 0x27a   : > { %v10316_v20 = vadd.f32 %v10042_v32, %v2338_v51  ;;  %7418 = vmatmul.mubr.bf16.gmra.mrb[32].mxu0 %v11802_v30  ;;  %v7360_v38 = vpop.f32.mrb[159].mxu1  ;;  %v11803_v30 = vld [vmem:[#allocation41_spill] sm:$0xff] }
 0x27b   : > { %7421 = vmatprep.mubr.msk.bf16.mxu0 %vm8321_vm0, %v11660_v47 }
 0x27d   : > { %v2250_v11 = vpop.f32.mrb[184].mxu0 }
 0x27e   : > { %v2339_v49 = vadd.f32 %v2250_v11, %v10085_v3  ;;  %v7131_v55 = vpop.f32.mrb[185].mxu0 }
 0x27f   : > { %v2253_v44 = vpop.f32.mrb[186].mxu0  ;;  %v10322_v42 = vpop.f32.mrb[160].mxu1 }
 0x280   : > { %v2340_v1 = vadd.f32 %v2253_v44, %v10091_v50  ;;  %v10326_v34 = vadd.f32 %v10058_v29, %v2339_v49  ;;  %v7132_v32 = vpop.f32.mrb[187].mxu0  ;;  %v7363_v51 = vpop.f32.mrb[161].mxu1 }
 0x281   : > { %v10328_v63 = vpop.f32.mrb[162].mxu1 }
 0x282   : > { %v10331_v33 = vadd.f32 %v10065_v24, %v2340_v1  ;;  %7422 = vmatmul.mubr.bf16.gmra.mrb[36].mxu0 %v11803_v30  ;;  %v7364_v38 = vpop.f32.mrb[163].mxu1  ;;  %v11804_v30 = vld [vmem:[#allocation43_spill] sm:$0xff] }
 0x283   : > { %7425 = vmatprep.mubr.msk.bf16.mxu0 %vm8321_vm0, %v11660_v47 }
 0x285   : > { %v2258_v3 = vpop.f32.mrb[188].mxu0 }
 0x286   : > { %v2341_v11 = vadd.f32 %v2258_v3, %v10108_v60  ;;  %v7135_v50 = vpop.f32.mrb[189].mxu0 }
 0x287   : > { %v2261_v55 = vpop.f32.mrb[190].mxu0  ;;  %v10337_v29 = vpop.f32.mrb[164].mxu1 }
 0x288   : > { %v2342_v49 = vadd.f32 %v2261_v55, %v10114_v31  ;;  %v10341_v44 = vadd.f32 %v10081_v13, %v2341_v11  ;;  %v7136_v24 = vpop.f32.mrb[191].mxu0  ;;  %v7367_v1 = vpop.f32.mrb[165].mxu1 }
 0x289   : > { %v10343_v32 = vpop.f32.mrb[166].mxu1 }
 0x28a   : > { %v10346_v51 = vadd.f32 %v10088_v54, %v2342_v49  ;;  %7426 = vmatmul.mubr.bf16.gmra.mrb[40].mxu0 %v11804_v30  ;;  %v7368_v38 = vpop.f32.mrb[167].mxu1  ;;  %v11805_v30 = vld [vmem:[#allocation45_spill] sm:$0xff] }
 0x28b   : > { %7429 = vmatprep.mubr.msk.bf16.mxu0 %vm8321_vm0, %v11660_v47 }
 0x28d   : > { %v2266_v60 = vpop.f32.mrb[192].mxu0 }
 0x28e   : > { %v2343_v3 = vadd.f32 %v2266_v60, %v10128_v59  ;;  %v7139_v31 = vpop.f32.mrb[193].mxu0 }
 0x28f   : > { %v2269_v50 = vpop.f32.mrb[194].mxu0  ;;  %v10352_v13 = vpop.f32.mrb[168].mxu1 }
 0x290   : > { %v2344_v11 = vadd.f32 %v2269_v50, %v10133_v61  ;;  %v10356_v55 = vadd.f32 %v10104_v18, %v2343_v3  ;;  %v7140_v54 = vpop.f32.mrb[195].mxu0  ;;  %v7371_v49 = vpop.f32.mrb[169].mxu1 }
 0x291   : > { %v10358_v24 = vpop.f32.mrb[170].mxu1 }
 0x292   : > { %v10361_v1 = vadd.f32 %v10111_v52, %v2344_v11  ;;  %7430 = vmatmul.mubr.bf16.gmra.mrb[44].mxu0 %v11805_v30  ;;  %v7372_v38 = vpop.f32.mrb[171].mxu1  ;;  %v11806_v30 = vld [vmem:[#allocation47_spill] sm:$0xff] }
 0x293   : > { %7433 = vmatprep.mubr.msk.bf16.mxu0 %vm8321_vm0, %v11660_v47 }
 0x295   : > { %v2274_v59 = vpop.f32.mrb[196].mxu0 }
 0x296   : > { %v2345_v60 = vadd.f32 %v2274_v59, %v10143_v23  ;;  %v7143_v61 = vpop.f32.mrb[197].mxu0 }
 0x297   : > { %v2277_v31 = vpop.f32.mrb[198].mxu0  ;;  %v10367_v18 = vpop.f32.mrb[172].mxu1 }
 0x298   : > { %v2346_v3 = vadd.f32 %v2277_v31, %v10148_v0  ;;  %v10371_v50 = vadd.f32 %v10124_v22, %v2345_v60  ;;  %v7144_v52 = vpop.f32.mrb[199].mxu0  ;;  %v7375_v11 = vpop.f32.mrb[173].mxu1  ;;  %v8085_v22 = vld [vmem:[%s11534_s4 + $0x40] sm:$0xff]  }
 0x299   : > { %v10373_v54 = vpop.f32.mrb[174].mxu1  ;;  %7473 = vmatprep.subr.bf16.mxu1 %v8085_v22 }
 0x29a   : > { %v10376_v49 = vadd.f32 %v10130_v6, %v2346_v3  ;;  %7434 = vmatmul.mubr.bf16.gmra.mrb[48].mxu0 %v11806_v30  ;;  %v7376_v38 = vpop.f32.mrb[175].mxu1  ;;  %7474 = vmatpush3.bf16.msra.mxu1 %v8085_v22  ;;  %v11807_v30 = vld [vmem:[#allocation50_spill] sm:$0xff] }
 0x29b   : > { %7437 = vmatprep.mubr.msk.bf16.mxu0 %vm8321_vm0, %v11660_v47 }
 0x29d   : > { %v2282_v23 = vpop.f32.mrb[200].mxu0 }
 0x29e   : > { %v2347_v59 = vadd.f32 %v2282_v23, %v10158_v48  ;;  %v7147_v0 = vpop.f32.mrb[201].mxu0 }
 0x29f   : > { %v2285_v60 = vpop.f32.mrb[202].mxu0  ;;  %v10385_v61 = vpop.f32.mrb[176].mxu1 }
 0x2a0   : > { %v2348_v6 = vadd.f32 %v2285_v60, %v10163_v35  ;;  %v10389_v31 = vadd.f32 %v10139_v15, %v2347_v59  ;;  %v7148_v3 = vpop.f32.mrb[203].mxu0  ;;  %v7379_v52 = vpop.f32.mrb[177].mxu1 }
 0x2a1   : > { %v10391_v11 = vpop.f32.mrb[178].mxu1 }
 0x2a2   : > { %v10394_v48 = vadd.f32 %v10145_v21, %v2348_v6  ;;  %7438 = vmatmul.mubr.bf16.gmra.mrb[52].mxu0 %v11807_v30  ;;  %v7380_v38 = vpop.f32.mrb[179].mxu1  ;;  %v11808_v30 = vld [vmem:[#allocation53_spill] sm:$0xff] }
 0x2a3   : > { %7441 = vmatprep.mubr.msk.bf16.mxu0 %vm8321_vm0, %v11660_v47 }
 0x2a5   : > { %v2290_v23 = vpop.f32.mrb[204].mxu0 }
 0x2a6   : > { %v2349_v35 = vadd.f32 %v2290_v23, %v10173_v17  ;;  %v7151_v15 = vpop.f32.mrb[205].mxu0 }
 0x2a7   : > { %v2293_v59 = vpop.f32.mrb[206].mxu0  ;;  %v10400_v0 = vpop.f32.mrb[180].mxu1 }
 0x2a8   : > { %v2350_v22 = vadd.f32 %v2293_v59, %v10178_v8  ;;  %v10404_v60 = vadd.f32 %v10154_v43, %v2349_v35  ;;  %v7152_v21 = vpop.f32.mrb[207].mxu0  ;;  %v7383_v6 = vpop.f32.mrb[181].mxu1  ;;  %v8086_v43 = vld [vmem:[%s11534_s4 + $0x48] sm:$0xff]  }
 0x2a9   : > { %v10406_v3 = vpop.f32.mrb[182].mxu1  ;;  %7475 = vmatprep.subr.bf16.mxu1 %v8086_v43 }
 0x2aa   : > { %v10409_v52 = vadd.f32 %v10160_v7, %v2350_v22  ;;  %7442 = vmatmul.mubr.bf16.gmra.mrb[56].mxu0 %v11808_v30  ;;  %v7384_v38 = vpop.f32.mrb[183].mxu1  ;;  %7476 = vmatpush3.bf16.msra.mxu1 %v8086_v43  ;;  %v11811_v30 = vld [vmem:[#allocation55_spill] sm:$0xff] }
 0x2ab   : > { %7445 = vmatprep.mubr.msk.bf16.mxu0 %vm8321_vm0, %v11660_v47 }
 0x2ad   : > { %v2298_v17 = vpop.f32.mrb[208].mxu0 }
 0x2ae   : > { %v2351_v23 = vadd.f32 %v2298_v17, %v10188_v9  ;;  %v7155_v8 = vpop.f32.mrb[209].mxu0 }
 0x2af   : > { %v2301_v35 = vpop.f32.mrb[210].mxu0  ;;  %v10418_v15 = vpop.f32.mrb[184].mxu1 }
 0x2b0   : > { %11809 = vst [vmem:[#allocation26_spill] sm:$0xff] %v10418_v15  ;;  %v2352_v7 = vadd.f32 %v2301_v35, %v10193_v37  ;;  %v10422_v59 = vadd.f32 %v10169_v57, %v2351_v23  ;;  %v7156_v22 = vpop.f32.mrb[211].mxu0  ;;  %v7387_v21 = vpop.f32.mrb[185].mxu1  ;;  %v11813_v35 = vld [vmem:[#allocation22_spill] sm:$0xff]  ;;  %v11824_v15 = vld [vmem:[#allocation27_spill] sm:$0xff] }
 0x2b1   : > { %v10424_v6 = vpop.f32.mrb[186].mxu1 }
 0x2b2   : > { %11810 = vst [vmem:[#allocation42_spill] sm:$0xff] %v10424_v6  ;;  %v10427_v9 = vadd.f32 %v10175_v41, %v2352_v7  ;;  %7446 = vmatmul.mubr.bf16.gmra.mrb[60].mxu0 %v11811_v30  ;;  %v7388_v38 = vpop.f32.mrb[187].mxu1  ;;  %v11816_v30 = vld [vmem:[#allocation56_spill] sm:$0xff] }
 0x2b3   : > { %7449 = vmatprep.mubr.msk.bf16.mxu0 %vm8321_vm0, %v11660_v47  ;;  %v11818_v6 = vld [vmem:[#allocation60_spill] sm:$0xff] }
 0x2b5   : > { %v2306_v17 = vpop.f32.mrb[212].mxu0 }
 0x2b6   : > { %v2353_v37 = vadd.f32 %v2306_v17, %v10203_v4  ;;  %v7159_v57 = vpop.f32.mrb[213].mxu0  ;;  %v8087_v4 = vld [vmem:[%s11534_s4 + $0x50] sm:$0xff]  }
 0x2b7   : > { %v2309_v23 = vpop.f32.mrb[214].mxu0  ;;  %v10433_v8 = vpop.f32.mrb[188].mxu1  ;;  %7477 = vmatprep.subr.bf16.mxu1 %v8087_v4 }
 0x2b8   : > { %11812 = vst [vmem:[#allocation44_spill] sm:$0xff] %v10433_v8  ;;  %v2354_v43 = vadd.f32 %v2309_v23, %v10208_v56  ;;  %v10437_v22 = vadd.f32 %v11813_v35, %v2353_v37  ;;  %v7160_v41 = vpop.f32.mrb[215].mxu0  ;;  %v7391_v7 = vpop.f32.mrb[189].mxu1  ;;  %7478 = vmatpush3.bf16.msra.mxu1 %v8087_v4  ;;  %v11819_v37 = vld [vmem:[#allocation57_spill] sm:$0xff] }
 0x2b9   : > { %v10439_v21 = vpop.f32.mrb[190].mxu1 }
 0x2ba   : > { %11814 = vst [vmem:[#allocation37_spill] sm:$0xff] %v10437_v22  ;;  %11815 = vst [vmem:[#allocation59_spill] sm:$0xff] %v10439_v21  ;;  %v10442_v38 = vadd.f32 %v11816_v30, %v2354_v43  ;;  %7450 = vmatmul.mubr.bf16.gmra.mrb[64].mxu0 %v11818_v6  ;;  %v7392_v17 = vpop.f32.mrb[191].mxu1  ;;  %v11821_v43 = vld [vmem:[#allocation28_spill] sm:$0xff]  ;;  %v11822_v6 = vld [vmem:[#allocation7_spill] sm:$0xff] }
 0x2bb   : > { %7453 = vmatprep.mubr.msk.bf16.mxu0 %vm8321_vm0, %v11660_v47  ;;  %v11825_v22 = vld [vmem:[#allocation64_spill] sm:$0xff] }
 0x2bc   : > { %11817 = vst [vmem:[#allocation61_spill] sm:$0xff] %v10442_v38 }
 0x2bd   : > { %v2314_v56 = vpop.f32.mrb[216].mxu0 }
 0x2be   : > { %v2355_v57 = vadd.f32 %v2314_v56, %v11819_v37  ;;  %v7163_v23 = vpop.f32.mrb[217].mxu0 }
 0x2bf   : > { %v2317_v35 = vpop.f32.mrb[218].mxu0  ;;  %v10451_v41 = vpop.f32.mrb[192].mxu1 }
 0x2c0   : > { %11820 = vst [vmem:[#allocation17_spill] sm:$0xff] %v10451_v41  ;;  %v2356_v7 = vadd.f32 %v2317_v35, %v11821_v43  ;;  %v10455_v30 = vadd.f32 %v11822_v6, %v2355_v57  ;;  %v7164_v21 = vpop.f32.mrb[219].mxu0  ;;  %v7395_v8 = vpop.f32.mrb[193].mxu1  ;;  %v11826_v57 = vld [vmem:[#allocation32_spill] sm:$0xff]  ;;  %v3208_v41 = vrot.slane %v11799_v26, 5 }
 0x2c1   : > { %v10457_v17 = vpop.f32.mrb[194].mxu1  ;;  %v11827_v21 = vld [vmem:[#allocation25_spill] sm:$0xff] }
 0x2c2   : > { %11823 = vst [vmem:[#allocation13_spill] sm:$0xff] %v10457_v17  ;;  %v10460_v38 = vadd.f32 %v11824_v15, %v2356_v7  ;;  %7454 = vmatmul.mubr.bf16.gmra.mrb[68].mxu0 %v11825_v22  ;;  %v7396_v4 = vpop.f32.mrb[195].mxu1  ;;  %v11828_v17 = vld [vmem:[#allocation58_spill] sm:$0xff]  ;;  %v11829_v7 = vld [vmem:[#allocation69_spill] sm:$0xff] }
 0x2c3   : > { %7457 = vmatprep.mubr.msk.bf16.mxu0 %vm8321_vm0, %v11660_v47 }
 0x2c5   : > { %v2322_v56 = vpop.f32.mrb[220].mxu0 }
 0x2c6   : > { %v2357_v37 = vadd.f32 %v2322_v56, %v10233_v36  ;;  %v7167_v23 = vpop.f32.mrb[221].mxu0  ;;  %v6117_v56 = vrot.slane %v11793_v12, 9 }
 0x2c7   : > { %v2325_v35 = vpop.f32.mrb[222].mxu0  ;;  %v3205_v23 = vrot.slane %v11800_v45, 5  ;;  %v11842_v45 = vld [vmem:[#allocation35_spill] sm:$0xff] }
 0x2c8   : > { %v2358_v43 = vadd.f32 %v2325_v35, %v11826_v57  ;;  %v10468_v8 = vadd.f32 %v11827_v21, %v2357_v37  ;;  %v7168_v6 = vpop.f32.mrb[223].mxu0  ;;  %v8088_v37 = vld [vmem:[%s11534_s4 + $0x58] sm:$0xff]  }
 0x2c9   : > { %v11830_v57 = vld [vmem:[#allocation30_spill] sm:$0xff]  ;;  %7479 = vmatprep.subr.bf16.mxu1 %v8088_v37  ;;  %v11832_v6 = vld [vmem:[#allocation31_spill] sm:$0xff] }
 0x2ca   : > { %v10471_v15 = vadd.f32 %v11828_v17, %v2358_v43  ;;  %7458 = vmatmul.mubr.bf16.gmra.mrb[72].mxu0 %v11829_v7  ;;  %7480 = vmatpush3.bf16.msra.mxu1 %v8088_v37  ;;  %v3207_v37 = vrot.slane %v3205_v23, 4 }
 0x2cb   : > { %7461 = vmatprep.mubr.msk.bf16.mxu0 %vm8321_vm0, %v11660_v47 }
 0x2cd   : > { %v2762_v22 = vpop.f32.mrb[224].mxu0 }
 0x2ce   : > { %v2881_v4 = vadd.f32 %v2762_v22, %v10250_v2  ;;  %v7263_v36 = vpop.f32.mrb[225].mxu0  ;;  %v11834_v2 = vld [vmem:[#allocation62_spill] sm:$0xff] }
 0x2cf   : > { %v2765_v35 = vpop.f32.mrb[226].mxu0  ;;  %v11835_v22 = vld [vmem:[#allocation66_spill] sm:$0xff]  ;;  %v3206_v36 = vsel %vm9294_vm6, %v6117_v56, %v3205_v23  ;;  %v3209_v23 = vsel %vm9294_vm6, %v3207_v37, %v3208_v41 }
 0x2d0   : > { %v2882_v17 = vadd.f32 %v2765_v35, %v10255_v16  ;;  %v10484_v43 = vadd.f32 %v11830_v57, %v2881_v4  ;;  %v7264_v21 = vpop.f32.mrb[227].mxu0  ;;  %v11836_v12 = vcombine.low %v11834_v2, %v11835_v22  ;;  %v8089_v16 = vld [vmem:[%s11534_s4 + $0x60] sm:$0xff]   ;;  %v11839_v2 = vld [vmem:[#allocation24_spill] sm:$0xff] }
 0x2d1   : > { %v11838_v35 = vld [vmem:[#allocation67_spill] sm:$0xff]  ;;  %7481 = vmatprep.subr.bf16.mxu1 %v8089_v16  ;;  %v3211_v56 = vrot.slane %v11839_v2, 5  ;;  %v11843_v2 = vld [vmem:[#allocation36_spill] sm:$0xff] }
 0x2d2   : > { %11831 = vst [vmem:[#allocation8_spill] sm:$0xff] %v10484_v43  ;;  %v10487_v7 = vadd.f32 %v11832_v6, %v2882_v17  ;;  %7462 = vmatmul.mubr.bf16.gmra.mrb[76].mxu0 %v11836_v12  ;;  %v6135_v17 = vcombine.low %v11838_v35, %v3206_v36  ;;  %v3210_v6 = vrot.slane %v3208_v41, 4  ;;  %7482 = vmatpush3.bf16.msra.mxu1 %v8089_v16  ;;  %v11840_v12 = vld [vmem:[#allocation33_spill] sm:$0xff]  ;;  %v8090_v36 = vld [vmem:[%s11534_s4 + $0x68] sm:$0xff]   ;;  %v11841_v35 = vld [vmem:[#allocation34_spill] sm:$0xff] }
 0x2d3   : > { %7465 = vmatprep.mubr.msk.bf16.mxu0 %vm8321_vm0, %v11660_v47  ;;  %7483 = vmatprep.subr.bf16.mxu1 %v8090_v36 }
 0x2d4   : > { %11833 = vst [vmem:[#allocation63_spill] sm:$0xff] %v10487_v7  ;;  %v3212_v16 = vsel %vm9294_vm6, %v3210_v6, %v3211_v56 }
 0x2d5   : > { %v2770_v4 = vpop.f32.mrb[228].mxu0 }
 0x2d6   : > { %v2883_v57 = vadd.f32 %v2770_v4, %v10266_v40  ;;  %v7267_v21 = vpop.f32.mrb[229].mxu0  ;;  %7484 = vmatpush3.bf16.msra.mxu1 %v8090_v36  ;;  %v6136_v4 = vcombine.low %v3209_v23, %v3212_v16 }
 0x2d7   : > { %v2773_v22 = vpop.f32.mrb[230].mxu0 }
 0x2d8   : > { %v2884_v26 = vadd.f32 %v2773_v22, %v10271_v39  ;;  %v10505_v7 = vadd.f32 %v11840_v12, %v2883_v57  ;;  %v7268_v43 = vpop.f32.mrb[231].mxu0  ;;  %v8091_v39 = vld [vmem:[%s11534_s4 + $0x70] sm:$0xff]  }
 0x2d9   : > { %7485 = vmatprep.subr.bf16.mxu1 %v8091_v39 }
 0x2da   : > { %v10511_v40 = vadd.f32 %v11841_v35, %v2884_v26  ;;  %7466 = vmatmul.mubr.bf16.gmra.mrb[80].mxu0 %v6135_v17  ;;  %7486 = vmatpush3.bf16.msra.mxu1 %v8091_v39 }
 0x2db   : > { %7469 = vmatprep.mubr.msk.bf16.mxu0 %vm8321_vm0, %v11660_v47  ;;  %v8092_v47 = vld [vmem:[%s11534_s4 + $0x78] sm:$0xff]  }
 0x2dc   : > { %7487 = vmatprep.subr.bf16.mxu1 %v8092_v47 }
 0x2dd   : > { %v2778_v43 = vpop.f32.mrb[232].mxu0 }
 0x2de   : > { %v2885_v57 = vadd.f32 %v2778_v43, %v10282_v53  ;;  %v7271_v17 = vpop.f32.mrb[233].mxu0  ;;  %7488 = vmatpush3.bf16.msra.mxu1 %v8092_v47 }
 0x2df   : > { %v2781_v21 = vpop.f32.mrb[234].mxu0 }
 0x2e0   : > { %v2886_v41 = vadd.f32 %v2781_v21, %v10287_v58  ;;  %v10525_v37 = vadd.f32 %v11842_v45, %v2885_v57  ;;  %v7272_v6 = vpop.f32.mrb[235].mxu0 }
 0x2e2   : > { %v10531_v56 = vadd.f32 %v11843_v2, %v2886_v41  ;;  %7470 = vmatmul.mubr.bf16.gmra.mrb[84].mxu0 %v6136_v4 }
 0x2e5   : > { %v2786_v53 = vpop.f32.mrb[236].mxu0 }
 0x2e6   : > { %v2887_v22 = vadd.f32 %v2786_v53, %v10296_v62  ;;  %v7275_v26 = vpop.f32.mrb[237].mxu0 }
 0x2e7   : > { %v2789_v12 = vpop.f32.mrb[238].mxu0 }
 0x2e8   : > { %v2888_v58 = vadd.f32 %v2789_v12, %v10301_v46  ;;  %v10536_v36 = vadd.f32 %v10278_v14, %v2887_v22  ;;  %v7276_v35 = vpop.f32.mrb[239].mxu0 }
 0x2ea   : > { %v10539_v23 = vadd.f32 %v10284_v10, %v2888_v58 }
 0x2ed   : > { %v2794_v16 = vpop.f32.mrb[240].mxu0 }
 0x2ee   : > { %v2889_v39 = vadd.f32 %v2794_v16, %v10311_v27  ;;  %v7279_v43 = vpop.f32.mrb[241].mxu0 }
 0x2ef   : > { %v2797_v4 = vpop.f32.mrb[242].mxu0 }
 0x2f0   : > { %v2890_v57 = vadd.f32 %v2797_v4, %v10316_v20  ;;  %v10544_v62 = vadd.f32 %v10292_v28, %v2889_v39  ;;  %v7280_v17 = vpop.f32.mrb[243].mxu0 }
 0x2f2   : > { %v10547_v46 = vadd.f32 %v10298_v5, %v2890_v57 }
 0x2f5   : > { %v2802_v14 = vpop.f32.mrb[244].mxu0 }
 0x2f6   : > { %v2891_v21 = vadd.f32 %v2802_v14, %v10326_v34  ;;  %v7283_v41 = vpop.f32.mrb[245].mxu0 }
 0x2f7   : > { %v2805_v10 = vpop.f32.mrb[246].mxu0 }
 0x2f8   : > { %v2892_v45 = vadd.f32 %v2805_v10, %v10331_v33  ;;  %v10552_v27 = vadd.f32 %v10307_v25, %v2891_v21  ;;  %v7284_v6 = vpop.f32.mrb[247].mxu0 }
 0x2fa   : > { %v10555_v20 = vadd.f32 %v10313_v19, %v2892_v45 }
 0x2fd   : > { %v2810_v28 = vpop.f32.mrb[248].mxu0 }
 0x2fe   : > { %v2893_v47 = vadd.f32 %v2810_v28, %v10341_v44  ;;  %v7287_v2 = vpop.f32.mrb[249].mxu0 }
 0x2ff   : > { %v2813_v5 = vpop.f32.mrb[250].mxu0 }
 0x300   : > { %v2894_v53 = vadd.f32 %v2813_v5, %v10346_v51  ;;  %v10560_v34 = vadd.f32 %v10322_v42, %v2893_v47  ;;  %v7288_v22 = vpop.f32.mrb[251].mxu0 }
 0x301   : > { %v11844_v22 = vld [vmem:[#allocation37_spill] sm:$0xff] }
 0x302   : > { %v10563_v33 = vadd.f32 %v10328_v63, %v2894_v53 }
 0x305   : > { %v2818_v25 = vpop.f32.mrb[252].mxu0 }
 0x306   : > { %v2895_v26 = vadd.f32 %v2818_v25, %v10356_v55  ;;  %v7291_v12 = vpop.f32.mrb[253].mxu0 }
 0x307   : > { %v2821_v19 = vpop.f32.mrb[254].mxu0  ;;  %v11845_v12 = vld [vmem:[#allocation61_spill] sm:$0xff] }
 0x308   : > { %v2896_v58 = vadd.f32 %v2821_v19, %v10361_v1  ;;  %v10568_v44 = vadd.f32 %v10337_v29, %v2895_v26  ;;  %v7292_v35 = vpop.f32.mrb[255].mxu0  ;;  %v10584_v29 = vld [vmem:[%s11534_s4] sm:$0xff]  }
 0x309   : > { %7505 = vmatprep.subr.bf16.mxu1 %v10584_v29 }
 0x30a   : > { %v10571_v51 = vadd.f32 %v10343_v32, %v2896_v58  ;;  %v11846_v58 = vld [vmem:[#allocation26_spill] sm:$0xff] }
 0x30d   : > { %v2826_v42 = vpop.f32.mrb[0].mxu0 }
 0x30e   : > { %v2897_v16 = vadd.f32 %v2826_v42, %v10371_v50  ;;  %v7295_v39 = vpop.f32.mrb[1].mxu0 }
 0x30f   : > { %v2829_v63 = vpop.f32.mrb[2].mxu0 }
 0x310   : > { %v2898_v43 = vadd.f32 %v2829_v63, %v10376_v49  ;;  %v10576_v55 = vadd.f32 %v10352_v13, %v2897_v16  ;;  %v7296_v4 = vpop.f32.mrb[3].mxu0 }
 0x312   : > { %v10579_v1 = vadd.f32 %v10358_v24, %v2898_v43  ;;  %v11848_v43 = vld [vmem:[#allocation44_spill] sm:$0xff] }
 0x315   : > { %v2834_v32 = vpop.f32.mrb[4].mxu0 }
 0x316   : > { %v2899_v57 = vadd.f32 %v2834_v32, %v10389_v31  ;;  %v7299_v50 = vpop.f32.mrb[5].mxu0 }
 0x317   : > { %v2837_v17 = vpop.f32.mrb[6].mxu0 }
 0x318   : > { %v2900_v49 = vadd.f32 %v2837_v17, %v10394_v48  ;;  %v10590_v13 = vadd.f32 %v10367_v18, %v2899_v57  ;;  %v7300_v14 = vpop.f32.mrb[7].mxu0  ;;  %v11849_v57 = vld [vmem:[#allocation59_spill] sm:$0xff] }
 0x31a   : > { %v10593_v24 = vadd.f32 %v10373_v54, %v2900_v49 }
 0x31d   : > { %v2842_v21 = vpop.f32.mrb[8].mxu0 }
 0x31e   : > { %v2901_v41 = vadd.f32 %v2842_v21, %v10404_v60  ;;  %v7303_v10 = vpop.f32.mrb[9].mxu0 }
 0x31f   : > { %v2845_v45 = vpop.f32.mrb[10].mxu0 }
 0x320   : > { %v2902_v31 = vadd.f32 %v2845_v45, %v10409_v52  ;;  %v10598_v6 = vadd.f32 %v10385_v61, %v2901_v41  ;;  %v7304_v28 = vpop.f32.mrb[11].mxu0 }
 0x322   : > { %v10601_v48 = vadd.f32 %v10391_v11, %v2902_v31  ;;  %v11851_v31 = vld [vmem:[#allocation13_spill] sm:$0xff] }
 0x325   : > { %v2850_v18 = vpop.f32.mrb[12].mxu0 }
 0x326   : > { %v2903_v47 = vadd.f32 %v2850_v18, %v10422_v59  ;;  %v7307_v2 = vpop.f32.mrb[13].mxu0  ;;  %v10636_v18 = vstv %s6147_s16  ;;  %s5826_s16 = sshll.u32 %s322_s29, 7 }
 0x327   : > { %v2853_v54 = vpop.f32.mrb[14].mxu0  ;;  %vm3553_vm7 = vcmp.ge.s32.totalorder %v10636_v18, 0  ;;  %vm3563_vm8 = vcmp.lt.s32.totalorder %v10636_v18, 16  ;;  %s11412_s8 = scalar_lea.vmem [#allocation2], %s5826_s16  ;;  %s8230_s16 = scalar_lea.vmem %s8229_s9, 4096 }
 0x328   : > { %v2904_v5 = vadd.f32 %v2853_v54, %v10427_v9  ;;  %v10606_v60 = vadd.f32 %v10400_v0, %v2903_v47  ;;  %v7308_v53 = vpop.f32.mrb[15].mxu0  ;;  %v11847_v9 = vld [vmem:[#allocation42_spill] sm:$0xff]  ;;  %vm10649_vm9 = vmand %vm3553_vm7, %vm3563_vm8  ;;  %s5713_s25 = sshll.u32 %s11412_s8, 4  ;;  %s11471_s25 = int_to_ptr.vmem [resolvable:$true] %s5713_s25 }
 0x329   : > { %s8224_s30 = scalar_lea.vmem %s11471_s25, 2048  ;;  %p8231_p5 = scmp.lt.s32.totalorder %s11471_s25, %s8229_s9 }
 0x32a   : > { %v10609_v52 = vadd.f32 %v10406_v3, %v2904_v5  ;;  %p8225_p1 = scmp.ne.s32.totalorder %s11471_s25, %s8224_s30  ;;  %p8232_p6 = scmp.lt.s32.totalorder %s8230_s16, %s8224_s30 }
 0x32c   : > { %p8226_p2 = pnand %p8225_p1, %p8411_p3  ;;  %p8233_p7 = por %p8232_p6, %p8231_p5 }
 0x32d   : > { %v2858_v61 = vpop.f32.mrb[16].mxu0 }
 0x32e   : > { %v2905_v25 = vadd.f32 %v2858_v61, %v11844_v22  ;;  %v7311_v26 = vpop.f32.mrb[17].mxu0  ;;  %v3552_v22 = vadd.s32 9, %v10636_v18  ;;  %p8227_p4 = pneg %p8226_p2 }
 0x32f   : > { %v2861_v11 = vpop.f32.mrb[18].mxu0 }
 0x330   : > { %v2906_v19 = vadd.f32 %v2861_v11, %v11845_v12  ;;  %v10614_v59 = vadd.f32 %v11846_v58, %v2905_v25  ;;  %v7312_v35 = vpop.f32.mrb[19].mxu0  ;;  %v11855_v25 = vld [vmem:[#allocation63_spill] sm:$0xff]  ;;  %p8234_p9 = pnand %p8233_p7, %p8227_p4 }
 0x332   : > { %v10617_v42 = vadd.f32 %v11847_v9, %v2906_v19 }
 0x335   : > { %v2866_v0 = vpop.f32.mrb[20].mxu0 }
 0x336   : > { %v2907_v16 = vadd.f32 %v2866_v0, %v10455_v30  ;;  %v7315_v3 = vpop.f32.mrb[21].mxu0  ;;  %v11850_v30 = vld [vmem:[#allocation17_spill] sm:$0xff] }
 0x337   : > { %v2869_v39 = vpop.f32.mrb[22].mxu0 }
 0x338   : > { %v2908_v63 = vadd.f32 %v2869_v39, %v10460_v38  ;;  %v10622_v4 = vadd.f32 %v11848_v43, %v2907_v16  ;;  %v7316_v32 = vpop.f32.mrb[23].mxu0  ;;  %v3537_v38 = vlaneseq }
 0x33a   : > { %v10625_v50 = vadd.f32 %v11849_v57, %v2908_v63  ;;  %v10638_v47 = vshrl.u32 %v3537_v38, 7 }
 0x33c   : > { %vm11603_vm10 = vcmp.ge.s32.totalorder %v10638_v47, 1  ;;  %v10656_v12 = vadd.s32 16, %v10638_v47 }
 0x33d   : > { %v2874_v17 = vpop.f32.mrb[24].mxu0  ;;  %vm10663_vm11 = vmand %vm10649_vm9, %vm11603_vm10 }
 0x33e   : > { %v2909_v49 = vadd.f32 %v2874_v17, %v10468_v8  ;;  %v7319_v14 = vpop.f32.mrb[25].mxu0  ;;  %v10643_v8 = vld [vmem:[%s11533_s3] ss:$0 sm:$0xff]  ;;  %vm11604_vm12 = vcmp.le.s32.totalorder %v10656_v12, 16  ;;  %v3544_v17 = vadd.s32 1, %v10636_v18 }
 0x33f   : > { %v2877_v21 = vpop.f32.mrb[26].mxu0  ;;  %vm3621_vm13 = vmand %vm10649_vm9, %vm11604_vm12 }
 0x340   : > { %v2910_v41 = vadd.f32 %v2877_v21, %v10471_v15  ;;  %v10631_v10 = vadd.f32 %v11850_v30, %v2909_v49  ;;  %v7320_v45 = vpop.f32.mrb[27].mxu0  ;;  %v11852_v15 = vld [vmem:[#allocation8_spill] sm:$0xff]  ;;  %vm3554_vm14 = vcmp.ge.s32.totalorder %v3544_v17, 0  ;;  %vm3564_vm15 = vcmp.lt.s32.totalorder %v3544_v17, 16 }
 0x341   : > { %vm10683_vm0 = vmand %vm3554_vm14, %vm3564_vm15 }
 0x342   : > { %v10634_v28 = vadd.f32 %v11851_v31, %v2910_v41  ;;  %vm10694_vm3 = vmand %vm10683_vm0, %vm11603_vm10 }
 0x343   : > { %vm3624_vm4 = vmand %vm10683_vm0, %vm11604_vm12 }
 0x345   : > { %v3321_v2 = vpop.f32.mrb[28].mxu0 }
 0x346   : > { %v3440_v54 = vadd.f32 %v3321_v2, %v11852_v15  ;;  %v7415_v5 = vpop.f32.mrb[29].mxu0  ;;  %v8119_v15 = vld [vmem:[%s11534_s4 + $0x110] sm:$0xff]  }
 0x347   : > { %v3324_v53 = vpop.f32.mrb[30].mxu0 }
 0x348   : > { %v3477_v61 = vadd.f32 %v10643_v8, %v3440_v54  ;;  %v3441_v26 = vadd.f32 %v3324_v53, %v11855_v25  ;;  %v7416_v11 = vpop.f32.mrb[31].mxu0 }
 0x34a   : > { %v3507_v19 = vmax.f32 %v3477_v61, 0.0  ;;  %v3478_v58 = vadd.f32 %v10643_v8, %v3441_v26 }
 0x34c   : > { %v3508_v9 = vmax.f32 %v3478_v58, 0.0  ;;  %v3709_v16 = vsel %vm10663_vm11, %v3507_v19, 0.0 }
 0x34d   : > { %v3329_v0 = vpop.f32.mrb[32].mxu0 }
 0x34e   : > { %v3710_v3 = vsel %vm10649_vm9, %v3508_v9, 0.0  ;;  %v10672_v39 = vpack.c.bf16 %v3508_v9, %v3507_v19  ;;  %v3442_v63 = vadd.f32 %v3329_v0, %v10505_v7  ;;  %v7419_v43 = vpop.f32.mrb[33].mxu0 }
 0x34f   : > { %v3739_v32 = vpack.c.bf16 %v3710_v3, %v3709_v16  ;;  %v3332_v57 = vpop.f32.mrb[34].mxu0  ;;  %v3545_v3 = vadd.s32 2, %v10636_v18 }
 0x350   : > { %v3479_v49 = vadd.f32 %v10643_v8, %v3442_v63  ;;  %v3443_v14 = vadd.f32 %v3332_v57, %v10511_v40  ;;  %v7420_v21 = vpop.f32.mrb[35].mxu0 }
 0x351   : > { %v3779_v41 = vshll.u32 %v3739_v32, 16  ;;  %v3777_v53 = vshrl.u32 %v3739_v32, 16  ;;  %v4204_v25 = vrot.slane %v3739_v32, 1  ;;  %vm3555_vm5 = vcmp.ge.s32.totalorder %v3545_v3, 0 }
 0x352   : > { %v3509_v30 = vmax.f32 %v3479_v49, 0.0  ;;  %v3480_v45 = vadd.f32 %v10643_v8, %v3443_v14  ;;  %vm3565_vm6 = vcmp.lt.s32.totalorder %v3545_v3, 16 }
 0x353   : > { %v3781_v2 = vrot.slane %v3779_v41, 1  ;;  %vm10716_vm7 = vmand %vm3555_vm5, %vm3565_vm6 }
 0x354   : > { %v3711_v7 = vsel %vm3621_vm13, %v3509_v30, 0.0  ;;  %v3510_v11 = vmax.f32 %v3480_v45, 0.0  ;;  %vm10726_vm8 = vmand %vm10716_vm7, %vm11603_vm10 }
 0x355   : > { %v3740_v38 = vpack.c.bf16 %v3711_v7, %v3711_v7  ;;  %v3337_v31 = vpop.f32.mrb[36].mxu0  ;;  %v3782_v0 = vor.u32 %v3781_v2, %v3777_v53  ;;  %vm3627_vm13 = vmand %vm10716_vm7, %vm11604_vm12 }
 0x356   : > { %v3444_v40 = vadd.f32 %v3337_v31, %v10525_v37  ;;  %v7423_v54 = vpop.f32.mrb[37].mxu0  ;;  %v3712_v57 = vsel %vm10694_vm3, %v3510_v11, 0.0  ;;  %v8120_v37 = vld [vmem:[%s11534_s4 + $0x118] sm:$0xff]  }
 0x357   : > { %v3340_v5 = vpop.f32.mrb[38].mxu0  ;;  %v3784_v61 = vshll.u32 %v3740_v38, 16  ;;  %v4205_v26 = vrot.slane %v3740_v38, 1 }
 0x358   : > { %v3481_v19 = vadd.f32 %v10643_v8, %v3444_v40  ;;  %v3445_v58 = vadd.f32 %v3340_v5, %v10531_v56  ;;  %v7424_v9 = vpop.f32.mrb[39].mxu0 }
 0x359   : > { %v3786_v16 = vrot.slane %v3784_v61, 1  ;;  %v10700_v63 = vsel %vm11601_vm1, %v4204_v25, %v4205_v26 }
 0x35a   : > { %v3511_v43 = vmax.f32 %v3481_v19, 0.0  ;;  %v3482_v56 = vadd.f32 %v10643_v8, %v3445_v58 }
 0x35b   : > { %v3787_v32 = vsel %vm11600_vm2, %v3782_v0, %v3786_v16 }
 0x35c   : > { %v3713_v17 = vsel %vm10683_vm0, %v3511_v43, 0.0  ;;  %v10712_v49 = vpack.c.bf16 %v3511_v43, %v3510_v11  ;;  %v3512_v14 = vmax.f32 %v3482_v56, 0.0  ;;  %7489 = vmatprep.mubr.bf16.mxu1 %v3787_v32  ;;  %v8094_v43 = vld [vmem:[%s11534_s4 + $0x8] sm:$0xff]  }
 0x35d   : > { %v3741_v21 = vpack.c.bf16 %v3713_v17, %v3712_v57  ;;  %v3345_v41 = vpop.f32.mrb[40].mxu0 }
 0x35e   : > { %v3714_v30 = vsel %vm3624_vm4, %v3512_v14, 0.0  ;;  %v3446_v7 = vadd.f32 %v3345_v41, %v10536_v36  ;;  %v7427_v45 = vpop.f32.mrb[41].mxu0 }
 0x35f   : > { %v3791_v38 = vshll.u32 %v3741_v21, 16  ;;  %v3742_v31 = vpack.c.bf16 %v3714_v30, %v3714_v30  ;;  %v3348_v2 = vpop.f32.mrb[42].mxu0  ;;  %v3789_v40 = vshrl.u32 %v3741_v21, 16  ;;  %v4207_v19 = vrot.slane %v3741_v21, 1 }
 0x360   : > { %v3483_v54 = vadd.f32 %v10643_v8, %v3446_v7  ;;  %v3447_v53 = vadd.f32 %v3348_v2, %v10539_v23  ;;  %v7428_v61 = vpop.f32.mrb[43].mxu0  ;;  %v3546_v45 = vadd.s32 3, %v10636_v18 }
 0x361   : > { %v3793_v25 = vrot.slane %v3791_v38, 1  ;;  %v3796_v26 = vshll.u32 %v3742_v31, 16  ;;  %v4208_v11 = vrot.slane %v3742_v31, 1 }
 0x362   : > { %v3513_v58 = vmax.f32 %v3483_v54, 0.0  ;;  %v3484_v36 = vadd.f32 %v10643_v8, %v3447_v53  ;;  %vm3556_vm14 = vcmp.ge.s32.totalorder %v3546_v45, 0  ;;  %vm3566_vm15 = vcmp.lt.s32.totalorder %v3546_v45, 16 }
 0x363   : > { %v3798_v9 = vrot.slane %v3796_v26, 1  ;;  %v3794_v16 = vor.u32 %v3793_v25, %v3789_v40  ;;  %v10731_v23 = vsel %vm11601_vm1, %v4207_v19, %v4208_v11  ;;  %v8095_v40 = vld [vmem:[%s11534_s4 + $0x10] sm:$0xff]   ;;  %vm10762_vm4 = vmand %vm3556_vm14, %vm3566_vm15  ;;  %v3547_v45 = vadd.s32 4, %v10636_v18  ;;  %v8204_v11 = vld [vmem:[%s8478_s17 + $0x38] sm:$0xf] }
 0x364   : > { %v3514_v3 = vmax.f32 %v3484_v36, 0.0  ;;  %v3715_v57 = vsel %vm10726_vm8, %v3513_v58, 0.0  ;;  %vm10776_vm5 = vmand %vm10762_vm4, %vm11603_vm10 }
 0x365   : > { %v3353_v56 = vpop.f32.mrb[44].mxu0  ;;  %v10737_v32 = vsel %vm11600_vm2, %v3794_v16, %v3798_v9  ;;  %vm3630_vm6 = vmand %vm10762_vm4, %vm11604_vm12  ;;  %vm3567_vm14 = vcmp.lt.s32.totalorder %v3547_v45, 16 }
 0x366   : > { %v3716_v17 = vsel %vm10716_vm7, %v3514_v3, 0.0  ;;  %v10743_v14 = vpack.c.bf16 %v3514_v3, %v3513_v58  ;;  %v3448_v21 = vadd.f32 %v3353_v56, %v10544_v62  ;;  %v7431_v41 = vpop.f32.mrb[45].mxu0  ;;  %7490 = vmatmul.mubr.bf16.vlgmr.msra.gmra.mrb[196].mxu1 %v10737_v32 }
 0x367   : > { %v3743_v30 = vpack.c.bf16 %v3716_v17, %v3715_v57  ;;  %v3356_v7 = vpop.f32.mrb[46].mxu0  ;;  %7506 = vmatpush3.bf16.msra.mxu1 %v10584_v29  ;;  %v8097_v41 = vld [vmem:[%s11534_s4 + $0x20] sm:$0xff]  }
 0x368   : > { %v3485_v38 = vadd.f32 %v10643_v8, %v3448_v21  ;;  %v3449_v31 = vadd.f32 %v3356_v7, %v10547_v46  ;;  %v7432_v2 = vpop.f32.mrb[47].mxu0  ;;  %7507 = vmatprep.subr.bf16.mxu1 %v8094_v43  ;;  %v8096_v46 = vld [vmem:[%s11534_s4 + $0x18] sm:$0xff]  }
 0x369   : > { %v3803_v62 = vshll.u32 %v3743_v30, 16  ;;  %v3801_v9 = vshrl.u32 %v3743_v30, 16  ;;  %v4210_v3 = vrot.slane %v3743_v30, 1 }
 0x36a   : > { %v3515_v54 = vmax.f32 %v3485_v38, 0.0  ;;  %v3486_v53 = vadd.f32 %v10643_v8, %v3449_v31 }
 0x36b   : > { %7508 = vmatpush3.bf16.msra.mxu1 %v8094_v43  ;;  %v3805_v26 = vrot.slane %v3803_v62, 1 }
 0x36c   : > { %v3717_v29 = vsel %vm3627_vm13, %v3515_v54, 0.0  ;;  %7509 = vmatprep.subr.bf16.mxu1 %v8095_v40  ;;  %v3516_v56 = vmax.f32 %v3486_v53, 0.0  ;;  %v8098_v53 = vld [vmem:[%s11534_s4 + $0x28] sm:$0xff]   ;;  %vm3557_vm13 = vcmp.ge.s32.totalorder %v3547_v45, 0 }
 0x36d   : > { %v3744_v61 = vpack.c.bf16 %v3717_v29, %v3717_v29  ;;  %v3361_v25 = vpop.f32.mrb[48].mxu0  ;;  %v3806_v30 = vor.u32 %v3805_v26, %v3801_v9  ;;  %vm10804_vm15 = vmand %vm3557_vm13, %vm3567_vm14 }
 0x36e   : > { %v3450_v19 = vadd.f32 %v3361_v25, %v10552_v27  ;;  %v7435_v58 = vpop.f32.mrb[49].mxu0  ;;  %vm3633_vm13 = vmand %vm10804_vm15, %vm11604_vm12  ;;  %v8104_v27 = vld [vmem:[%s11534_s4 + $0x98] sm:$0xff]  }
 0x36f   : > { %v3364_v36 = vpop.f32.mrb[50].mxu0  ;;  %v3808_v16 = vshll.u32 %v3744_v61, 16  ;;  %7510 = vmatpush3.bf16.msra.mxu1 %v8095_v40  ;;  %v4211_v43 = vrot.slane %v3744_v61, 1  ;;  %v3718_v40 = vsel %vm10776_vm5, %v3516_v56, 0.0 }
 0x370   : > { %v3487_v57 = vadd.f32 %v10643_v8, %v3450_v19  ;;  %v3451_v17 = vadd.f32 %v3364_v36, %v10555_v20  ;;  %v7436_v21 = vpop.f32.mrb[51].mxu0  ;;  %7511 = vmatprep.subr.bf16.mxu1 %v8096_v46 }
 0x371   : > { %v3810_v7 = vrot.slane %v3808_v16, 1  ;;  %v10782_v20 = vsel %vm11601_vm1, %v4210_v3, %v4211_v43  ;;  %v11870_v3 = vmov 0 }
 0x372   : > { %v3517_v38 = vmax.f32 %v3487_v57, 0.0  ;;  %v3488_v31 = vadd.f32 %v10643_v8, %v3451_v17  ;;  %v11871_v3 = vsel %vm10804_vm15, 4294967295, %v11870_v3 }
 0x373   : > { %v10790_v2 = vsel %vm11600_vm2, %v3806_v30, %v3810_v7  ;;  %7512 = vmatpush3.bf16.msra.mxu1 %v8096_v46 }
 0x374   : > { %v3719_v62 = vsel %vm10762_vm4, %v3517_v38, 0.0  ;;  %v10796_v54 = vpack.c.bf16 %v3517_v38, %v3516_v56  ;;  %v3518_v29 = vmax.f32 %v3488_v31, 0.0  ;;  %7493 = vmatprep.mubr.bf16.mxu1 %v10790_v2  ;;  %7513 = vmatprep.subr.bf16.mxu1 %v8097_v41 }
 0x375   : > { %v3745_v61 = vpack.c.bf16 %v3719_v62, %v3718_v40  ;;  %v3369_v25 = vpop.f32.mrb[52].mxu0 }
 0x376   : > { %v3720_v46 = vsel %vm3630_vm6, %v3518_v29, 0.0  ;;  %v3452_v26 = vadd.f32 %v3369_v25, %v10560_v34  ;;  %v7439_v19 = vpop.f32.mrb[53].mxu0  ;;  %v8099_v34 = vld [vmem:[%s11534_s4 + $0x30] sm:$0xff]   ;;  %vm10817_vm6 = vmand %vm10804_vm15, %vm11603_vm10  ;;  %v8100_v29 = vld [vmem:[%s11534_s4 + $0x38] sm:$0xff]  }
 0x377   : > { %v3746_v58 = vpack.c.bf16 %v3720_v46, %v3720_v46  ;;  %v3372_v36 = vpop.f32.mrb[54].mxu0  ;;  %v3815_v9 = vshll.u32 %v3745_v61, 16  ;;  %7514 = vmatpush3.bf16.msra.mxu1 %v8097_v41  ;;  %v3813_v57 = vshrl.u32 %v3745_v61, 16  ;;  %v4213_v30 = vrot.slane %v3745_v61, 1 }
 0x378   : > { %v3489_v16 = vadd.f32 %v10643_v8, %v3452_v26  ;;  %v3453_v43 = vadd.f32 %v3372_v36, %v10563_v33  ;;  %v7440_v56 = vpop.f32.mrb[55].mxu0  ;;  %7515 = vmatprep.subr.bf16.mxu1 %v8098_v53 }
 0x379   : > { %v3817_v17 = vrot.slane %v3815_v9, 1  ;;  %v3820_v21 = vshll.u32 %v3746_v58, 16  ;;  %v4214_v7 = vrot.slane %v3746_v58, 1 }
 0x37a   : > { %v3519_v41 = vmax.f32 %v3489_v16, 0.0  ;;  %v3490_v45 = vadd.f32 %v10643_v8, %v3453_v43  ;;  %v3548_v16 = vadd.s32 5, %v10636_v18 }
 0x37b   : > { %v3818_v38 = vor.u32 %v3817_v17, %v3813_v57  ;;  %v3822_v31 = vrot.slane %v3820_v21, 1  ;;  %7516 = vmatpush3.bf16.msra.mxu1 %v8098_v53  ;;  %v10822_v40 = vsel %vm11601_vm1, %v4213_v30, %v4214_v7  ;;  %v10844_v17 = vld [vmem:[%s11534_s4 + $0x80] sm:$0xff]  }
 0x37c   : > { %v3520_v62 = vmax.f32 %v3490_v45, 0.0  ;;  %7517 = vmatprep.subr.bf16.mxu1 %v8099_v34  ;;  %v3721_v46 = vsel %vm10817_vm6, %v3519_v41, 0.0  ;;  %vm3558_vm14 = vcmp.ge.s32.totalorder %v3548_v16, 0  ;;  %v11874_v45 = vmov 0 }
 0x37d   : > { %v3377_v61 = vpop.f32.mrb[56].mxu0  ;;  %v10828_v25 = vsel %vm11600_vm2, %v3818_v38, %v3822_v31  ;;  %vm3568_vm2 = vcmp.lt.s32.totalorder %v3548_v16, 16 }
 0x37e   : > { %v3722_v26 = vsel %vm10804_vm15, %v3520_v62, 0.0  ;;  %v10834_v53 = vpack.c.bf16 %v3520_v62, %v3519_v41  ;;  %v3454_v19 = vadd.f32 %v3377_v61, %v10568_v44  ;;  %v7443_v58 = vpop.f32.mrb[57].mxu0  ;;  %7494 = vmatmul.mubr.bf16.gmra.mrb[200].mxu1 %v10828_v25  ;;  %vm10852_vm1 = vmand %vm3558_vm14, %vm3568_vm2  ;;  %vm11879_vm15 = vsmask.f32 7424 }
 0x37f   : > { %v3747_v36 = vpack.c.bf16 %v3722_v26, %v3721_v46  ;;  %v3380_v9 = vpop.f32.mrb[58].mxu0  ;;  %7518 = vmatpush3.bf16.msra.mxu1 %v8099_v34  ;;  %v11875_v45 = vsel %vm10852_vm1, 4294967295, %v11874_v45  ;;  %vm10863_vm2 = vmand %vm10852_vm1, %vm11603_vm10 }
 0x380   : > { %v3491_v43 = vadd.f32 %v10643_v8, %v3454_v19  ;;  %v3455_v56 = vadd.f32 %v3380_v9, %v10571_v51  ;;  %v7444_v57 = vpop.f32.mrb[59].mxu0  ;;  %7519 = vmatprep.subr.bf16.mxu1 %v8100_v29  ;;  %vm3636_vm14 = vmand %vm10852_vm1, %vm11604_vm12 }
 0x381   : > { %v3827_v44 = vshll.u32 %v3747_v36, 16  ;;  %v3825_v61 = vshrl.u32 %v3747_v36, 16  ;;  %v4216_v26 = vrot.slane %v3747_v36, 1  ;;  %v3549_v57 = vadd.s32 6, %v10636_v18 }
 0x382   : > { %v3521_v21 = vmax.f32 %v3491_v43, 0.0  ;;  %v3492_v51 = vadd.f32 %v10643_v8, %v3455_v56  ;;  %v11876_v43 = vmov 0 }
 0x383   : > { %7520 = vmatpush3.bf16.msra.mxu1 %v8100_v29  ;;  %v3829_v41 = vrot.slane %v3827_v44, 1  ;;  %v11877_v43 = vsel %vm10863_vm2, 4294967295, %v11876_v43  ;;  %vm3569_vm10 = vcmp.lt.s32.totalorder %v3549_v57, 16 }
 0x384   : > { %v3723_v34 = vsel %vm3633_vm13, %v3521_v21, 0.0  ;;  %7537 = vmatprep.subr.bf16.mxu1 %v10844_v17  ;;  %v3522_v19 = vmax.f32 %v3492_v51, 0.0  ;;  %vm11878_vm13 = vcmask 1046528  }
 0x385   : > { %v3748_v30 = vpack.c.bf16 %v3723_v34, %v3723_v34  ;;  %v3385_v7 = vpop.f32.mrb[60].mxu0 }
 0x386   : > { %v3456_v38 = vadd.f32 %v3385_v7, %v10576_v55  ;;  %v7447_v31 = vpop.f32.mrb[61].mxu0  ;;  %v3830_v55 = vor.u32 %v3829_v41, %v3825_v61  ;;  %v3724_v34 = vsel %vm10863_vm2, %v3522_v19, 0.0  ;;  %vm11896_vm2 = vsmask.f32 7424 }
 0x387   : > { %v3388_v62 = vpop.f32.mrb[62].mxu0  ;;  %v3832_v46 = vshll.u32 %v3748_v30, 16  ;;  %v4217_v29 = vrot.slane %v3748_v30, 1 }
 0x388   : > { %v3493_v58 = vadd.f32 %v10643_v8, %v3456_v38  ;;  %v3457_v9 = vadd.f32 %v3388_v62, %v10579_v1  ;;  %v7448_v16 = vpop.f32.mrb[63].mxu0 }
 0x389   : > { %v3834_v56 = vrot.slane %v3832_v46, 1  ;;  %v10869_v36 = vsel %vm11878_vm13, %v4216_v26, %v4217_v29  ;;  %vm3559_vm13 = vcmp.ge.s32.totalorder %v3549_v57, 0 }
 0x38a   : > { %v3523_v44 = vmax.f32 %v3493_v58, 0.0  ;;  %v3494_v21 = vadd.f32 %v10643_v8, %v3457_v9  ;;  %v11880_v9 = vmov 0 }
 0x38b   : > { %v10877_v1 = vsel %vm11879_vm15, %v3830_v55, %v3834_v56  ;;  %vm10888_vm15 = vmand %vm3559_vm13, %vm3569_vm10  ;;  %vm11885_vm10 = vcmask 1046528   ;;  %vm11886_vm13 = vsmask.f32 7424 }
 0x38c   : > { %v3725_v51 = vsel %vm10852_vm1, %v3523_v44, 0.0  ;;  %v10883_v30 = vpack.c.bf16 %v3523_v44, %v3522_v19  ;;  %v3524_v7 = vmax.f32 %v3494_v21, 0.0  ;;  %7497 = vmatprep.mubr.bf16.mxu1 %v10877_v1  ;;  %v11881_v9 = vsel %vm10888_vm15, 4294967295, %v11880_v9 }
 0x38d   : > { %v3749_v41 = vpack.c.bf16 %v3725_v51, %v3724_v34  ;;  %v3393_v38 = vpop.f32.mrb[64].mxu0  ;;  %v11883_v51 = vmov 0 }
 0x38e   : > { %v3726_v31 = vsel %vm3636_vm14, %v3524_v7, 0.0  ;;  %v3458_v62 = vadd.f32 %v3393_v38, %v10590_v13  ;;  %v7451_v61 = vpop.f32.mrb[65].mxu0  ;;  %vm11882_vm14 = vcmp.ge.s32.totalorder %v10638_v47, 1 }
 0x38f   : > { %v3750_v46 = vpack.c.bf16 %v3726_v31, %v3726_v31  ;;  %v3396_v26 = vpop.f32.mrb[66].mxu0  ;;  %v3839_v29 = vshll.u32 %v3749_v41, 16  ;;  %v3837_v55 = vshrl.u32 %v3749_v41, 16  ;;  %v4219_v57 = vrot.slane %v3749_v41, 1  ;;  %vm10898_vm12 = vmand %vm10888_vm15, %vm11882_vm14 }
 0x390   : > { %v3495_v58 = vadd.f32 %v10643_v8, %v3458_v62  ;;  %v3459_v19 = vadd.f32 %v3396_v26, %v10593_v24  ;;  %v7452_v16 = vpop.f32.mrb[67].mxu0  ;;  %v11884_v51 = vsel %vm10898_vm12, 4294967295, %v11883_v51  ;;  %vm11888_vm14 = vcmp.le.s32.totalorder %v10656_v12, 16 }
 0x391   : > { %v3841_v56 = vrot.slane %v3839_v29, 1  ;;  %v3844_v44 = vshll.u32 %v3750_v46, 16  ;;  %v4220_v21 = vrot.slane %v3750_v46, 1 }
 0x392   : > { %v3525_v34 = vmax.f32 %v3495_v58, 0.0  ;;  %v3496_v13 = vadd.f32 %v10643_v8, %v3459_v19 }
 0x393   : > { %v3842_v7 = vor.u32 %v3841_v56, %v3837_v55  ;;  %v3846_v38 = vrot.slane %v3844_v44, 1  ;;  %v10903_v24 = vsel %vm11885_vm10, %v4219_v57, %v4220_v21  ;;  %v3550_v55 = vadd.s32 7, %v10636_v18  ;;  %vm3639_vm10 = vmand %vm10888_vm15, %vm11888_vm14 }
 0x394   : > { %v3526_v31 = vmax.f32 %v3496_v13, 0.0  ;;  %v3727_v61 = vsel %vm10898_vm12, %v3525_v34, 0.0  ;;  %vm11891_vm14 = vcmp.ge.s32.totalorder %v10638_v47, 1 }
 0x395   : > { %v3401_v62 = vpop.f32.mrb[68].mxu0  ;;  %v10906_v41 = vsel %vm11886_vm13, %v3842_v7, %v3846_v38  ;;  %vm3560_vm13 = vcmp.ge.s32.totalorder %v3550_v55, 0  ;;  %vm3570_vm12 = vcmp.lt.s32.totalorder %v3550_v55, 16 }
 0x396   : > { %11887 = vst [vmem:[#allocation65_spill] sm:$0xff] %v10906_v41  ;;  %v3728_v46 = vsel %vm10888_vm15, %v3526_v31, 0.0  ;;  %v10912_v26 = vpack.c.bf16 %v3526_v31, %v3525_v34  ;;  %v3460_v29 = vadd.f32 %v3401_v62, %v10598_v6  ;;  %v7455_v58 = vpop.f32.mrb[69].mxu0  ;;  %7498 = vmatmul.mubr.bf16.gmra.mrb[204].mxu1 %v10906_v41  ;;  %vm10924_vm1 = vmand %vm3560_vm13, %vm3570_vm12  ;;  %v11889_v62 = vmov 0 }
 0x397   : > { %v3751_v19 = vpack.c.bf16 %v3728_v46, %v3727_v61  ;;  %v3404_v16 = vpop.f32.mrb[70].mxu0  ;;  %v11890_v62 = vsel %vm10924_vm1, 4294967295, %v11889_v62  ;;  %vm10935_vm12 = vmand %vm10924_vm1, %vm11891_vm14  ;;  %vm11895_vm13 = vcmp.le.s32.totalorder %v10656_v12, 16 }
 0x398   : > { %v3497_v56 = vadd.f32 %v10643_v8, %v3460_v29  ;;  %v3461_v44 = vadd.f32 %v3404_v16, %v10601_v48  ;;  %v7456_v57 = vpop.f32.mrb[71].mxu0  ;;  %vm3642_vm15 = vmand %vm10924_vm1, %vm11895_vm13  ;;  %vm11901_vm13 = vcmp.ge.s32.totalorder %v10638_v47, 1 }
 0x399   : > { %v3851_v21 = vshll.u32 %v3751_v19, 16  ;;  %v3849_v29 = vshrl.u32 %v3751_v19, 16  ;;  %v4222_v16 = vrot.slane %v3751_v19, 1 }
 0x39a   : > { %v3527_v34 = vmax.f32 %v3497_v56, 0.0  ;;  %v3498_v13 = vadd.f32 %v10643_v8, %v3461_v44 }
 0x39b   : > { %v3853_v31 = vrot.slane %v3851_v21, 1  ;;  %v8110_v21 = vld [vmem:[%s11534_s4 + $0xc8] sm:$0xff]  }
 0x39c   : > { %v3729_v6 = vsel %vm3639_vm10, %v3527_v34, 0.0  ;;  %v3528_v57 = vmax.f32 %v3498_v13, 0.0  ;;  %vm11894_vm10 = vcmask 1046528  }
 0x39d   : > { %v3752_v7 = vpack.c.bf16 %v3729_v6, %v3729_v6  ;;  %v3409_v38 = vpop.f32.mrb[72].mxu0 }
 0x39e   : > { %v3462_v48 = vadd.f32 %v3409_v38, %v10606_v60  ;;  %v7459_v61 = vpop.f32.mrb[73].mxu0  ;;  %v3854_v60 = vor.u32 %v3853_v31, %v3849_v29  ;;  %v3551_v38 = vadd.s32 8, %v10636_v18  ;;  %v3730_v31 = vsel %vm10935_vm12, %v3528_v57, 0.0 }
 0x39f   : > { %v3412_v46 = vpop.f32.mrb[74].mxu0  ;;  %v3856_v58 = vshll.u32 %v3752_v7, 16  ;;  %v4223_v56 = vrot.slane %v3752_v7, 1 }
 0x3a0   : > { %v3499_v55 = vadd.f32 %v10643_v8, %v3462_v48  ;;  %v3463_v44 = vadd.f32 %v3412_v46, %v10609_v52  ;;  %v7460_v34 = vpop.f32.mrb[75].mxu0  ;;  %vm3561_vm14 = vcmp.ge.s32.totalorder %v3551_v38, 0 }
 0x3a1   : > { %v3858_v6 = vrot.slane %v3856_v58, 1  ;;  %v10941_v19 = vsel %vm11894_vm10, %v4222_v16, %v4223_v56  ;;  %vm3571_vm10 = vcmp.lt.s32.totalorder %v3551_v38, 16 }
 0x3a2   : > { %v3529_v13 = vmax.f32 %v3499_v55, 0.0  ;;  %v3500_v7 = vadd.f32 %v10643_v8, %v3463_v44 }
 0x3a3   : > { %v10949_v52 = vsel %vm11896_vm2, %v3854_v60, %v3858_v6  ;;  %vm10961_vm2 = vmand %vm3561_vm14, %vm3571_vm10 }
 0x3a4   : > { %11897 = vst [vmem:[#allocation12_spill] sm:$0xff] %v10949_v52  ;;  %v3731_v48 = vsel %vm10924_vm1, %v3529_v13, 0.0  ;;  %v10955_v61 = vpack.c.bf16 %v3529_v13, %v3528_v57  ;;  %v3530_v46 = vmax.f32 %v3500_v7, 0.0  ;;  %7501 = vmatprep.mubr.bf16.mxu1 %v10949_v52  ;;  %vm10973_vm14 = vmand %vm10961_vm2, %vm11901_vm13  ;;  %vm11904_vm1 = vsmask.f32 7424  ;;  %v8150_v57 = vld [vmem:[%s11534_s4 + $0x208] sm:$0xff]  }
 0x3a5   : > { %v3753_v29 = vpack.c.bf16 %v3731_v48, %v3730_v31  ;;  %v3417_v58 = vpop.f32.mrb[76].mxu0  ;;  %vm6180_vm10 = vmpackc.low %vm10649_vm9, %vm10663_vm11  ;;  %vm11905_vm9 = vcmp.le.s32.totalorder %v10656_v12, 16  ;;  %vm3572_vm13 = vcmp.lt.s32.totalorder %v3552_v22, 16 }
 0x3a6   : > { %v3732_v16 = vsel %vm3642_vm15, %v3530_v46, 0.0  ;;  %v3464_v56 = vadd.f32 %v3417_v58, %v10614_v59  ;;  %v7463_v55 = vpop.f32.mrb[77].mxu0  ;;  %vm11900_vm15 = vcmask 1046528   ;;  %vm3645_vm11 = vmand %vm10961_vm2, %vm11905_vm9 }
 0x3a7   : > { %v3754_v44 = vpack.c.bf16 %v3732_v16, %v3732_v16  ;;  %v3420_v34 = vpop.f32.mrb[78].mxu0  ;;  %v3863_v60 = vshll.u32 %v3753_v29, 16  ;;  %v3861_v7 = vshrl.u32 %v3753_v29, 16  ;;  %v4225_v38 = vrot.slane %v3753_v29, 1 }
 0x3a8   : > { %v3501_v6 = vadd.f32 %v10643_v8, %v3464_v56  ;;  %v3465_v41 = vadd.f32 %v3420_v34, %v10617_v42  ;;  %v7464_v13 = vpop.f32.mrb[79].mxu0  ;;  %v8152_v42 = vld [vmem:[%s11534_s4 + $0x218] sm:$0xff]  }
 0x3a9   : > { %v3865_v31 = vrot.slane %v3863_v60, 1  ;;  %v3868_v48 = vshll.u32 %v3754_v44, 16  ;;  %v4226_v46 = vrot.slane %v3754_v44, 1 }
 0x3aa   : > { %v3531_v52 = vmax.f32 %v3501_v6, 0.0  ;;  %v3502_v59 = vadd.f32 %v10643_v8, %v3465_v41 }
 0x3ab   : > { %v3866_v58 = vor.u32 %v3865_v31, %v3861_v7  ;;  %v3870_v16 = vrot.slane %v3868_v48, 1  ;;  %v10967_v55 = vsel %vm11900_vm15, %v4225_v38, %v4226_v46  ;;  %vm3562_vm15 = vcmp.ge.s32.totalorder %v3552_v22, 0 }
 0x3ac   : > { %v3532_v56 = vmax.f32 %v3502_v59, 0.0  ;;  %v3733_v35 = vsel %vm10973_vm14, %v3531_v52, 0.0  ;;  %vm11017_vm9 = vmand %vm3562_vm15, %vm3572_vm13  ;;  %vm11914_vm15 = vcmp.le.s32.totalorder %v10656_v12, 16 }
 0x3ad   : > { %v3425_v41 = vpop.f32.mrb[80].mxu0  ;;  %v10982_v29 = vsel %vm11904_vm1, %v3866_v58, %v3870_v16  ;;  %vm11614_vm1 = vmpackc.low %vm10683_vm0, %vm10694_vm3 }
 0x3ae   : > { %v3734_v44 = vsel %vm10961_vm2, %v3532_v56, 0.0  ;;  %v10986_v34 = vpack.c.bf16 %v3532_v56, %v3531_v52  ;;  %v3466_v60 = vadd.f32 %v3425_v41, %v10622_v4  ;;  %v7467_v6 = vpop.f32.mrb[81].mxu0  ;;  %7502 = vmatmul.mubr.bf16.gmra.mrb[208].mxu1 %v10982_v29  ;;  %v8102_v52 = vld [vmem:[%s11534_s4 + $0x88] sm:$0xff]   ;;  %v11908_v41 = vmov 0  ;;  %vm3648_vm13 = vmand %vm11017_vm9, %vm11914_vm15 }
 0x3af   : > { %v3428_v13 = vpop.f32.mrb[82].mxu0  ;;  %7521 = vmatprep.mubr.msk.bf16.mxu1 %vm6180_vm10, %v10672_v39  ;;  %v3755_v7 = vpack.c.bf16 %v3734_v44, %v3733_v35  ;;  %vm11009_vm10 = vmpackc.low %vm10716_vm7, %vm10726_vm8  ;;  %v11909_v41 = vsel %vm11017_vm9, 4294967295, %v11908_v41  ;;  %vm11910_vm7 = vcmask 1046528   ;;  %vm11911_vm8 = vcmp.ge.s32.totalorder %v10638_v47, 1 }
 0x3b0   : > { %v3503_v31 = vadd.f32 %v10643_v8, %v3466_v60  ;;  %v3467_v48 = vadd.f32 %v3428_v13, %v10625_v50  ;;  %v7468_v38 = vpop.f32.mrb[83].mxu0  ;;  %vm11918_vm15 = vnez %v11871_v3  ;;  %v8144_v50 = vld [vmem:[%s11534_s4 + $0x1d8] sm:$0xff]  }
 0x3b1   : > { %v4595_v4 = vshll.u32 %v3755_v7, 16  ;;  %v4785_v60 = vrot.slane %v3755_v7, 1 }
 0x3b2   : > { %v3533_v46 = vmax.f32 %v3503_v31, 0.0  ;;  %v3504_v39 = vadd.f32 %v10643_v8, %v3467_v48  ;;  %v8103_v31 = vld [vmem:[%s11534_s4 + $0x90] sm:$0xff]  }
 0x3b3   : > { %v4597_v16 = vrot.slane %v4595_v4, 1 }
 0x3b4   : > { %v3735_v18 = vsel %vm3645_vm11, %v3533_v46, 0.0  ;;  %v3534_v35 = vmax.f32 %v3504_v39, 0.0  ;;  %vm11043_vm11 = vmand %vm11017_vm9, %vm11911_vm8  ;;  %vm11917_vm8 = vsmask.f32 7424 }
 0x3b5   : > { %v3756_v59 = vpack.c.bf16 %v3735_v18, %v3735_v18  ;;  %v3433_v58 = vpop.f32.mrb[84].mxu0 }
 0x3b6   : > { %v3468_v56 = vadd.f32 %v3433_v58, %v10631_v10  ;;  %v7471_v0 = vpop.f32.mrb[85].mxu0  ;;  %7522 = vmatmul.mubr.msk.bf16.vlgmr.msra.gmra.mrb[196].mxu1 %vm11614_vm1, %v10712_v49  ;;  %v4593_v10 = vshrl.u32 %v3755_v7, 16  ;;  %vm11071_vm1 = vmpackc.low %vm11918_vm15, %vm10817_vm6  ;;  %vm11927_vm15 = vnez %v11881_v9  ;;  %v8107_v9 = vld [vmem:[%s11534_s4 + $0xb0] sm:$0xff]  }
 0x3b7   : > { %v3436_v5 = vpop.f32.mrb[86].mxu0  ;;  %7525 = vmatprep.mubr.msk.bf16.mxu1 %vm11009_vm10, %v10743_v14  ;;  %7538 = vmatpush3.bf16.msra.mxu1 %v10844_v17  ;;  %v4600_v44 = vshll.u32 %v3756_v59, 16  ;;  %v4786_v6 = vrot.slane %v3756_v59, 1  ;;  %v8201_v17 = vld [vmem:[%s8478_s17 + $0x34] sm:$0xf] }
 0x3b8   : > { %v3505_v13 = vadd.f32 %v10643_v8, %v3468_v56  ;;  %v3469_v22 = vadd.f32 %v3436_v5, %v10634_v28  ;;  %7539 = vmatprep.subr.bf16.mxu1 %v8102_v52  ;;  %v7472_v48 = vpop.f32.mrb[87].mxu0  ;;  %v4598_v38 = vor.u32 %v4597_v16, %v4593_v10  ;;  %v8105_v16 = vld [vmem:[%s11534_s4 + $0xa0] sm:$0xff]   ;;  %v5524_v47 = vunpack.c.l.bf16 %v8201_v17 }
 0x3b9   : > { %v4602_v4 = vrot.slane %v4600_v44, 1  ;;  %v11037_v46 = vsel %vm11910_vm7, %v4785_v60, %v4786_v6  ;;  %vm11056_vm7 = vmpackc.low %vm10762_vm4, %vm10776_vm5  ;;  %vm11921_vm4 = vnez %v11877_v43  ;;  %vm11922_vm5 = vnez %v11875_v45  ;;  %v8106_v45 = vld [vmem:[%s11534_s4 + $0xa8] sm:$0xff]   ;;  %v8112_v48 = vld [vmem:[%s11534_s4 + $0xd8] sm:$0xff]  }
 0x3ba   : > { %v3535_v28 = vmax.f32 %v3505_v13, 0.0  ;;  %v3506_v7 = vadd.f32 %v10643_v8, %v3469_v22  ;;  %vm11093_vm6 = vmpackc.low %vm11922_vm5, %vm11921_vm4  ;;  %vm11930_vm4 = vsmask.f32 7424  ;;  %vm11931_vm5 = vnez %v11890_v62  ;;  %v8109_v62 = vld [vmem:[%s11534_s4 + $0xc0] sm:$0xff]  }
 0x3bb   : > { %7540 = vmatpush3.bf16.msra.mxu1 %v8102_v52  ;;  %v11061_v18 = vsel %vm11917_vm8, %v4598_v38, %v4602_v4  ;;  %v3736_v52 = vsel %vm11043_vm11, %v3534_v35, 0.0  ;;  %vm11926_vm8 = vnez %v11884_v51  ;;  %v8113_v38 = vld [vmem:[%s11534_s4 + $0xe0] sm:$0xff]   ;;  %v8114_v4 = vld [vmem:[%s11534_s4 + $0xe8] sm:$0xff]  }
 0x3bc   : > { %v3737_v8 = vsel %vm11017_vm9, %v3535_v28, 0.0  ;;  %v11065_v39 = vpack.c.bf16 %v3535_v28, %v3534_v35  ;;  %v3536_v12 = vmax.f32 %v3506_v7, 0.0  ;;  %7541 = vmatprep.subr.bf16.mxu1 %v8103_v31  ;;  %vm11104_vm9 = vmpackc.low %vm11927_vm15, %vm11926_vm8  ;;  %v8115_v28 = vld [vmem:[%s11534_s4 + $0xf0] sm:$0xff]   ;;  %v8116_v7 = vld [vmem:[%s11534_s4 + $0xf8] sm:$0xff]  }
 0x3bd   : > { %v3757_v59 = vpack.c.bf16 %v3737_v8, %v3736_v52  ;;  %v8117_v8 = vld [vmem:[%s11534_s4 + $0x100] sm:$0xff]   ;;  %v8123_v52 = vld [vmem:[%s11534_s4 + $0x130] sm:$0xff]  }
 0x3be   : > { %v3738_v58 = vsel %vm3648_vm13, %v3536_v12, 0.0  ;;  %7526 = vmatmul.mubr.msk.bf16.gmra.mrb[200].mxu1 %vm11056_vm7, %v10796_v54  ;;  %vm11925_vm13 = vcmask 1046528   ;;  %v8118_v12 = vld [vmem:[%s11534_s4 + $0x108] sm:$0xff]   ;;  %v8214_v17 = vld [vmem:[%s8478_s17 + $0x60] sm:$0xf] }
 0x3bf   : > { %v3758_v33 = vpack.c.bf16 %v3738_v58, %v3738_v58  ;;  %7529 = vmatprep.mubr.msk.bf16.mxu1 %vm11071_vm1, %v10834_v53  ;;  %7542 = vmatpush3.bf16.msra.mxu1 %v8103_v31  ;;  %v5148_v3 = vshll.u32 %v3757_v59, 16  ;;  %v5146_v56 = vshrl.u32 %v3757_v59, 16  ;;  %v5338_v10 = vrot.slane %v3757_v59, 1  ;;  %v8108_v31 = vld [vmem:[%s11534_s4 + $0xb8] sm:$0xff]   ;;  %v8125_v58 = vld [vmem:[%s11534_s4 + $0x140] sm:$0xff]  }
 0x3c0   : > { %7543 = vmatprep.subr.bf16.mxu1 %v8104_v27  ;;  %v8124_v59 = vld [vmem:[%s11534_s4 + $0x138] sm:$0xff]  }
 0x3c1   : > { %v5150_v0 = vrot.slane %v5148_v3, 1  ;;  %v5153_v5 = vshll.u32 %v3758_v33, 16  ;;  %v5339_v44 = vrot.slane %v3758_v33, 1  ;;  %v8126_v33 = vld [vmem:[%s11534_s4 + $0x148] sm:$0xff]   ;;  %v8128_v3 = vld [vmem:[%s11534_s4 + $0x158] sm:$0xff]  }
 0x3c3   : > { %7544 = vmatpush3.bf16.msra.mxu1 %v8104_v27  ;;  %v5151_v6 = vor.u32 %v5150_v0, %v5146_v56  ;;  %v5155_v35 = vrot.slane %v5153_v5, 1  ;;  %v11098_v13 = vsel %vm11925_vm13, %v5338_v10, %v5339_v44  ;;  %vm11127_vm13 = vmpackc.low %vm11931_vm5, %vm10935_vm12  ;;  %v8122_v27 = vld [vmem:[%s11534_s4 + $0x128] sm:$0xff]   ;;  %v8129_v56 = vld [vmem:[%s11534_s4 + $0x160] sm:$0xff]  }
 0x3c4   : > { %7545 = vmatprep.subr.bf16.mxu1 %v8105_v16  ;;  %vm11934_vm12 = vmpackc.low %vm10683_vm0, %vm10694_vm3  ;;  %v8130_v0 = vld [vmem:[%s11534_s4 + $0x168] sm:$0xff]   ;;  %v8131_v10 = vld [vmem:[%s11534_s4 + $0x170] sm:$0xff]   ;;  %vm11937_vm3 = vnez %v11909_v41 }
 0x3c5   : > { %v11112_v43 = vsel %vm11930_vm4, %v5151_v6, %v5155_v35  ;;  %vm6273_vm0 = vmpackc.low %vm10961_vm2, %vm10973_vm14  ;;  %v11936_v5 = vld [vmem:[#allocation12_spill] sm:$0xff]  ;;  %v8132_v44 = vld [vmem:[%s11534_s4 + $0x178] sm:$0xff]   ;;  %vm5568_vm2 = vcmask 1045504  }
 0x3c6   : > { %7530 = vmatmul.mubr.msk.bf16.gmra.mrb[204].mxu1 %vm11093_vm6, %v10883_v30  ;;  %v8133_v6 = vld [vmem:[%s11534_s4 + $0x180] sm:$0xff]   ;;  %v8134_v35 = vld [vmem:[%s11534_s4 + $0x188] sm:$0xff]   ;;  %v8156_v41 = vld [vmem:[%s11534_s4 + $0x238] sm:$0xff]  }
 0x3c7   : > { %7533 = vmatprep.mubr.msk.bf16.mxu1 %vm11104_vm9, %v10912_v26  ;;  %7546 = vmatpush3.bf16.msra.mxu1 %v8105_v16  ;;  %v11935_v16 = vld [vmem:[#allocation65_spill] sm:$0xff] }
 0x3c8   : > { %7547 = vmatprep.subr.bf16.mxu1 %v8106_v45 }
 0x3cb   : > { %7548 = vmatpush3.bf16.msra.mxu1 %v8106_v45  ;;  %v8136_v45 = vld [vmem:[%s11534_s4 + $0x198] sm:$0xff]  }
 0x3cc   : > { %7549 = vmatprep.subr.bf16.mxu1 %v8107_v9 }
 0x3ce   : > { %7534 = vmatmul.mubr.msk.bf16.gmra.mrb[208].mxu1 %vm11127_vm13, %v10955_v61 }
 0x3cf   : > { %7550 = vmatpush3.bf16.msra.mxu1 %v8107_v9  ;;  %7553 = vmatprep.mubr.bf16.mxu1 %v10700_v63  ;;  %v8111_v63 = vld [vmem:[%s11534_s4 + $0xd0] sm:$0xff]   ;;  %v8137_v9 = vld [vmem:[%s11534_s4 + $0x1a0] sm:$0xff]  }
 0x3d0   : > { %7551 = vmatprep.subr.bf16.mxu1 %v8108_v31 }
 0x3d3   : > { %7552 = vmatpush3.bf16.msra.mxu1 %v8108_v31  ;;  %v8138_v31 = vld [vmem:[%s11534_s4 + $0x1a8] sm:$0xff]  }
 0x3d4   : > { %7569 = vmatprep.subr.bf16.mxu1 %v8109_v62 }
 0x3d6   : > { %7554 = vmatmul.mubr.bf16.vlgmr.msra.gmra.mrb[196].mxu1 %v10731_v23 }
 0x3d7   : > { %7557 = vmatprep.mubr.bf16.mxu1 %v10782_v20  ;;  %7570 = vmatpush3.bf16.msra.mxu1 %v8109_v62  ;;  %v8139_v62 = vld [vmem:[%s11534_s4 + $0x1b0] sm:$0xff]  }
 0x3d8   : > { %7571 = vmatprep.subr.bf16.mxu1 %v8110_v21 }
 0x3db   : > { %7572 = vmatpush3.bf16.msra.mxu1 %v8110_v21  ;;  %v8140_v21 = vld [vmem:[%s11534_s4 + $0x1b8] sm:$0xff]  }
 0x3dc   : > { %7573 = vmatprep.subr.bf16.mxu1 %v8111_v63 }
 0x3de   : > { %7558 = vmatmul.mubr.bf16.gmra.mrb[200].mxu1 %v10822_v40 }
 0x3df   : > { %7561 = vmatprep.mubr.bf16.mxu1 %v10869_v36  ;;  %7574 = vmatpush3.bf16.msra.mxu1 %v8111_v63  ;;  %v8141_v63 = vld [vmem:[%s11534_s4 + $0x1c0] sm:$0xff]  }
 0x3e0   : > { %7575 = vmatprep.subr.bf16.mxu1 %v8112_v48 }
 0x3e3   : > { %7576 = vmatpush3.bf16.msra.mxu1 %v8112_v48  ;;  %v8142_v48 = vld [vmem:[%s11534_s4 + $0x1c8] sm:$0xff]  }
 0x3e4   : > { %7577 = vmatprep.subr.bf16.mxu1 %v8113_v38 }
 0x3e6   : > { %7562 = vmatmul.mubr.bf16.gmra.mrb[204].mxu1 %v10903_v24 }
 0x3e7   : > { %7565 = vmatprep.mubr.bf16.mxu1 %v10941_v19  ;;  %7578 = vmatpush3.bf16.msra.mxu1 %v8113_v38 }
 0x3e8   : > { %7579 = vmatprep.subr.bf16.mxu1 %v8114_v4 }
 0x3eb   : > { %7580 = vmatpush3.bf16.msra.mxu1 %v8114_v4 }
 0x3ec   : > { %7581 = vmatprep.subr.bf16.mxu1 %v8115_v28 }
 0x3ee   : > { %7566 = vmatmul.mubr.bf16.gmra.mrb[208].mxu1 %v10967_v55 }
 0x3ef   : > { %7582 = vmatpush3.bf16.msra.mxu1 %v8115_v28  ;;  %7585 = vmatprep.mubr.msk.bf16.mxu1 %vm11934_vm12, %v10712_v49  ;;  %v8121_v49 = vld [vmem:[%s11534_s4 + $0x120] sm:$0xff]  }
 0x3f0   : > { %7583 = vmatprep.subr.bf16.mxu1 %v8116_v7 }
 0x3f3   : > { %7584 = vmatpush3.bf16.msra.mxu1 %v8116_v7  ;;  %v8206_v7 = vld [vmem:[%s8478_s17 + $0x50] sm:$0xf] }
 0x3f4   : > { %7601 = vmatprep.subr.bf16.mxu1 %v8117_v8 }
 0x3f6   : > { %7586 = vmatmul.mubr.msk.bf16.vlgmr.msra.gmra.mrb[196].mxu1 %vm11009_vm10, %v10743_v14 }
 0x3f7   : > { %7589 = vmatprep.mubr.msk.bf16.mxu1 %vm11056_vm7, %v10796_v54  ;;  %7602 = vmatpush3.bf16.msra.mxu1 %v8117_v8  ;;  %v5529_v8 = vunpack.c.l.bf16 %v8206_v7 }
 0x3f8   : > { %7603 = vmatprep.subr.bf16.mxu1 %v8118_v12 }
 0x3fb   : > { %7604 = vmatpush3.bf16.msra.mxu1 %v8118_v12  ;;  %v8207_v12 = vld [vmem:[%s8478_s17 + $0x54] sm:$0xf] }
 0x3fc   : > { %7605 = vmatprep.subr.bf16.mxu1 %v8119_v15 }
 0x3fe   : > { %7590 = vmatmul.mubr.msk.bf16.gmra.mrb[200].mxu1 %vm11071_vm1, %v10834_v53 }
 0x3ff   : > { %7593 = vmatprep.mubr.msk.bf16.mxu1 %vm11093_vm6, %v10883_v30  ;;  %7606 = vmatpush3.bf16.msra.mxu1 %v8119_v15  ;;  %v5530_v15 = vunpack.c.l.bf16 %v8207_v12 }
 0x400   : > { %7607 = vmatprep.subr.bf16.mxu1 %v8120_v37 }
 0x403   : > { %7608 = vmatpush3.bf16.msra.mxu1 %v8120_v37 }
 0x404   : > { %7609 = vmatprep.subr.bf16.mxu1 %v8121_v49 }
 0x406   : > { %7594 = vmatmul.mubr.msk.bf16.gmra.mrb[204].mxu1 %vm11104_vm9, %v10912_v26 }
 0x407   : > { %7597 = vmatprep.mubr.msk.bf16.mxu1 %vm11127_vm13, %v10955_v61  ;;  %7610 = vmatpush3.bf16.msra.mxu1 %v8121_v49 }
 0x408   : > { %7611 = vmatprep.subr.bf16.mxu1 %v8122_v27 }
 0x40b   : > { %7612 = vmatpush3.bf16.msra.mxu1 %v8122_v27 }
 0x40c   : > { %7613 = vmatprep.subr.bf16.mxu1 %v8123_v52 }
 0x40e   : > { %7598 = vmatmul.mubr.msk.bf16.gmra.mrb[208].mxu1 %vm6273_vm0, %v10986_v34 }
 0x40f   : > { %7614 = vmatpush3.bf16.msra.mxu1 %v8123_v52  ;;  %7617 = vmatprep.mubr.bf16.mxu1 %v10737_v32  ;;  %v8127_v32 = vld [vmem:[%s11534_s4 + $0x150] sm:$0xff]   ;;  %v8208_v52 = vld [vmem:[%s8478_s17 + $0x40] sm:$0xf] }
 0x410   : > { %7615 = vmatprep.subr.bf16.mxu1 %v8124_v59 }
 0x413   : > { %7616 = vmatpush3.bf16.msra.mxu1 %v8124_v59  ;;  %v5526_v59 = vunpack.c.l.bf16 %v8208_v52 }
 0x414   : > { %7633 = vmatprep.subr.bf16.mxu1 %v8125_v58 }
 0x416   : > { %7618 = vmatmul.mubr.bf16.vlgmr.msra.gmra.mrb[196].mxu1 %v10790_v2 }
 0x417   : > { %7621 = vmatprep.mubr.bf16.mxu1 %v10828_v25  ;;  %7634 = vmatpush3.bf16.msra.mxu1 %v8125_v58  ;;  %v8209_v58 = vld [vmem:[%s8478_s17 + $0x44] sm:$0xf] }
 0x418   : > { %7635 = vmatprep.subr.bf16.mxu1 %v8126_v33 }
 0x41b   : > { %7636 = vmatpush3.bf16.msra.mxu1 %v8126_v33  ;;  %v5527_v33 = vunpack.c.l.bf16 %v8209_v58 }
 0x41c   : > { %7637 = vmatprep.subr.bf16.mxu1 %v8127_v32 }
 0x41e   : > { %7622 = vmatmul.mubr.bf16.gmra.mrb[200].mxu1 %v10877_v1 }
 0x41f   : > { %7625 = vmatprep.mubr.bf16.mxu1 %v11935_v16  ;;  %7638 = vmatpush3.bf16.msra.mxu1 %v8127_v32 }
 0x420   : > { %7639 = vmatprep.subr.bf16.mxu1 %v8128_v3 }
 0x423   : > { %7640 = vmatpush3.bf16.msra.mxu1 %v8128_v3 }
 0x424   : > { %7641 = vmatprep.subr.bf16.mxu1 %v8129_v56 }
 0x426   : > { %7626 = vmatmul.mubr.bf16.gmra.mrb[204].mxu1 %v11936_v5 }
 0x427   : > { %7629 = vmatprep.mubr.bf16.mxu1 %v10982_v29  ;;  %7642 = vmatpush3.bf16.msra.mxu1 %v8129_v56  ;;  %v8210_v56 = vld [vmem:[%s8478_s17 + $0x58] sm:$0xf] }
 0x428   : > { %7643 = vmatprep.subr.bf16.mxu1 %v8130_v0 }
 0x42b   : > { %7644 = vmatpush3.bf16.msra.mxu1 %v8130_v0  ;;  %v5531_v0 = vunpack.c.l.bf16 %v8210_v56 }
 0x42c   : > { %7645 = vmatprep.subr.bf16.mxu1 %v8131_v10 }
 0x42e   : > { %7630 = vmatmul.mubr.bf16.gmra.mrb[208].mxu1 %v11061_v18 }
 0x42f   : > { %7646 = vmatpush3.bf16.msra.mxu1 %v8131_v10  ;;  %7649 = vmatprep.mubr.bf16.mxu1 %v10731_v23  ;;  %v8135_v23 = vld [vmem:[%s11534_s4 + $0x190] sm:$0xff]  }
 0x430   : > { %7647 = vmatprep.subr.bf16.mxu1 %v8132_v44 }
 0x433   : > { %7648 = vmatpush3.bf16.msra.mxu1 %v8132_v44 }
 0x434   : > { %7665 = vmatprep.subr.bf16.mxu1 %v8133_v6 }
 0x436   : > { %7650 = vmatmul.mubr.bf16.vlgmr.msra.gmra.mrb[196].mxu1 %v10782_v20 }
 0x437   : > { %7653 = vmatprep.mubr.bf16.mxu1 %v10822_v40  ;;  %7666 = vmatpush3.bf16.msra.mxu1 %v8133_v6 }
 0x438   : > { %7667 = vmatprep.subr.bf16.mxu1 %v8134_v35 }
 0x43b   : > { %7668 = vmatpush3.bf16.msra.mxu1 %v8134_v35  ;;  %v8211_v35 = vld [vmem:[%s8478_s17 + $0x48] sm:$0xf] }
 0x43c   : > { %7669 = vmatprep.subr.bf16.mxu1 %v8135_v23 }
 0x43e   : > { %7654 = vmatmul.mubr.bf16.gmra.mrb[200].mxu1 %v10869_v36 }
 0x43f   : > { %7657 = vmatprep.mubr.bf16.mxu1 %v10903_v24  ;;  %7670 = vmatpush3.bf16.msra.mxu1 %v8135_v23  ;;  %v5528_v23 = vunpack.c.l.bf16 %v8211_v35  ;;  %v8220_v35 = vld [vmem:[%s8709_s12] sm:$0xf] }
 0x440   : > { %7671 = vmatprep.subr.bf16.mxu1 %v8136_v45 }
 0x443   : > { %7672 = vmatpush3.bf16.msra.mxu1 %v8136_v45 }
 0x444   : > { %7673 = vmatprep.subr.bf16.mxu1 %v8137_v9 }
 0x446   : > { %7658 = vmatmul.mubr.bf16.gmra.mrb[204].mxu1 %v10941_v19 }
 0x447   : > { %7661 = vmatprep.mubr.bf16.mxu1 %v10967_v55  ;;  %7674 = vmatpush3.bf16.msra.mxu1 %v8137_v9 }
 0x448   : > { %7675 = vmatprep.subr.bf16.mxu1 %v8138_v31 }
 0x44b   : > { %7676 = vmatpush3.bf16.msra.mxu1 %v8138_v31  ;;  %v5584_v31 = vrot.slane %v5529_v8, 2 }
 0x44c   : > { %7677 = vmatprep.subr.bf16.mxu1 %v8139_v62 }
 0x44e   : > { %7662 = vmatmul.mubr.bf16.gmra.mrb[208].mxu1 %v11037_v46 }
 0x44f   : > { %7678 = vmatpush3.bf16.msra.mxu1 %v8139_v62  ;;  %7681 = vmatprep.mubr.msk.bf16.mxu1 %vm11009_vm10, %v10743_v14  ;;  %v8143_v14 = vld [vmem:[%s11534_s4 + $0x1d0] sm:$0xff]   ;;  %v5585_v62 = vrot.slane %v5530_v15, 2 }
 0x450   : > { %7679 = vmatprep.subr.bf16.mxu1 %v8140_v21 }
 0x453   : > { %7680 = vmatpush3.bf16.msra.mxu1 %v8140_v21 }
 0x454   : > { %7697 = vmatprep.subr.bf16.mxu1 %v8141_v63 }
 0x456   : > { %7682 = vmatmul.mubr.msk.bf16.vlgmr.msra.gmra.mrb[196].mxu1 %vm11056_vm7, %v10796_v54  ;;  %v8145_v54 = vld [vmem:[%s11534_s4 + $0x1e0] sm:$0xff]  }
 0x457   : > { %7685 = vmatprep.mubr.msk.bf16.mxu1 %vm11071_vm1, %v10834_v53  ;;  %7698 = vmatpush3.bf16.msra.mxu1 %v8141_v63  ;;  %v8146_v53 = vld [vmem:[%s11534_s4 + $0x1e8] sm:$0xff]   ;;  %vm6369_vm1 = vmpackc.low %vm11937_vm3, %vm11043_vm11 }
 0x458   : > { %7699 = vmatprep.subr.bf16.mxu1 %v8142_v48 }
 0x45b   : > { %7700 = vmatpush3.bf16.msra.mxu1 %v8142_v48  ;;  %v5579_v48 = vrot.slane %v5526_v59, 2 }
 0x45c   : > { %7701 = vmatprep.subr.bf16.mxu1 %v8143_v14 }
 0x45e   : > { %7686 = vmatmul.mubr.msk.bf16.gmra.mrb[200].mxu1 %vm11093_vm6, %v10883_v30  ;;  %v8147_v30 = vld [vmem:[%s11534_s4 + $0x1f0] sm:$0xff]  }
 0x45f   : > { %7689 = vmatprep.mubr.msk.bf16.mxu1 %vm11104_vm9, %v10912_v26  ;;  %7702 = vmatpush3.bf16.msra.mxu1 %v8143_v14  ;;  %v8148_v26 = vld [vmem:[%s11534_s4 + $0x1f8] sm:$0xff]   ;;  %v5580_v14 = vrot.slane %v5527_v33, 2 }
 0x460   : > { %7703 = vmatprep.subr.bf16.mxu1 %v8144_v50 }
 0x463   : > { %7704 = vmatpush3.bf16.msra.mxu1 %v8144_v50 }
 0x464   : > { %7705 = vmatprep.subr.bf16.mxu1 %v8145_v54 }
 0x466   : > { %7690 = vmatmul.mubr.msk.bf16.gmra.mrb[204].mxu1 %vm11127_vm13, %v10955_v61  ;;  %v8149_v61 = vld [vmem:[%s11534_s4 + $0x200] sm:$0xff]  }
 0x467   : > { %7693 = vmatprep.mubr.msk.bf16.mxu1 %vm6273_vm0, %v10986_v34  ;;  %7706 = vmatpush3.bf16.msra.mxu1 %v8145_v54  ;;  %v8155_v34 = vld [vmem:[%s11534_s4 + $0x230] sm:$0xff]  }
 0x468   : > { %7707 = vmatprep.subr.bf16.mxu1 %v8146_v53 }
 0x46b   : > { %7708 = vmatpush3.bf16.msra.mxu1 %v8146_v53  ;;  %v5587_v53 = vrot.slane %v5531_v0, 2  ;;  %v8219_v0 = vld [vmem:[%s8709_s12 + $0x14] sm:$0xf] }
 0x46c   : > { %7709 = vmatprep.subr.bf16.mxu1 %v8147_v30 }
 0x46e   : > { %7694 = vmatmul.mubr.msk.bf16.gmra.mrb[208].mxu1 %vm6369_vm1, %v11065_v39  ;;  %v8203_v39 = vld [vmem:[%s8478_s17 + $0x24] sm:$0xf] }
 0x46f   : > { %7710 = vmatpush3.bf16.msra.mxu1 %v8147_v30  ;;  %7713 = vmatprep.mubr.bf16.mxu1 %v10790_v2  ;;  %v8151_v2 = vld [vmem:[%s11534_s4 + $0x210] sm:$0xff]  }
 0x470   : > { %7711 = vmatprep.subr.bf16.mxu1 %v8148_v26 }
 0x473   : > { %7712 = vmatpush3.bf16.msra.mxu1 %v8148_v26  ;;  %v5582_v26 = vrot.slane %v5528_v23, 2  ;;  %v5538_v23 = vunpack.c.l.bf16 %v8220_v35 }
 0x474   : > { %7729 = vmatprep.subr.bf16.mxu1 %v8149_v61 }
 0x476   : > { %7714 = vmatmul.mubr.bf16.vlgmr.msra.gmra.mrb[196].mxu1 %v10828_v25  ;;  %v8153_v25 = vld [vmem:[%s11534_s4 + $0x220] sm:$0xff]  }
 0x477   : > { %7717 = vmatprep.mubr.bf16.mxu1 %v10877_v1  ;;  %7730 = vmatpush3.bf16.msra.mxu1 %v8149_v61  ;;  %v8154_v1 = vld [vmem:[%s11534_s4 + $0x228] sm:$0xff]  }
 0x478   : > { %7731 = vmatprep.subr.bf16.mxu1 %v8150_v57 }
 0x47b   : > { %7732 = vmatpush3.bf16.msra.mxu1 %v8150_v57 }
 0x47c   : > { %7733 = vmatprep.subr.bf16.mxu1 %v8151_v2 }
 0x47e   : > { %7718 = vmatmul.mubr.bf16.gmra.mrb[200].mxu1 %v11935_v16 }
 0x47f   : > { %7721 = vmatprep.mubr.bf16.mxu1 %v11936_v5  ;;  %7734 = vmatpush3.bf16.msra.mxu1 %v8151_v2  ;;  %v5586_v2 = vsel %vm5568_vm2, %v5584_v31, %v5585_v62 }
 0x480   : > { %7735 = vmatprep.subr.bf16.mxu1 %v8152_v42 }
 0x483   : > { %7736 = vmatpush3.bf16.msra.mxu1 %v8152_v42  ;;  %v8212_v42 = vld [vmem:[%s8478_s17 + $0x70] sm:$0xf] }
 0x484   : > { %7737 = vmatprep.subr.bf16.mxu1 %v8153_v25 }
 0x486   : > { %7722 = vmatmul.mubr.bf16.gmra.mrb[204].mxu1 %v10982_v29 }
 0x487   : > { %7725 = vmatprep.mubr.bf16.mxu1 %v11061_v18  ;;  %7738 = vmatpush3.bf16.msra.mxu1 %v8153_v25  ;;  %v8202_v18 = vld [vmem:[%s8478_s17 + $0x20] sm:$0xf]  ;;  %v5535_v25 = vunpack.c.l.bf16 %v8212_v42 }
 0x488   : > { %7739 = vmatprep.subr.bf16.mxu1 %v8154_v1 }
 0x48b   : > { %7740 = vmatpush3.bf16.msra.mxu1 %v8154_v1  ;;  %v8213_v1 = vld [vmem:[%s8478_s17 + $0x74] sm:$0xf] }
 0x48c   : > { %7741 = vmatprep.subr.bf16.mxu1 %v8155_v34 }
 0x48e   : > { %7726 = vmatmul.mubr.bf16.gmra.mrb[208].mxu1 %v11112_v43  ;;  %v11394_v43 = vld [vmem:[%s11535_s5] ss:$0 sm:$0xff] }
 0x48f   : > { %7742 = vmatpush3.bf16.msra.mxu1 %v8155_v34  ;;  %7745 = vmatprep.mubr.bf16.mxu1 %v10782_v20  ;;  %v8200_v20 = vld [vmem:[%s8478_s17 + $0x30] sm:$0xf]  ;;  %v5536_v34 = vunpack.c.l.bf16 %v8213_v1 }
 0x490   : > { %7743 = vmatprep.subr.bf16.mxu1 %v8156_v41  ;;  %v5523_v29 = vunpack.c.l.bf16 %v8200_v20 }
 0x491   : > { %v5595_v7 = vrot.slane %v5536_v34, 2  ;;  %v5599_v34 = vrot.slane %v5538_v23, 2 }
 0x493   : > { %7744 = vmatpush3.bf16.msra.mxu1 %v8156_v41 }
 0x496   : > { %7746 = vmatmul.mubr.bf16.vlgmr.msra.gmra.mrb[196].mxu1 %v10822_v40  ;;  %v5520_v40 = vunpack.c.l.bf16 %v8202_v18  ;;  %v8215_v18 = vld [vmem:[%s8478_s17 + $0x64] sm:$0xf] }
 0x497   : > { %7749 = vmatprep.mubr.bf16.mxu1 %v10869_v36  ;;  %v5521_v36 = vunpack.c.l.bf16 %v8203_v39 }
 0x499   : > { %v5570_v22 = vrot.slane %v5521_v36, 2 }
 0x49e   : > { %7750 = vmatmul.mubr.bf16.gmra.mrb[200].mxu1 %v10903_v24  ;;  %v5525_v24 = vunpack.c.l.bf16 %v8204_v11  ;;  %v5588_v11 = vsel %vm5568_vm2, %v5585_v62, %v5587_v53 }
 0x49f   : > { %7753 = vmatprep.mubr.bf16.mxu1 %v10941_v19  ;;  %v8205_v19 = vld [vmem:[%s8478_s17 + $0x28] sm:$0xf] }
 0x4a0   : > { %v5522_v60 = vunpack.c.l.bf16 %v8205_v19  ;;  %v5577_v51 = vrot.slane %v5525_v24, 2  ;;  %v8216_v24 = vld [vmem:[%s8478_s17 + $0x78] sm:$0xf] }
 0x4a1   : > { %v5537_v19 = vunpack.c.l.bf16 %v8216_v24 }
 0x4a2   : > { %v5572_v38 = vrot.slane %v5522_v60, 2 }
 0x4a3   : > { %v5597_v52 = vrot.slane %v5537_v19, 2 }
 0x4a4   : > { %v5573_v6 = vsel %vm5568_vm2, %v5570_v22, %v5572_v38 }
 0x4a6   : > { %7754 = vmatmul.mubr.bf16.gmra.mrb[204].mxu1 %v10967_v55  ;;  %v5574_v55 = vrot.slane %v5523_v29, 2  ;;  %v5581_v29 = vsel %vm5568_vm2, %v5579_v48, %v5580_v14 }
 0x4a7   : > { %7757 = vmatprep.mubr.bf16.mxu1 %v11037_v46  ;;  %v5575_v46 = vrot.slane %v5524_v47, 2  ;;  %v5532_v47 = vunpack.c.l.bf16 %v8214_v17 }
 0x4a9   : > { %v5576_v28 = vsel %vm5568_vm2, %v5574_v55, %v5575_v46  ;;  %v5578_v16 = vsel %vm5568_vm2, %v5575_v46, %v5577_v51  ;;  %v5589_v15 = vrot.slane %v5532_v47, 2 }
 0x4ae   : > { %7758 = vmatmul.mubr.bf16.gmra.mrb[208].mxu1 %v11098_v13  ;;  %v5569_v13 = vrot.slane %v5520_v40, 2  ;;  %v5533_v40 = vunpack.c.l.bf16 %v8215_v18 }
 0x4b0   : > { %v5571_v27 = vsel %vm5568_vm2, %v5569_v13, %v5570_v22  ;;  %v5583_v13 = vsel %vm5568_vm2, %v5580_v14, %v5582_v26  ;;  %v8217_v22 = vld [vmem:[%s8478_s17 + $0x68] sm:$0xf]  ;;  %s6435_s17 = sshll.u32 %s8302_s24, 4 }
 0x4b1   : > { %v5534_v51 = vunpack.c.l.bf16 %v8217_v22 }
 0x4b3   : > { %v5592_v58 = vrot.slane %v5534_v51, 2 }
 0x569   : > { %v7747_v4 = vpop.f32.mrb[196].mxu1 }
 0x56a   : > { %v5634_v37 = vadd.f32 %v7747_v4, %v11394_v43  ;;  %v5441_v49 = vpop.f32.mrb[197].mxu1 }
 0x56b   : > { %v5632_v32 = vadd.f32 %v11394_v43, %v5441_v49  ;;  %v7748_v3 = vpop.f32.mrb[198].mxu1 }
 0x56c   : > { %v5650_v5 = vadd.f32 %v5634_v37, %v5576_v28  ;;  %v5635_v10 = vadd.f32 %v7748_v3, %v11394_v43  ;;  %v5444_v44 = vpop.f32.mrb[199].mxu1  ;;  %v5594_v28 = vrot.slane %v5535_v25, 2  ;;  %v5590_v37 = vrot.slane %v5533_v40, 2 }
 0x56d   : > { %v5648_v45 = vadd.f32 %v5632_v32, %v5571_v27  ;;  %v5633_v9 = vadd.f32 %v11394_v43, %v5444_v44 }
 0x56e   : > { %v5666_v21 = vmax.f32 %v5650_v5, 0.0  ;;  %v5651_v63 = vadd.f32 %v5635_v10, %v5578_v16  ;;  %v5596_v3 = vsel %vm5568_vm2, %v5594_v28, %v5595_v7  ;;  %v8218_v16 = vld [vmem:[%s8709_s12 + $0x10] sm:$0xf]  ;;  %v5542_v5 = vunpack.c.l.bf16 %v8219_v0 }
 0x56f   : > { %v5664_v50 = vmax.f32 %v5648_v45, 0.0  ;;  %v5649_v54 = vadd.f32 %v5633_v9, %v5573_v6  ;;  %v5541_v56 = vunpack.c.l.bf16 %v8218_v16  ;;  %v5591_v6 = vsel %vm5568_vm2, %v5589_v15, %v5590_v37  ;;  %v8221_v45 = vld [vmem:[%s8709_s12 + $0x4] sm:$0xf] }
 0x570   : > { %5682 = vst [vmem:[%s11412_s8 + $0x10] sm:$0xff] %v5666_v21  ;;  %v5667_v30 = vmax.f32 %v5651_v63, 0.0  ;;  %v5539_v9 = vunpack.c.l.bf16 %v8221_v45  ;;  %v5598_v21 = vsel %vm5568_vm2, %v5595_v7, %v5597_v52  ;;  %v8222_v63 = vld [vmem:[%s8709_s12 + $0x18] sm:$0xf]  ;;  %v5593_v53 = vsel %vm5568_vm2, %v5590_v37, %v5592_v58 }
 0x571   : > { %5680 = vst [vmem:[%s11412_s8] sm:$0xff] %v5664_v50  ;;  %v5665_v61 = vmax.f32 %v5649_v54, 0.0  ;;  %v7751_v57 = vpop.f32.mrb[200].mxu1  ;;  %v5543_v48 = vunpack.c.l.bf16 %v8222_v63  ;;  %v5605_v42 = vrot.slane %v5542_v5, 2 }
 0x572   : > { %5683 = vst [vmem:[%s11412_s8 + $0x18] sm:$0xff] %v5667_v30  ;;  %v5638_v41 = vadd.f32 %v7751_v57, %v11394_v43  ;;  %v5457_v20 = vpop.f32.mrb[201].mxu1  ;;  %v8223_v30 = vld [vmem:[%s8709_s12 + $0x8] sm:$0xf]  ;;  %s5710_s12 = sadd.s32 %s6435_s17, %s6424_s14 }
 0x573   : > { %5681 = vst [vmem:[%s11412_s8 + $0x8] sm:$0xff] %v5665_v61  ;;  %v5636_v39 = vadd.f32 %v11394_v43, %v5457_v20  ;;  %v7752_v36 = vpop.f32.mrb[202].mxu1  ;;  %v5540_v26 = vunpack.c.l.bf16 %v8223_v30  ;;  %v5607_v17 = vrot.slane %v5543_v48, 2  ;;  %s6425_s24 = sshll.u32 %s5710_s12, 7 }
 0x574   : > { %v5654_v60 = vadd.f32 %v5638_v41, %v5586_v2  ;;  %v5639_v55 = vadd.f32 %v7752_v36, %v11394_v43  ;;  %v5460_v46 = vpop.f32.mrb[203].mxu1  ;;  %v5604_v2 = vrot.slane %v5541_v56, 2  ;;  %v5600_v41 = vrot.slane %v5539_v9, 2  ;;  %s11469_s18 = scalar_lea.hbm %s11536_s6, %s6425_s24 }
 0x575   : > { %v5652_v38 = vadd.f32 %v5636_v39, %v5581_v29  ;;  %v5637_v4 = vadd.f32 %v11394_v43, %v5460_v46  ;;  %v5602_v18 = vrot.slane %v5540_v26, 2  ;;  %v5608_v46 = vsel %vm5568_vm2, %v5605_v42, %v5607_v17 }
 0x576   : > { %v5670_v8 = vmax.f32 %v5654_v60, 0.0  ;;  %v5655_v12 = vadd.f32 %v5639_v55, %v5588_v11  ;;  %v5606_v36 = vsel %vm5568_vm2, %v5604_v2, %v5605_v42  ;;  %v5601_v19 = vsel %vm5568_vm2, %v5599_v34, %v5600_v41 }
 0x577   : > { %v5668_v49 = vmax.f32 %v5652_v38, 0.0  ;;  %v5653_v27 = vadd.f32 %v5637_v4, %v5583_v13  ;;  %v5603_v38 = vsel %vm5568_vm2, %v5600_v41, %v5602_v18 }
 0x578   : > { %5686 = vst [vmem:[%s11412_s8 + $0x30] sm:$0xff] %v5670_v8  ;;  %v5671_v59 = vmax.f32 %v5655_v12, 0.0 }
 0x579   : > { %5684 = vst [vmem:[%s11412_s8 + $0x20] sm:$0xff] %v5668_v49  ;;  %v5669_v33 = vmax.f32 %v5653_v27, 0.0  ;;  %v7755_v32 = vpop.f32.mrb[204].mxu1 }
 0x57a   : > { %5687 = vst [vmem:[%s11412_s8 + $0x38] sm:$0xff] %v5671_v59  ;;  %v5642_v10 = vadd.f32 %v7755_v32, %v11394_v43  ;;  %v5473_v44 = vpop.f32.mrb[205].mxu1 }
 0x57b   : > { %5685 = vst [vmem:[%s11412_s8 + $0x28] sm:$0xff] %v5669_v33  ;;  %v5640_v31 = vadd.f32 %v11394_v43, %v5473_v44  ;;  %v7756_v62 = vpop.f32.mrb[206].mxu1 }
 0x57c   : > { %v5658_v14 = vadd.f32 %v5642_v10, %v5596_v3  ;;  %v5643_v50 = vadd.f32 %v7756_v62, %v11394_v43  ;;  %v5476_v54 = vpop.f32.mrb[207].mxu1 }
 0x57d   : > { %v5656_v61 = vadd.f32 %v5640_v31, %v5591_v6  ;;  %v5641_v57 = vadd.f32 %v11394_v43, %v5476_v54 }
 0x57e   : > { %v5674_v25 = vmax.f32 %v5658_v14, 0.0  ;;  %v5659_v1 = vadd.f32 %v5643_v50, %v5598_v21 }
 0x57f   : > { %v5672_v20 = vmax.f32 %v5656_v61, 0.0  ;;  %v5657_v29 = vadd.f32 %v5641_v57, %v5593_v53 }
 0x580   : > { %5690 = vst [vmem:[%s11412_s8 + $0x50] sm:$0xff] %v5674_v25  ;;  %v5675_v47 = vmax.f32 %v5659_v1, 0.0 }
 0x581   : > { %5688 = vst [vmem:[%s11412_s8 + $0x40] sm:$0xff] %v5672_v20  ;;  %v5673_v40 = vmax.f32 %v5657_v29, 0.0  ;;  %v7759_v39 = vpop.f32.mrb[208].mxu1 }
 0x582   : > { %5691 = vst [vmem:[%s11412_s8 + $0x58] sm:$0xff] %v5675_v47  ;;  %v5646_v11 = vadd.f32 %v7759_v39, %v11394_v43  ;;  %v5489_v24 = vpop.f32.mrb[209].mxu1 }
 0x583   : > { %5689 = vst [vmem:[%s11412_s8 + $0x48] sm:$0xff] %v5673_v40  ;;  %v5644_v60 = vadd.f32 %v11394_v43, %v5489_v24  ;;  %v7760_v55 = vpop.f32.mrb[210].mxu1 }
 0x584   : > { %v5662_v13 = vadd.f32 %v5646_v11, %v5606_v36  ;;  %v5647_v22 = vadd.f32 %v7760_v55, %v11394_v43  ;;  %v5492_v51 = vpop.f32.mrb[211].mxu1 }
 0x585   : > { %v5660_v4 = vadd.f32 %v5644_v60, %v5601_v19  ;;  %v5645_v28 = vadd.f32 %v11394_v43, %v5492_v51 }
 0x586   : > { %v5678_v7 = vmax.f32 %v5662_v13, 0.0  ;;  %v5663_v8 = vadd.f32 %v5647_v22, %v5608_v46 }
 0x587   : > { %v5676_v12 = vmax.f32 %v5660_v4, 0.0  ;;  %v5661_v15 = vadd.f32 %v5645_v28, %v5603_v38 }
 0x588   : > { %5694 = vst [vmem:[%s11412_s8 + $0x70] sm:$0xff] %v5678_v7  ;;  %v5679_v37 = vmax.f32 %v5663_v8, 0.0 }
 0x589   : > { %5692 = vst [vmem:[%s11412_s8 + $0x60] sm:$0xff] %v5676_v12  ;;  %v5677_v43 = vmax.f32 %v5661_v15, 0.0 }
 0x58a   : > { %5695 = vst [vmem:[%s11412_s8 + $0x78] sm:$0xff] %v5679_v37 }
 0x58b   : > { %5693 = vst [vmem:[%s11412_s8 + $0x68] sm:$0xff] %v5677_v43 }
 0x58c   : > { %8237 = shalt.err (!%p8234_p9)
}
 0x58d   : > { %s8238_s29 = scalar_lea.hbm %s11469_s18, 2048  ;;  %s8242_s14 = scalar_lea.hbm %s11536_s6, 8192 }
 0x58e   : > { %p8239_p10 = scmp.ne.s32.totalorder %s11469_s18, %s8238_s29  ;;  %p8243_p13 = scmp.lt.u32.totalorder %s11469_s18, %s11536_s6 }
 0x58f   : > { %p8244_p0 = scmp.lt.u32.totalorder %s8242_s14, %s8238_s29  ;;  %p8246_p2 = scmp.lt.u32.totalorder %s8238_s29, %s11469_s18 }
 0x590   : > { %p8240_p11 = pnand %p8239_p10, %p8411_p3 }
 0x591   : > { %p8245_p1 = por %p8244_p0, %p8243_p13 }
 0x592   : > { %p8241_p12 = pneg %p8240_p11 }
 0x593   : > { %p8247_p4 = por %p8246_p2, %p8245_p1 }
 0x595   : > { %p8248_p5 = pnand %p8247_p4, %p8241_p12 }
 0x597   : > { %8251 = shalt.err (!%p8248_p5)
}
 0x598   : > { %s8323_s20 = smov 128   ;;  %s8324_s7 = smov 8  }
 0x599   : > { %7906 = dma.vmem_to_hbm [thread:$0]  (%p8411_p3), %s11471_s25, 2048, %s11469_s18, %s11478_s19, %s8323_s20, %s8323_s20, %s8324_s7  }
 0x59a PF: > { %p7912_p6 = scmp.ge.s32.totalorder %s8318_s28, 2  ;;  %s5728_s30 = sand.u32 1, %s8290_s21  }
 0x59b   : > { %s5729_s13 = scalar_lea.sflag [#allocation3], %s5728_s30 }
 0x59c   : > { %p7909_p7 = pnand %p7912_p6, %p8420_p8 }
 0x59e   : > { %8285 = dma.done.wait (!%p7909_p7), %s5729_s13, 2048  }
 0x59f   : > { %8287 = vsyncadd (!%p7909_p7), %s5729_s13, 4294965248  ;;  %s19_s28 = sadd.s32 1, %s8318_s28   ;;  %s11938_s10 = sld [smem:[#allocation5_spill]] }
 0x5a0   : > { %p16_p9 = scmp.ge.s32.totalorder %s19_s28, 6   ;;  %s11939_s18 = sld [smem:[#allocation6_spill]] }
 0x5a1   : > { %s11940_s21 = smov %s8294_s22  ;;  %s11941_s22 = smov %s8298_s23 }
 0x5a2   : > { %s11942_s23 = smov %s8429_s15  ;;  %s11943_s24 = smov %s8310_s26 }
 0x5a3   : > { %s11944_s25 = smov %s8314_s27  ;;  %18 = sbr.rel (!%p16_p9) target bundleno = 5 (0x5), region = 98 }
 0x5a5   : > { %s11945_s26 = smov %s11938_s10 }
 0x5a6   : > { %s11946_s27 = smov %s11939_s18 }
 0x5aa   :  { %5734 = vsyncpa [#allocation3], 1 }
 0x5ab   :  { %5736 = vsyncpa [#allocation3 + $0x1], 1 }

</bundles_post_ra>
